<compile_context>
chip_gen: v5e
topology: v5e:2x2
jax: 0.10.0
libtpu: 0.0.40
codegen_flags: <defaults>
</compile_context>

<pallas_src>
import functools
import math

import jax
import jax.numpy as jnp
from jax.experimental import pallas as pl
from jax.experimental.pallas import tpu as pltpu

LN_EPS = 1e-12  # RoFormerConfig default layer_norm_eps
VMEM_LIMIT = 48 * 1024 * 1024  # leave headroom on v7x (64 MiB physical)


# --------------------------- tiling helpers ---------------------------------

def _row_block(M, target=512):
    """Largest row tile <= target that divides M (multiple of 8), else full M."""
    if M <= target or M % 8 != 0:
        return M
    for bm in range(target, 7, -8):
        if M % bm == 0:
            return bm
    return M


def _k_block(K, target=512):
    """Largest K tile <= target that is a multiple of 128 and divides K, else full K."""
    if K <= target:
        return K
    for bk in range(target, 127, -128):
        if K % bk == 0:
            return bk
    return K


# ----------------------- fused linear (+bias/gelu/res/LN) -------------------

def _make_linear_kernel(activation, has_residual, has_ln, eps=LN_EPS):
    def kernel(*refs):
        x_ref, w_ref, b_ref = refs[0], refs[1], refs[2]
        idx = 3
        r_ref = None
        if has_residual:
            r_ref = refs[idx]
            idx += 1
        g_ref = beta_ref = None
        if has_ln:
            g_ref, beta_ref = refs[idx], refs[idx + 1]
            idx += 2
        o_ref, acc_ref = refs[idx], refs[idx + 1]

        k = pl.program_id(1)

        @pl.when(k == 0)
        def _init():
            acc_ref[...] = jnp.zeros_like(acc_ref)

        # bf16 inputs into the MXU, f32 accumulation.
        acc_ref[...] += jnp.dot(
            x_ref[...].astype(jnp.bfloat16), w_ref[...],
            preferred_element_type=jnp.float32)

        @pl.when(k == pl.num_programs(1) - 1)
        def _finalize():
            acc = acc_ref[...] + b_ref[...]
            if activation == "gelu":
                # exact (erf) GELU, matching HF hidden_act="gelu"
                acc = 0.5 * acc * (1.0 + jax.lax.erf(acc * (1.0 / math.sqrt(2.0))))
            if has_residual:
                acc = acc + r_ref[...]
            if has_ln:
                mean = jnp.mean(acc, axis=-1, keepdims=True)
                cent = acc - mean
                var = jnp.mean(cent * cent, axis=-1, keepdims=True)
                acc = cent * jax.lax.rsqrt(var + eps) * g_ref[...] + beta_ref[...]
            o_ref[...] = acc.astype(o_ref.dtype)

    return kernel


def fused_linear(x, w, b, *, activation=None, residual=None, ln_params=None):
    """out = maybe_LN(maybe_residual + maybe_gelu(x @ w + b)), f32 output."""
    M, K = x.shape
    Kw, N = w.shape
    assert Kw == K
    w = w.astype(jnp.bfloat16)

    bm = _row_block(M)
    bk = _k_block(K)
    grid = (M // bm, K // bk)

    in_specs = [
        pl.BlockSpec((bm, bk), lambda i, k: (i, k)),
        pl.BlockSpec((bk, N), lambda i, k: (k, 0)),
        pl.BlockSpec((1, N), lambda i, k: (0, 0)),
    ]
    inputs = [x, w, b.reshape(1, N)]
    if residual is not None:
        in_specs.append(pl.BlockSpec((bm, N), lambda i, k: (i, 0)))
        inputs.append(residual)
    if ln_params is not None:
        gamma, beta = ln_params
        in_specs.append(pl.BlockSpec((1, N), lambda i, k: (0, 0)))
        in_specs.append(pl.BlockSpec((1, N), lambda i, k: (0, 0)))
        inputs += [gamma.reshape(1, N), beta.reshape(1, N)]

    kernel = _make_linear_kernel(activation, residual is not None, ln_params is not None)

    bytes_accessed = (M * K * 4 + K * N * 2 + M * N * 4
                      + (M * N * 4 if residual is not None else 0))
    cost = pl.CostEstimate(
        flops=2 * M * K * N,
        transcendentals=(M * N if activation == "gelu" else 0),
        bytes_accessed=bytes_accessed)

    return pl.pallas_call(
        kernel,
        out_shape=jax.ShapeDtypeStruct((M, N), jnp.float32),
        grid=grid,
        in_specs=in_specs,
        out_specs=pl.BlockSpec((bm, N), lambda i, k: (i, 0)),
        scratch_shapes=[pltpu.VMEM((bm, N), jnp.float32)],
        compiler_params=pltpu.CompilerParams(
            dimension_semantics=("parallel", "arbitrary"),
            vmem_limit_bytes=VMEM_LIMIT),
        cost_estimate=cost,
    )(*inputs)


# --------------------------- rotary attention --------------------------------

def _rotary_attn_kernel(qkv_ref, sin_ref, cos_ref, bias_ref, o_ref, *, heads, scale):
    qkv = qkv_ref[...]            # (T, 3E) f32, per batch element
    sin = sin_ref[...]            # (T, dh//2) f32
    cos = cos_ref[...]
    bias = bias_ref[...]          # (1, T) additive key mask

    T, three_e = qkv.shape
    E = three_e // 3
    dh = E // heads
    d2 = dh // 2

    ctx_heads = []
    for h in range(heads):        # static loop; head offsets are compile-time
        q = qkv[:, h * dh:(h + 1) * dh]              # split [even|odd] layout
        k = qkv[:, E + h * dh:E + (h + 1) * dh]
        v = qkv[:, 2 * E + h * dh:2 * E + (h + 1) * dh]

        q1, q2 = q[:, :d2], q[:, d2:]
        k1, k2 = k[:, :d2], k[:, d2:]
        qr = jnp.concatenate([q1 * cos - q2 * sin, q2 * cos + q1 * sin], axis=-1)
        kr = jnp.concatenate([k1 * cos - k2 * sin, k2 * cos + k1 * sin], axis=-1)
        # TODO(synk): for large dh, replace the slice/concat rotary with a
        #             pltpu.roll(q, d2, -1) * [sin|sin]-sign trick (XLU slot).

        s = jax.lax.dot_general(
            qr.astype(jnp.bfloat16), kr.astype(jnp.bfloat16),
            dimension_numbers=(((1,), (1,)), ((), ())),
            preferred_element_type=jnp.float32) * scale
        s = s + bias
        s = s - jnp.max(s, axis=-1, keepdims=True)
        p = jnp.exp(s)
        denom = jnp.sum(p, axis=-1, keepdims=True)
        ctx = jnp.dot(p.astype(jnp.bfloat16), v.astype(jnp.bfloat16),
                      preferred_element_type=jnp.float32)
        ctx_heads.append(ctx * pl.reciprocal(denom, approx=True))

    # single lane-dense (T, E) store
    o_ref[...] = jnp.concatenate(ctx_heads, axis=-1)


def rotary_attention(qkv, sin, cos, bias, *, batch, heads):
    M, three_e = qkv.shape
    E = three_e // 3
    Tp = M // batch
    dh = E // heads
    scale = 1.0 / math.sqrt(dh)

    cost = pl.CostEstimate(
        flops=4 * batch * heads * Tp * Tp * dh,
        transcendentals=batch * heads * Tp * Tp,
        bytes_accessed=M * three_e * 4 + M * E * 4)

    return pl.pallas_call(
        functools.partial(_rotary_attn_kernel, heads=heads, scale=scale),
        out_shape=jax.ShapeDtypeStruct((M, E), jnp.float32),
        grid=(batch,),
        in_specs=[
            pl.BlockSpec((Tp, three_e), lambda b: (b, 0)),
            pl.BlockSpec((Tp, dh // 2), lambda b: (0, 0)),
            pl.BlockSpec((Tp, dh // 2), lambda b: (0, 0)),
            pl.BlockSpec((None, 1, Tp), lambda b: (b, 0, 0)),
        ],
        out_specs=pl.BlockSpec((Tp, E), lambda b: (b, 0)),
        compiler_params=pltpu.CompilerParams(
            dimension_semantics=("parallel",),
            vmem_limit_bytes=VMEM_LIMIT),
        cost_estimate=cost,
    )(qkv, sin, cos, bias)


# --------------------------- parameters (synthetic) --------------------------

def init_params(key, *, in_channels, stride, hidden, heads, n_layers, intermediate,
                init_range=0.02):
    dh = hidden // heads
    keys = iter(jax.random.split(key, 8 + 12 * n_layers))

    def w(shape):
        return init_range * jax.random.normal(next(keys), shape, dtype=jnp.float32)

    params = {
        "stride": stride,
        "heads": heads,
        # CNNDownSampling Conv1d(in_ch, hidden, k=stride, stride=stride) as a
        # (in_ch*stride, hidden) matmul over non-overlapping patches.
        "conv_w": w((in_channels * stride, hidden)).astype(jnp.bfloat16),
        "conv_b": jnp.zeros((hidden,), jnp.float32),
        "token_type_emb": w((hidden,)),
        "emb_ln_g": jnp.ones((hidden,), jnp.float32),
        "emb_ln_b": jnp.zeros((hidden,), jnp.float32),
        "layers": [],
    }
    # Per-head permutation [even dims | odd dims] of W_q / W_k columns: lets the
    # kernel use the contiguous "split" rotary form; attention output is exactly
    # the interleaved HF RoFormer rotate_half result (q and k permuted
    # consistently, V untouched -> scores and context identical).
    perm_within = jnp.concatenate([jnp.arange(0, dh, 2), jnp.arange(1, dh, 2)])
    perm = (jnp.arange(heads)[:, None] * dh + perm_within[None, :]).reshape(-1)
    for _ in range(n_layers):
        wq, bq = w((hidden, hidden)), jnp.zeros((hidden,), jnp.float32)
        wk, bk = w((hidden, hidden)), jnp.zeros((hidden,), jnp.float32)
        wv, bv = w((hidden, hidden)), jnp.zeros((hidden,), jnp.float32)
        wqkv = jnp.concatenate([wq[:, perm], wk[:, perm], wv], axis=1).astype(jnp.bfloat16)
        bqkv = jnp.concatenate([bq[perm], bk[perm], bv])
        params["layers"].append({
            "wqkv": wqkv, "bqkv": bqkv,
            "wo": w((hidden, hidden)).astype(jnp.bfloat16),
            "bo": jnp.zeros((hidden,), jnp.float32),
            "ln1_g": jnp.ones((hidden,), jnp.float32),
            "ln1_b": jnp.zeros((hidden,), jnp.float32),
            "w1": w((hidden, intermediate)).astype(jnp.bfloat16),
            "b1": jnp.zeros((intermediate,), jnp.float32),
            "w2": w((intermediate, hidden)).astype(jnp.bfloat16),
            "b2": jnp.zeros((hidden,), jnp.float32),
            "ln2_g": jnp.ones((hidden,), jnp.float32),
            "ln2_b": jnp.zeros((hidden,), jnp.float32),
        })
    return params


# --------------------------------- forward -----------------------------------

def roformer_backbone_forward(params, x, length):
    B, C_in, T = x.shape
    s = params["stride"]
    H = params["heads"]
    Tp = T // s
    E = params["conv_w"].shape[1]
    dh = E // H

    # CNNDownSampling (Conv1d k=s, stride=s) as patch matmul, fused with
    # token_type_embeddings[0] (folded into the bias) + embedding LayerNorm.
    patches = x.reshape(B, C_in, Tp, s).transpose(0, 2, 1, 3).reshape(B * Tp, C_in * s)
    h = fused_linear(patches, params["conv_w"],
                     params["conv_b"] + params["token_type_emb"],
                     ln_params=(params["emb_ln_g"], params["emb_ln_b"]))  # (B*Tp, E)
    # stack([feat]).sum(0).transpose(1,2) -> already (B, Tp, E) layout (flattened)

    # extended attention mask: (1 - mask) * finfo(f32).min over key positions
    valid = (jnp.arange(Tp)[None, :] < (length // s)[:, None]).astype(jnp.float32)
    bias = ((1.0 - valid) * jnp.finfo(jnp.float32).min)[:, None, :]   # (B, 1, Tp)

    # RoFormer sinusoidal rotary tables for the head dim
    inv_freq = 1.0 / (10000.0 ** (jnp.arange(0, dh, 2, dtype=jnp.float32) / dh))
    ang = jnp.arange(Tp, dtype=jnp.float32)[:, None] * inv_freq[None, :]
    sin, cos = jnp.sin(ang), jnp.cos(ang)                             # (Tp, dh//2)

    for layer in params["layers"]:
        qkv = fused_linear(h, layer["wqkv"], layer["bqkv"])           # (B*Tp, 3E)
        ctx = rotary_attention(qkv, sin, cos, bias, batch=B, heads=H)  # (B*Tp, E)
        h = fused_linear(ctx, layer["wo"], layer["bo"], residual=h,
                         ln_params=(layer["ln1_g"], layer["ln1_b"]))
        ff = fused_linear(h, layer["w1"], layer["b1"], activation="gelu")
        h = fused_linear(ff, layer["w2"], layer["b2"], residual=h,
                         ln_params=(layer["ln2_g"], layer["ln2_b"]))

    return h.reshape(B, Tp, E)   # last_hidden_state


# ----------------------------------- main -------------------------------------

if __name__ == "__main__":
    B, C_in, T = 2, 4, 64
    stride, hidden, heads, n_layers, intermediate = 4, 32, 2, 2, 64

    key = jax.random.PRNGKey(0)
    k_param, k_x = jax.random.split(key)
    params = init_params(k_param, in_channels=C_in, stride=stride, hidden=hidden,
                         heads=heads, n_layers=n_layers, intermediate=intermediate)
    x = jax.random.normal(k_x, (B, C_in, T), dtype=jnp.float32)
    length = jnp.array([64, 48], dtype=jnp.int32)
    assert bool(jnp.all((length // stride) * stride == length)), \
        "Length must be divisible by stride"

    fwd = jax.jit(functools.partial(roformer_backbone_forward, params))
    out = jax.block_until_ready(fwd(x, length))
    assert out.shape == (B, T // stride, hidden)
    assert bool(jnp.all(jnp.isfinite(out)))
    print("KERNEL_OK")
</pallas_src>

<mosaic_0001>
module attributes {stable_mosaic.version = 11 : i64} {
  func.func @kernel(%arg0: i32, %arg1: i32, %arg2: memref<32x16xf32, #tpu.memory_space<vmem>>, %arg3: memref<16x32xbf16, #tpu.memory_space<vmem>>, %arg4: memref<1x32xf32, #tpu.memory_space<vmem>>, %arg5: memref<1x32xf32, #tpu.memory_space<vmem>>, %arg6: memref<1x32xf32, #tpu.memory_space<vmem>>, %arg7: memref<32x32xf32, #tpu.memory_space<vmem>>, %arg8: memref<32x32xf32, #tpu.memory_space<vmem>>) attributes {dimension_semantics = [#tpu.dimension_semantics<parallel>, #tpu.dimension_semantics<arbitrary>], iteration_bounds = array<i64: 1, 1>, scalar_prefetch = 0 : i64, scratch_operands = 1 : i64, tpu.core_type = #tpu.core_type<tc>, window_params = [{transform_indices = @transform_0, window_bounds = array<i64: 32, 16>}, {transform_indices = @transform_1, window_bounds = array<i64: 16, 32>}, {pipeline_mode = #tpu.pipeline_mode<synchronous>, transform_indices = @transform_2, window_bounds = array<i64: 1, 32>}, {pipeline_mode = #tpu.pipeline_mode<synchronous>, transform_indices = @transform_3, window_bounds = array<i64: 1, 32>}, {pipeline_mode = #tpu.pipeline_mode<synchronous>, transform_indices = @transform_4, window_bounds = array<i64: 1, 32>}, {transform_indices = @transform_5, window_bounds = array<i64: 32, 32>}]} {
    %c0_i32 = arith.constant 0 : i32
    %0 = arith.cmpi eq, %arg1, %c0_i32 : i32
    %1 = arith.extui %0 : i1 to i32
    %c0_i32_0 = arith.constant 0 : i32
    %2 = arith.cmpi ne, %1, %c0_i32_0 : i32
    scf.if %2 {
      %cst_10 = arith.constant 0.000000e+00 : f32
      %13 = vector.broadcast %cst_10 : f32 to vector<32x32xf32>
      %c0_11 = arith.constant 0 : index
      %c0_12 = arith.constant 0 : index
      %14 = vector.load %arg8[%c0_11, %c0_12] : memref<32x32xf32, #tpu.memory_space<vmem>>, vector<32x32xf32>
      tpu.vector_store %arg8[%c0_11, %c0_12], %13 {strides = array<i32>} : memref<32x32xf32, #tpu.memory_space<vmem>>, vector<32x32xf32>,
    } else {
    }
    %c0 = arith.constant 0 : index
    %c0_1 = arith.constant 0 : index
    %3 = vector.load %arg8[%c0, %c0_1] : memref<32x32xf32, #tpu.memory_space<vmem>>, vector<32x32xf32>
    %c0_2 = arith.constant 0 : index
    %c0_3 = arith.constant 0 : index
    %4 = vector.load %arg2[%c0_2, %c0_3] : memref<32x16xf32, #tpu.memory_space<vmem>>, vector<32x16xf32>
    %5 = arith.truncf %4 : vector<32x16xf32> to vector<32x16xbf16>
    %c0_4 = arith.constant 0 : index
    %c0_5 = arith.constant 0 : index
    %6 = vector.load %arg3[%c0_4, %c0_5] : memref<16x32xbf16, #tpu.memory_space<vmem>>, vector<16x32xbf16>
    %cst = arith.constant dense<0.000000e+00> : vector<32x32xf32>
    %7 = tpu.matmul %5, %6, %cst {dimension_numbers = #tpu.dot_dimension_numbers<[1], [0], [0], [1], [0, 0, 1, 1], [], []>} : vector<32x16xbf16>, vector<16x32xbf16>, vector<32x32xf32> -> vector<32x32xf32>
    %8 = arith.addf %3, %7 : vector<32x32xf32>
    %c0_6 = arith.constant 0 : index
    %c0_7 = arith.constant 0 : index
    %9 = vector.load %arg8[%c0_6, %c0_7] : memref<32x32xf32, #tpu.memory_space<vmem>>, vector<32x32xf32>
    tpu.vector_store %arg8[%c0_6, %c0_7], %8 {strides = array<i32>} : memref<32x32xf32, #tpu.memory_space<vmem>>, vector<32x32xf32>,
    %c0_i32_8 = arith.constant 0 : i32
    %10 = arith.cmpi eq, %arg1, %c0_i32_8 : i32
    %11 = arith.extui %10 : i1 to i32
    %c0_i32_9 = arith.constant 0 : i32
    %12 = arith.cmpi ne, %11, %c0_i32_9 : i32
    scf.if %12 {
      %c0_10 = arith.constant 0 : index
      %c0_11 = arith.constant 0 : index
      %13 = vector.load %arg8[%c0_10, %c0_11] : memref<32x32xf32, #tpu.memory_space<vmem>>, vector<32x32xf32>
      %c0_12 = arith.constant 0 : index
      %c0_13 = arith.constant 0 : index
      %14 = vector.load %arg4[%c0_12, %c0_13] : memref<1x32xf32, #tpu.memory_space<vmem>>, vector<1x32xf32>
      %15 = vector.broadcast %14 : vector<1x32xf32> to vector<32x32xf32>
      %16 = arith.addf %13, %15 : vector<32x32xf32>
      %cst_14 = arith.constant dense<0.000000e+00> : vector<32xf32>
      %17 = vector.multi_reduction <add>, %16, %cst_14 [1] : vector<32x32xf32> to vector<32xf32>
      %18 = vector.shape_cast %17 : vector<32xf32> to vector<32x1xf32>
      %cst_15 = arith.constant 3.200000e+01 : f32
      %19 = vector.broadcast %cst_15 : f32 to vector<32x1xf32>
      %20 = arith.divf %18, %19 : vector<32x1xf32>
      %21 = vector.broadcast %20 : vector<32x1xf32> to vector<32x32xf32>
      %22 = arith.subf %16, %21 : vector<32x32xf32>
      %23 = arith.mulf %22, %22 : vector<32x32xf32>
      %cst_16 = arith.constant dense<0.000000e+00> : vector<32xf32>
      %24 = vector.multi_reduction <add>, %23, %cst_16 [1] : vector<32x32xf32> to vector<32xf32>
      %25 = vector.shape_cast %24 : vector<32xf32> to vector<32x1xf32>
      %cst_17 = arith.constant 3.200000e+01 : f32
      %26 = vector.broadcast %cst_17 : f32 to vector<32x1xf32>
      %27 = arith.divf %25, %26 : vector<32x1xf32>
      %cst_18 = arith.constant 9.99999996E-13 : f32
      %28 = vector.broadcast %cst_18 : f32 to vector<32x1xf32>
      %29 = arith.addf %27, %28 : vector<32x1xf32>
      %30 = math.rsqrt %29 : vector<32x1xf32>
      %31 = vector.broadcast %30 : vector<32x1xf32> to vector<32x32xf32>
      %32 = arith.mulf %22, %31 : vector<32x32xf32>
      %c0_19 = arith.constant 0 : index
      %c0_20 = arith.constant 0 : index
      %33 = vector.load %arg5[%c0_19, %c0_20] : memref<1x32xf32, #tpu.memory_space<vmem>>, vector<1x32xf32>
      %34 = vector.broadcast %33 : vector<1x32xf32> to vector<32x32xf32>
      %35 = arith.mulf %32, %34 : vector<32x32xf32>
      %c0_21 = arith.constant 0 : index
      %c0_22 = arith.constant 0 : index
      %36 = vector.load %arg6[%c0_21, %c0_22] : memref<1x32xf32, #tpu.memory_space<vmem>>, vector<1x32xf32>
      %37 = vector.broadcast %36 : vector<1x32xf32> to vector<32x32xf32>
      %38 = arith.addf %35, %37 : vector<32x32xf32>
      %c0_23 = arith.constant 0 : index
      %c0_24 = arith.constant 0 : index
      %39 = vector.load %arg7[%c0_23, %c0_24] : memref<32x32xf32, #tpu.memory_space<vmem>>, vector<32x32xf32>
      tpu.vector_store %arg7[%c0_23, %c0_24], %38 {strides = array<i32>} : memref<32x32xf32, #tpu.memory_space<vmem>>, vector<32x32xf32>,
    } else {
    }
    return
  }
  func.func @transform_0(%arg0: i32, %arg1: i32) -> (i32, i32) {
    %c0_i32 = arith.constant 0 : i32
    return %arg0, %arg1 : i32, i32
  }
  func.func @transform_1(%arg0: i32, %arg1: i32) -> (i32, i32) {
    %c0_i32 = arith.constant 0 : i32
    %c0_i32_0 = arith.constant 0 : i32
    return %arg1, %c0_i32 : i32, i32
  }
  func.func @transform_2(%arg0: i32, %arg1: i32) -> (i32, i32) {
    %c0_i32 = arith.constant 0 : i32
    %c0_i32_0 = arith.constant 0 : i32
    %c0_i32_1 = arith.constant 0 : i32
    return %c0_i32, %c0_i32_0 : i32, i32
  }
  func.func @transform_3(%arg0: i32, %arg1: i32) -> (i32, i32) {
    %c0_i32 = arith.constant 0 : i32
    %c0_i32_0 = arith.constant 0 : i32
    %c0_i32_1 = arith.constant 0 : i32
    return %c0_i32, %c0_i32_0 : i32, i32
  }
  func.func @transform_4(%arg0: i32, %arg1: i32) -> (i32, i32) {
    %c0_i32 = arith.constant 0 : i32
    %c0_i32_0 = arith.constant 0 : i32
    %c0_i32_1 = arith.constant 0 : i32
    return %c0_i32, %c0_i32_0 : i32, i32
  }
  func.func @transform_5(%arg0: i32, %arg1: i32) -> (i32, i32) {
    %c0_i32 = arith.constant 0 : i32
    %c0_i32_0 = arith.constant 0 : i32
    return %arg0, %c0_i32 : i32, i32
  }
}

module attributes {stable_mosaic.version = 11 : i64} {
  func.func @kernel(%arg0: i32, %arg1: i32, %arg2: memref<32x32xf32, #tpu.memory_space<vmem>>, %arg3: memref<32x96xbf16, #tpu.memory_space<vmem>>, %arg4: memref<1x96xf32, #tpu.memory_space<vmem>>, %arg5: memref<32x96xf32, #tpu.memory_space<vmem>>, %arg6: memref<32x96xf32, #tpu.memory_space<vmem>>) attributes {dimension_semantics = [#tpu.dimension_semantics<parallel>, #tpu.dimension_semantics<arbitrary>], iteration_bounds = array<i64: 1, 1>, scalar_prefetch = 0 : i64, scratch_operands = 1 : i64, tpu.core_type = #tpu.core_type<tc>, window_params = [{transform_indices = @transform_0, window_bounds = array<i64: 32, 32>}, {transform_indices = @transform_1, window_bounds = array<i64: 32, 96>}, {pipeline_mode = #tpu.pipeline_mode<synchronous>, transform_indices = @transform_2, window_bounds = array<i64: 1, 96>}, {transform_indices = @transform_3, window_bounds = array<i64: 32, 96>}]} {
    %c0_i32 = arith.constant 0 : i32
    %0 = arith.cmpi eq, %arg1, %c0_i32 : i32
    %1 = arith.extui %0 : i1 to i32
    %c0_i32_0 = arith.constant 0 : i32
    %2 = arith.cmpi ne, %1, %c0_i32_0 : i32
    scf.if %2 {
      %cst_10 = arith.constant 0.000000e+00 : f32
      %13 = vector.broadcast %cst_10 : f32 to vector<32x96xf32>
      %c0_11 = arith.constant 0 : index
      %c0_12 = arith.constant 0 : index
      %14 = vector.load %arg6[%c0_11, %c0_12] : memref<32x96xf32, #tpu.memory_space<vmem>>, vector<32x96xf32>
      tpu.vector_store %arg6[%c0_11, %c0_12], %13 {strides = array<i32>} : memref<32x96xf32, #tpu.memory_space<vmem>>, vector<32x96xf32>,
    } else {
    }
    %c0 = arith.constant 0 : index
    %c0_1 = arith.constant 0 : index
    %3 = vector.load %arg6[%c0, %c0_1] : memref<32x96xf32, #tpu.memory_space<vmem>>, vector<32x96xf32>
    %c0_2 = arith.constant 0 : index
    %c0_3 = arith.constant 0 : index
    %4 = vector.load %arg2[%c0_2, %c0_3] : memref<32x32xf32, #tpu.memory_space<vmem>>, vector<32x32xf32>
    %5 = arith.truncf %4 : vector<32x32xf32> to vector<32x32xbf16>
    %c0_4 = arith.constant 0 : index
    %c0_5 = arith.constant 0 : index
    %6 = vector.load %arg3[%c0_4, %c0_5] : memref<32x96xbf16, #tpu.memory_space<vmem>>, vector<32x96xbf16>
    %cst = arith.constant dense<0.000000e+00> : vector<32x96xf32>
    %7 = tpu.matmul %5, %6, %cst {dimension_numbers = #tpu.dot_dimension_numbers<[1], [0], [0], [1], [0, 0, 1, 1], [], []>} : vector<32x32xbf16>, vector<32x96xbf16>, vector<32x96xf32> -> vector<32x96xf32>
    %8 = arith.addf %3, %7 : vector<32x96xf32>
    %c0_6 = arith.constant 0 : index
    %c0_7 = arith.constant 0 : index
    %9 = vector.load %arg6[%c0_6, %c0_7] : memref<32x96xf32, #tpu.memory_space<vmem>>, vector<32x96xf32>
    tpu.vector_store %arg6[%c0_6, %c0_7], %8 {strides = array<i32>} : memref<32x96xf32, #tpu.memory_space<vmem>>, vector<32x96xf32>,
    %c0_i32_8 = arith.constant 0 : i32
    %10 = arith.cmpi eq, %arg1, %c0_i32_8 : i32
    %11 = arith.extui %10 : i1 to i32
    %c0_i32_9 = arith.constant 0 : i32
    %12 = arith.cmpi ne, %11, %c0_i32_9 : i32
    scf.if %12 {
      %c0_10 = arith.constant 0 : index
      %c0_11 = arith.constant 0 : index
      %13 = vector.load %arg6[%c0_10, %c0_11] : memref<32x96xf32, #tpu.memory_space<vmem>>, vector<32x96xf32>
      %c0_12 = arith.constant 0 : index
      %c0_13 = arith.constant 0 : index
      %14 = vector.load %arg4[%c0_12, %c0_13] : memref<1x96xf32, #tpu.memory_space<vmem>>, vector<1x96xf32>
      %15 = vector.broadcast %14 : vector<1x96xf32> to vector<32x96xf32>
      %16 = arith.addf %13, %15 : vector<32x96xf32>
      %c0_14 = arith.constant 0 : index
      %c0_15 = arith.constant 0 : index
      %17 = vector.load %arg5[%c0_14, %c0_15] : memref<32x96xf32, #tpu.memory_space<vmem>>, vector<32x96xf32>
      tpu.vector_store %arg5[%c0_14, %c0_15], %16 {strides = array<i32>} : memref<32x96xf32, #tpu.memory_space<vmem>>, vector<32x96xf32>,
    } else {
    }
    return
  }
  func.func @transform_0(%arg0: i32, %arg1: i32) -> (i32, i32) {
    %c0_i32 = arith.constant 0 : i32
    return %arg0, %arg1 : i32, i32
  }
  func.func @transform_1(%arg0: i32, %arg1: i32) -> (i32, i32) {
    %c0_i32 = arith.constant 0 : i32
    %c0_i32_0 = arith.constant 0 : i32
    return %arg1, %c0_i32 : i32, i32
  }
  func.func @transform_2(%arg0: i32, %arg1: i32) -> (i32, i32) {
    %c0_i32 = arith.constant 0 : i32
    %c0_i32_0 = arith.constant 0 : i32
    %c0_i32_1 = arith.constant 0 : i32
    return %c0_i32, %c0_i32_0 : i32, i32
  }
  func.func @transform_3(%arg0: i32, %arg1: i32) -> (i32, i32) {
    %c0_i32 = arith.constant 0 : i32
    %c0_i32_0 = arith.constant 0 : i32
    return %arg0, %c0_i32 : i32, i32
  }
}

module attributes {stable_mosaic.version = 11 : i64} {
  func.func @_rotary_attn_kernel(%arg0: i32, %arg1: memref<16x96xf32, #tpu.memory_space<vmem>>, %arg2: memref<16x8xf32, #tpu.memory_space<vmem>>, %arg3: memref<16x8xf32, #tpu.memory_space<vmem>>, %arg4: memref<1x1x16xf32, #tpu.memory_space<vmem>>, %arg5: memref<16x32xf32, #tpu.memory_space<vmem>>) attributes {dimension_semantics = [#tpu.dimension_semantics<parallel>], iteration_bounds = array<i64: 2>, scalar_prefetch = 0 : i64, scratch_operands = 0 : i64, tpu.core_type = #tpu.core_type<tc>, window_params = [{transform_indices = @transform_0, window_bounds = array<i64: 16, 96>}, {pipeline_mode = #tpu.pipeline_mode<synchronous>, transform_indices = @transform_1, window_bounds = array<i64: 16, 8>}, {pipeline_mode = #tpu.pipeline_mode<synchronous>, transform_indices = @transform_2, window_bounds = array<i64: 16, 8>}, {transform_indices = @transform_3, window_bounds = array<i64: 1, 1, 16>}, {transform_indices = @transform_4, window_bounds = array<i64: 16, 32>}]} {
    %c0 = arith.constant 0 : index
    %c0_0 = arith.constant 0 : index
    %0 = vector.load %arg1[%c0, %c0_0] : memref<16x96xf32, #tpu.memory_space<vmem>>, vector<16x96xf32>
    %c0_1 = arith.constant 0 : index
    %c0_2 = arith.constant 0 : index
    %1 = vector.load %arg2[%c0_1, %c0_2] : memref<16x8xf32, #tpu.memory_space<vmem>>, vector<16x8xf32>
    %c0_3 = arith.constant 0 : index
    %c0_4 = arith.constant 0 : index
    %2 = vector.load %arg3[%c0_3, %c0_4] : memref<16x8xf32, #tpu.memory_space<vmem>>, vector<16x8xf32>
    %c0_5 = arith.constant 0 : index
    %c0_6 = arith.constant 0 : index
    %c0_7 = arith.constant 0 : index
    %3 = vector.load %arg4[%c0_5, %c0_6, %c0_7] : memref<1x1x16xf32, #tpu.memory_space<vmem>>, vector<1x1x16xf32>
    %4 = vector.shape_cast %3 : vector<1x1x16xf32> to vector<1x16xf32>
    %5 = vector.extract_strided_slice %0 {offsets = [0, 0], sizes = [16, 16], strides = [1, 1]} : vector<16x96xf32> to vector<16x16xf32>
    %6 = vector.extract_strided_slice %0 {offsets = [0, 32], sizes = [16, 16], strides = [1, 1]} : vector<16x96xf32> to vector<16x16xf32>
    %7 = vector.extract_strided_slice %0 {offsets = [0, 64], sizes = [16, 16], strides = [1, 1]} : vector<16x96xf32> to vector<16x16xf32>
    %8 = vector.extract_strided_slice %5 {offsets = [0, 0], sizes = [16, 8], strides = [1, 1]} : vector<16x16xf32> to vector<16x8xf32>
    %9 = vector.extract_strided_slice %5 {offsets = [0, 8], sizes = [16, 8], strides = [1, 1]} : vector<16x16xf32> to vector<16x8xf32>
    %10 = vector.extract_strided_slice %6 {offsets = [0, 0], sizes = [16, 8], strides = [1, 1]} : vector<16x16xf32> to vector<16x8xf32>
    %11 = vector.extract_strided_slice %6 {offsets = [0, 8], sizes = [16, 8], strides = [1, 1]} : vector<16x16xf32> to vector<16x8xf32>
    %12 = arith.mulf %8, %2 : vector<16x8xf32>
    %13 = arith.mulf %9, %1 : vector<16x8xf32>
    %14 = arith.subf %12, %13 : vector<16x8xf32>
    %15 = arith.mulf %9, %2 : vector<16x8xf32>
    %16 = arith.mulf %8, %1 : vector<16x8xf32>
    %17 = arith.addf %15, %16 : vector<16x8xf32>
    %18 = tpu.concatenate %14, %17 in 1 : vector<16x8xf32>, vector<16x8xf32> -> vector<16x16xf32>
    %19 = arith.mulf %10, %2 : vector<16x8xf32>
    %20 = arith.mulf %11, %1 : vector<16x8xf32>
    %21 = arith.subf %19, %20 : vector<16x8xf32>
    %22 = arith.mulf %11, %2 : vector<16x8xf32>
    %23 = arith.mulf %10, %1 : vector<16x8xf32>
    %24 = arith.addf %22, %23 : vector<16x8xf32>
    %25 = tpu.concatenate %21, %24 in 1 : vector<16x8xf32>, vector<16x8xf32> -> vector<16x16xf32>
    %26 = arith.truncf %18 : vector<16x16xf32> to vector<16x16xbf16>
    %27 = arith.truncf %25 : vector<16x16xf32> to vector<16x16xbf16>
    %cst = arith.constant dense<0.000000e+00> : vector<16x16xf32>
    %28 = tpu.matmul %26, %27, %cst {dimension_numbers = #tpu.dot_dimension_numbers<[1], [1], [0], [0], [0, 0, 1, 0], [], []>} : vector<16x16xbf16>, vector<16x16xbf16>, vector<16x16xf32> -> vector<16x16xf32>
    %cst_8 = arith.constant 2.500000e-01 : f32
    %29 = vector.broadcast %cst_8 : f32 to vector<16x16xf32>
    %30 = arith.mulf %28, %29 : vector<16x16xf32>
    %31 = vector.broadcast %4 : vector<1x16xf32> to vector<16x16xf32>
    %32 = arith.addf %30, %31 : vector<16x16xf32>
    %cst_9 = arith.constant dense<0xFF800000> : vector<16xf32>
    %33 = vector.multi_reduction <maximumf>, %32, %cst_9 [1] : vector<16x16xf32> to vector<16xf32>
    %34 = vector.shape_cast %33 : vector<16xf32> to vector<16x1xf32>
    %35 = vector.broadcast %34 : vector<16x1xf32> to vector<16x16xf32>
    %36 = arith.subf %32, %35 : vector<16x16xf32>
    %37 = math.exp %36 : vector<16x16xf32>
    %cst_10 = arith.constant dense<0.000000e+00> : vector<16xf32>
    %38 = vector.multi_reduction <add>, %37, %cst_10 [1] : vector<16x16xf32> to vector<16xf32>
    %39 = vector.shape_cast %38 : vector<16xf32> to vector<16x1xf32>
    %40 = arith.truncf %37 : vector<16x16xf32> to vector<16x16xbf16>
    %41 = arith.truncf %7 : vector<16x16xf32> to vector<16x16xbf16>
    %cst_11 = arith.constant dense<0.000000e+00> : vector<16x16xf32>
    %42 = tpu.matmul %40, %41, %cst_11 {dimension_numbers = #tpu.dot_dimension_numbers<[1], [0], [0], [1], [0, 0, 1, 1], [], []>} : vector<16x16xbf16>, vector<16x16xbf16>, vector<16x16xf32> -> vector<16x16xf32>
    %43 = tpu.reciprocal %39 {approx = true} : vector<16x1xf32> -> vector<16x1xf32>
    %44 = vector.broadcast %43 : vector<16x1xf32> to vector<16x16xf32>
    %45 = arith.mulf %42, %44 : vector<16x16xf32>
    %46 = vector.extract_strided_slice %0 {offsets = [0, 16], sizes = [16, 16], strides = [1, 1]} : vector<16x96xf32> to vector<16x16xf32>
    %47 = vector.extract_strided_slice %0 {offsets = [0, 48], sizes = [16, 16], strides = [1, 1]} : vector<16x96xf32> to vector<16x16xf32>
    %48 = vector.extract_strided_slice %0 {offsets = [0, 80], sizes = [16, 16], strides = [1, 1]} : vector<16x96xf32> to vector<16x16xf32>
    %49 = vector.extract_strided_slice %46 {offsets = [0, 0], sizes = [16, 8], strides = [1, 1]} : vector<16x16xf32> to vector<16x8xf32>
    %50 = vector.extract_strided_slice %46 {offsets = [0, 8], sizes = [16, 8], strides = [1, 1]} : vector<16x16xf32> to vector<16x8xf32>
    %51 = vector.extract_strided_slice %47 {offsets = [0, 0], sizes = [16, 8], strides = [1, 1]} : vector<16x16xf32> to vector<16x8xf32>
    %52 = vector.extract_strided_slice %47 {offsets = [0, 8], sizes = [16, 8], strides = [1, 1]} : vector<16x16xf32> to vector<16x8xf32>
    %53 = arith.mulf %49, %2 : vector<16x8xf32>
    %54 = arith.mulf %50, %1 : vector<16x8xf32>
    %55 = arith.subf %53, %54 : vector<16x8xf32>
    %56 = arith.mulf %50, %2 : vector<16x8xf32>
    %57 = arith.mulf %49, %1 : vector<16x8xf32>
    %58 = arith.addf %56, %57 : vector<16x8xf32>
    %59 = tpu.concatenate %55, %58 in 1 : vector<16x8xf32>, vector<16x8xf32> -> vector<16x16xf32>
    %60 = arith.mulf %51, %2 : vector<16x8xf32>
    %61 = arith.mulf %52, %1 : vector<16x8xf32>
    %62 = arith.subf %60, %61 : vector<16x8xf32>
    %63 = arith.mulf %52, %2 : vector<16x8xf32>
    %64 = arith.mulf %51, %1 : vector<16x8xf32>
    %65 = arith.addf %63, %64 : vector<16x8xf32>
    %66 = tpu.concatenate %62, %65 in 1 : vector<16x8xf32>, vector<16x8xf32> -> vector<16x16xf32>
    %67 = arith.truncf %59 : vector<16x16xf32> to vector<16x16xbf16>
    %68 = arith.truncf %66 : vector<16x16xf32> to vector<16x16xbf16>
    %cst_12 = arith.constant dense<0.000000e+00> : vector<16x16xf32>
    %69 = tpu.matmul %67, %68, %cst_12 {dimension_numbers = #tpu.dot_dimension_numbers<[1], [1], [0], [0], [0, 0, 1, 0], [], []>} : vector<16x16xbf16>, vector<16x16xbf16>, vector<16x16xf32> -> vector<16x16xf32>
    %cst_13 = arith.constant 2.500000e-01 : f32
    %70 = vector.broadcast %cst_13 : f32 to vector<16x16xf32>
    %71 = arith.mulf %69, %70 : vector<16x16xf32>
    %72 = vector.broadcast %4 : vector<1x16xf32> to vector<16x16xf32>
    %73 = arith.addf %71, %72 : vector<16x16xf32>
    %cst_14 = arith.constant dense<0xFF800000> : vector<16xf32>
    %74 = vector.multi_reduction <maximumf>, %73, %cst_14 [1] : vector<16x16xf32> to vector<16xf32>
    %75 = vector.shape_cast %74 : vector<16xf32> to vector<16x1xf32>
    %76 = vector.broadcast %75 : vector<16x1xf32> to vector<16x16xf32>
    %77 = arith.subf %73, %76 : vector<16x16xf32>
    %78 = math.exp %77 : vector<16x16xf32>
    %cst_15 = arith.constant dense<0.000000e+00> : vector<16xf32>
    %79 = vector.multi_reduction <add>, %78, %cst_15 [1] : vector<16x16xf32> to vector<16xf32>
    %80 = vector.shape_cast %79 : vector<16xf32> to vector<16x1xf32>
    %81 = arith.truncf %78 : vector<16x16xf32> to vector<16x16xbf16>
    %82 = arith.truncf %48 : vector<16x16xf32> to vector<16x16xbf16>
    %cst_16 = arith.constant dense<0.000000e+00> : vector<16x16xf32>
    %83 = tpu.matmul %81, %82, %cst_16 {dimension_numbers = #tpu.dot_dimension_numbers<[1], [0], [0], [1], [0, 0, 1, 1], [], []>} : vector<16x16xbf16>, vector<16x16xbf16>, vector<16x16xf32> -> vector<16x16xf32>
    %84 = tpu.reciprocal %80 {approx = true} : vector<16x1xf32> -> vector<16x1xf32>
    %85 = vector.broadcast %84 : vector<16x1xf32> to vector<16x16xf32>
    %86 = arith.mulf %83, %85 : vector<16x16xf32>
    %87 = tpu.concatenate %45, %86 in 1 : vector<16x16xf32>, vector<16x16xf32> -> vector<16x32xf32>
    %c0_17 = arith.constant 0 : index
    %c0_18 = arith.constant 0 : index
    %88 = vector.load %arg5[%c0_17, %c0_18] : memref<16x32xf32, #tpu.memory_space<vmem>>, vector<16x32xf32>
    tpu.vector_store %arg5[%c0_17, %c0_18], %87 {strides = array<i32>} : memref<16x32xf32, #tpu.memory_space<vmem>>, vector<16x32xf32>,
    return
  }
  func.func @transform_0(%arg0: i32) -> (i32, i32) {
    %c0_i32 = arith.constant 0 : i32
    %c0_i32_0 = arith.constant 0 : i32
    return %arg0, %c0_i32 : i32, i32
  }
  func.func @transform_1(%arg0: i32) -> (i32, i32) {
    %c0_i32 = arith.constant 0 : i32
    %c0_i32_0 = arith.constant 0 : i32
    %c0_i32_1 = arith.constant 0 : i32
    return %c0_i32, %c0_i32_0 : i32, i32
  }
  func.func @transform_2(%arg0: i32) -> (i32, i32) {
    %c0_i32 = arith.constant 0 : i32
    %c0_i32_0 = arith.constant 0 : i32
    %c0_i32_1 = arith.constant 0 : i32
    return %c0_i32, %c0_i32_0 : i32, i32
  }
  func.func @transform_3(%arg0: i32) -> (i32, i32, i32) {
    %c0_i32 = arith.constant 0 : i32
    %c0_i32_0 = arith.constant 0 : i32
    %c0_i32_1 = arith.constant 0 : i32
    return %arg0, %c0_i32, %c0_i32_0 : i32, i32, i32
  }
  func.func @transform_4(%arg0: i32) -> (i32, i32) {
    %c0_i32 = arith.constant 0 : i32
    %c0_i32_0 = arith.constant 0 : i32
    return %arg0, %c0_i32 : i32, i32
  }
}

module attributes {stable_mosaic.version = 11 : i64} {
  func.func @kernel(%arg0: i32, %arg1: i32, %arg2: memref<32x32xf32, #tpu.memory_space<vmem>>, %arg3: memref<32x32xbf16, #tpu.memory_space<vmem>>, %arg4: memref<1x32xf32, #tpu.memory_space<vmem>>, %arg5: memref<32x32xf32, #tpu.memory_space<vmem>>, %arg6: memref<1x32xf32, #tpu.memory_space<vmem>>, %arg7: memref<1x32xf32, #tpu.memory_space<vmem>>, %arg8: memref<32x32xf32, #tpu.memory_space<vmem>>, %arg9: memref<32x32xf32, #tpu.memory_space<vmem>>) attributes {dimension_semantics = [#tpu.dimension_semantics<parallel>, #tpu.dimension_semantics<arbitrary>], iteration_bounds = array<i64: 1, 1>, scalar_prefetch = 0 : i64, scratch_operands = 1 : i64, tpu.core_type = #tpu.core_type<tc>, window_params = [{transform_indices = @transform_0, window_bounds = array<i64: 32, 32>}, {transform_indices = @transform_1, window_bounds = array<i64: 32, 32>}, {pipeline_mode = #tpu.pipeline_mode<synchronous>, transform_indices = @transform_2, window_bounds = array<i64: 1, 32>}, {transform_indices = @transform_3, window_bounds = array<i64: 32, 32>}, {pipeline_mode = #tpu.pipeline_mode<synchronous>, transform_indices = @transform_4, window_bounds = array<i64: 1, 32>}, {pipeline_mode = #tpu.pipeline_mode<synchronous>, transform_indices = @transform_5, window_bounds = array<i64: 1, 32>}, {transform_indices = @transform_6, window_bounds = array<i64: 32, 32>}]} {
    %c0_i32 = arith.constant 0 : i32
    %0 = arith.cmpi eq, %arg1, %c0_i32 : i32
    %1 = arith.extui %0 : i1 to i32
    %c0_i32_0 = arith.constant 0 : i32
    %2 = arith.cmpi ne, %1, %c0_i32_0 : i32
    scf.if %2 {
      %cst_10 = arith.constant 0.000000e+00 : f32
      %13 = vector.broadcast %cst_10 : f32 to vector<32x32xf32>
      %c0_11 = arith.constant 0 : index
      %c0_12 = arith.constant 0 : index
      %14 = vector.load %arg9[%c0_11, %c0_12] : memref<32x32xf32, #tpu.memory_space<vmem>>, vector<32x32xf32>
      tpu.vector_store %arg9[%c0_11, %c0_12], %13 {strides = array<i32>} : memref<32x32xf32, #tpu.memory_space<vmem>>, vector<32x32xf32>,
    } else {
    }
    %c0 = arith.constant 0 : index
    %c0_1 = arith.constant 0 : index
    %3 = vector.load %arg9[%c0, %c0_1] : memref<32x32xf32, #tpu.memory_space<vmem>>, vector<32x32xf32>
    %c0_2 = arith.constant 0 : index
    %c0_3 = arith.constant 0 : index
    %4 = vector.load %arg2[%c0_2, %c0_3] : memref<32x32xf32, #tpu.memory_space<vmem>>, vector<32x32xf32>
    %5 = arith.truncf %4 : vector<32x32xf32> to vector<32x32xbf16>
    %c0_4 = arith.constant 0 : index
    %c0_5 = arith.constant 0 : index
    %6 = vector.load %arg3[%c0_4, %c0_5] : memref<32x32xbf16, #tpu.memory_space<vmem>>, vector<32x32xbf16>
    %cst = arith.constant dense<0.000000e+00> : vector<32x32xf32>
    %7 = tpu.matmul %5, %6, %cst {dimension_numbers = #tpu.dot_dimension_numbers<[1], [0], [0], [1], [0, 0, 1, 1], [], []>} : vector<32x32xbf16>, vector<32x32xbf16>, vector<32x32xf32> -> vector<32x32xf32>
    %8 = arith.addf %3, %7 : vector<32x32xf32>
    %c0_6 = arith.constant 0 : index
    %c0_7 = arith.constant 0 : index
    %9 = vector.load %arg9[%c0_6, %c0_7] : memref<32x32xf32, #tpu.memory_space<vmem>>, vector<32x32xf32>
    tpu.vector_store %arg9[%c0_6, %c0_7], %8 {strides = array<i32>} : memref<32x32xf32, #tpu.memory_space<vmem>>, vector<32x32xf32>,
    %c0_i32_8 = arith.constant 0 : i32
    %10 = arith.cmpi eq, %arg1, %c0_i32_8 : i32
    %11 = arith.extui %10 : i1 to i32
    %c0_i32_9 = arith.constant 0 : i32
    %12 = arith.cmpi ne, %11, %c0_i32_9 : i32
    scf.if %12 {
      %c0_10 = arith.constant 0 : index
      %c0_11 = arith.constant 0 : index
      %13 = vector.load %arg9[%c0_10, %c0_11] : memref<32x32xf32, #tpu.memory_space<vmem>>, vector<32x32xf32>
      %c0_12 = arith.constant 0 : index
      %c0_13 = arith.constant 0 : index
      %14 = vector.load %arg4[%c0_12, %c0_13] : memref<1x32xf32, #tpu.memory_space<vmem>>, vector<1x32xf32>
      %15 = vector.broadcast %14 : vector<1x32xf32> to vector<32x32xf32>
      %16 = arith.addf %13, %15 : vector<32x32xf32>
      %c0_14 = arith.constant 0 : index
      %c0_15 = arith.constant 0 : index
      %17 = vector.load %arg5[%c0_14, %c0_15] : memref<32x32xf32, #tpu.memory_space<vmem>>, vector<32x32xf32>
      %18 = arith.addf %16, %17 : vector<32x32xf32>
      %cst_16 = arith.constant dense<0.000000e+00> : vector<32xf32>
      %19 = vector.multi_reduction <add>, %18, %cst_16 [1] : vector<32x32xf32> to vector<32xf32>
      %20 = vector.shape_cast %19 : vector<32xf32> to vector<32x1xf32>
      %cst_17 = arith.constant 3.200000e+01 : f32
      %21 = vector.broadcast %cst_17 : f32 to vector<32x1xf32>
      %22 = arith.divf %20, %21 : vector<32x1xf32>
      %23 = vector.broadcast %22 : vector<32x1xf32> to vector<32x32xf32>
      %24 = arith.subf %18, %23 : vector<32x32xf32>
      %25 = arith.mulf %24, %24 : vector<32x32xf32>
      %cst_18 = arith.constant dense<0.000000e+00> : vector<32xf32>
      %26 = vector.multi_reduction <add>, %25, %cst_18 [1] : vector<32x32xf32> to vector<32xf32>
      %27 = vector.shape_cast %26 : vector<32xf32> to vector<32x1xf32>
      %cst_19 = arith.constant 3.200000e+01 : f32
      %28 = vector.broadcast %cst_19 : f32 to vector<32x1xf32>
      %29 = arith.divf %27, %28 : vector<32x1xf32>
      %cst_20 = arith.constant 9.99999996E-13 : f32
      %30 = vector.broadcast %cst_20 : f32 to vector<32x1xf32>
      %31 = arith.addf %29, %30 : vector<32x1xf32>
      %32 = math.rsqrt %31 : vector<32x1xf32>
      %33 = vector.broadcast %32 : vector<32x1xf32> to vector<32x32xf32>
      %34 = arith.mulf %24, %33 : vector<32x32xf32>
      %c0_21 = arith.constant 0 : index
      %c0_22 = arith.constant 0 : index
      %35 = vector.load %arg6[%c0_21, %c0_22] : memref<1x32xf32, #tpu.memory_space<vmem>>, vector<1x32xf32>
      %36 = vector.broadcast %35 : vector<1x32xf32> to vector<32x32xf32>
      %37 = arith.mulf %34, %36 : vector<32x32xf32>
      %c0_23 = arith.constant 0 : index
      %c0_24 = arith.constant 0 : index
      %38 = vector.load %arg7[%c0_23, %c0_24] : memref<1x32xf32, #tpu.memory_space<vmem>>, vector<1x32xf32>
      %39 = vector.broadcast %38 : vector<1x32xf32> to vector<32x32xf32>
      %40 = arith.addf %37, %39 : vector<32x32xf32>
      %c0_25 = arith.constant 0 : index
      %c0_26 = arith.constant 0 : index
      %41 = vector.load %arg8[%c0_25, %c0_26] : memref<32x32xf32, #tpu.memory_space<vmem>>, vector<32x32xf32>
      tpu.vector_store %arg8[%c0_25, %c0_26], %40 {strides = array<i32>} : memref<32x32xf32, #tpu.memory_space<vmem>>, vector<32x32xf32>,
    } else {
    }
    return
  }
  func.func @transform_0(%arg0: i32, %arg1: i32) -> (i32, i32) {
    %c0_i32 = arith.constant 0 : i32
    return %arg0, %arg1 : i32, i32
  }
  func.func @transform_1(%arg0: i32, %arg1: i32) -> (i32, i32) {
    %c0_i32 = arith.constant 0 : i32
    %c0_i32_0 = arith.constant 0 : i32
    return %arg1, %c0_i32 : i32, i32
  }
  func.func @transform_2(%arg0: i32, %arg1: i32) -> (i32, i32) {
    %c0_i32 = arith.constant 0 : i32
    %c0_i32_0 = arith.constant 0 : i32
    %c0_i32_1 = arith.constant 0 : i32
    return %c0_i32, %c0_i32_0 : i32, i32
  }
  func.func @transform_3(%arg0: i32, %arg1: i32) -> (i32, i32) {
    %c0_i32 = arith.constant 0 : i32
    %c0_i32_0 = arith.constant 0 : i32
    return %arg0, %c0_i32 : i32, i32
  }
  func.func @transform_4(%arg0: i32, %arg1: i32) -> (i32, i32) {
    %c0_i32 = arith.constant 0 : i32
    %c0_i32_0 = arith.constant 0 : i32
    %c0_i32_1 = arith.constant 0 : i32
    return %c0_i32, %c0_i32_0 : i32, i32
  }
  func.func @transform_5(%arg0: i32, %arg1: i32) -> (i32, i32) {
    %c0_i32 = arith.constant 0 : i32
    %c0_i32_0 = arith.constant 0 : i32
    %c0_i32_1 = arith.constant 0 : i32
    return %c0_i32, %c0_i32_0 : i32, i32
  }
  func.func @transform_6(%arg0: i32, %arg1: i32) -> (i32, i32) {
    %c0_i32 = arith.constant 0 : i32
    %c0_i32_0 = arith.constant 0 : i32
    return %arg0, %c0_i32 : i32, i32
  }
}

module attributes {stable_mosaic.version = 11 : i64} {
  func.func @kernel(%arg0: i32, %arg1: i32, %arg2: memref<32x64xf32, #tpu.memory_space<vmem>>, %arg3: memref<64x32xbf16, #tpu.memory_space<vmem>>, %arg4: memref<1x32xf32, #tpu.memory_space<vmem>>, %arg5: memref<32x32xf32, #tpu.memory_space<vmem>>, %arg6: memref<1x32xf32, #tpu.memory_space<vmem>>, %arg7: memref<1x32xf32, #tpu.memory_space<vmem>>, %arg8: memref<32x32xf32, #tpu.memory_space<vmem>>, %arg9: memref<32x32xf32, #tpu.memory_space<vmem>>) attributes {dimension_semantics = [#tpu.dimension_semantics<parallel>, #tpu.dimension_semantics<arbitrary>], iteration_bounds = array<i64: 1, 1>, scalar_prefetch = 0 : i64, scratch_operands = 1 : i64, tpu.core_type = #tpu.core_type<tc>, window_params = [{transform_indices = @transform_0, window_bounds = array<i64: 32, 64>}, {transform_indices = @transform_1, window_bounds = array<i64: 64, 32>}, {pipeline_mode = #tpu.pipeline_mode<synchronous>, transform_indices = @transform_2, window_bounds = array<i64: 1, 32>}, {transform_indices = @transform_3, window_bounds = array<i64: 32, 32>}, {pipeline_mode = #tpu.pipeline_mode<synchronous>, transform_indices = @transform_4, window_bounds = array<i64: 1, 32>}, {pipeline_mode = #tpu.pipeline_mode<synchronous>, transform_indices = @transform_5, window_bounds = array<i64: 1, 32>}, {transform_indices = @transform_6, window_bounds = array<i64: 32, 32>}]} {
    %c0_i32 = arith.constant 0 : i32
    %0 = arith.cmpi eq, %arg1, %c0_i32 : i32
    %1 = arith.extui %0 : i1 to i32
    %c0_i32_0 = arith.constant 0 : i32
    %2 = arith.cmpi ne, %1, %c0_i32_0 : i32
    scf.if %2 {
      %cst_10 = arith.constant 0.000000e+00 : f32
      %13 = vector.broadcast %cst_10 : f32 to vector<32x32xf32>
      %c0_11 = arith.constant 0 : index
      %c0_12 = arith.constant 0 : index
      %14 = vector.load %arg9[%c0_11, %c0_12] : memref<32x32xf32, #tpu.memory_space<vmem>>, vector<32x32xf32>
      tpu.vector_store %arg9[%c0_11, %c0_12], %13 {strides = array<i32>} : memref<32x32xf32, #tpu.memory_space<vmem>>, vector<32x32xf32>,
    } else {
    }
    %c0 = arith.constant 0 : index
    %c0_1 = arith.constant 0 : index
    %3 = vector.load %arg9[%c0, %c0_1] : memref<32x32xf32, #tpu.memory_space<vmem>>, vector<32x32xf32>
    %c0_2 = arith.constant 0 : index
    %c0_3 = arith.constant 0 : index
    %4 = vector.load %arg2[%c0_2, %c0_3] : memref<32x64xf32, #tpu.memory_space<vmem>>, vector<32x64xf32>
    %5 = arith.truncf %4 : vector<32x64xf32> to vector<32x64xbf16>
    %c0_4 = arith.constant 0 : index
    %c0_5 = arith.constant 0 : index
    %6 = vector.load %arg3[%c0_4, %c0_5] : memref<64x32xbf16, #tpu.memory_space<vmem>>, vector<64x32xbf16>
    %cst = arith.constant dense<0.000000e+00> : vector<32x32xf32>
    %7 = tpu.matmul %5, %6, %cst {dimension_numbers = #tpu.dot_dimension_numbers<[1], [0], [0], [1], [0, 0, 1, 1], [], []>} : vector<32x64xbf16>, vector<64x32xbf16>, vector<32x32xf32> -> vector<32x32xf32>
    %8 = arith.addf %3, %7 : vector<32x32xf32>
    %c0_6 = arith.constant 0 : index
    %c0_7 = arith.constant 0 : index
    %9 = vector.load %arg9[%c0_6, %c0_7] : memref<32x32xf32, #tpu.memory_space<vmem>>, vector<32x32xf32>
    tpu.vector_store %arg9[%c0_6, %c0_7], %8 {strides = array<i32>} : memref<32x32xf32, #tpu.memory_space<vmem>>, vector<32x32xf32>,
    %c0_i32_8 = arith.constant 0 : i32
    %10 = arith.cmpi eq, %arg1, %c0_i32_8 : i32
    %11 = arith.extui %10 : i1 to i32
    %c0_i32_9 = arith.constant 0 : i32
    %12 = arith.cmpi ne, %11, %c0_i32_9 : i32
    scf.if %12 {
      %c0_10 = arith.constant 0 : index
      %c0_11 = arith.constant 0 : index
      %13 = vector.load %arg9[%c0_10, %c0_11] : memref<32x32xf32, #tpu.memory_space<vmem>>, vector<32x32xf32>
      %c0_12 = arith.constant 0 : index
      %c0_13 = arith.constant 0 : index
      %14 = vector.load %arg4[%c0_12, %c0_13] : memref<1x32xf32, #tpu.memory_space<vmem>>, vector<1x32xf32>
      %15 = vector.broadcast %14 : vector<1x32xf32> to vector<32x32xf32>
      %16 = arith.addf %13, %15 : vector<32x32xf32>
      %c0_14 = arith.constant 0 : index
      %c0_15 = arith.constant 0 : index
      %17 = vector.load %arg5[%c0_14, %c0_15] : memref<32x32xf32, #tpu.memory_space<vmem>>, vector<32x32xf32>
      %18 = arith.addf %16, %17 : vector<32x32xf32>
      %cst_16 = arith.constant dense<0.000000e+00> : vector<32xf32>
      %19 = vector.multi_reduction <add>, %18, %cst_16 [1] : vector<32x32xf32> to vector<32xf32>
      %20 = vector.shape_cast %19 : vector<32xf32> to vector<32x1xf32>
      %cst_17 = arith.constant 3.200000e+01 : f32
      %21 = vector.broadcast %cst_17 : f32 to vector<32x1xf32>
      %22 = arith.divf %20, %21 : vector<32x1xf32>
      %23 = vector.broadcast %22 : vector<32x1xf32> to vector<32x32xf32>
      %24 = arith.subf %18, %23 : vector<32x32xf32>
      %25 = arith.mulf %24, %24 : vector<32x32xf32>
      %cst_18 = arith.constant dense<0.000000e+00> : vector<32xf32>
      %26 = vector.multi_reduction <add>, %25, %cst_18 [1] : vector<32x32xf32> to vector<32xf32>
      %27 = vector.shape_cast %26 : vector<32xf32> to vector<32x1xf32>
      %cst_19 = arith.constant 3.200000e+01 : f32
      %28 = vector.broadcast %cst_19 : f32 to vector<32x1xf32>
      %29 = arith.divf %27, %28 : vector<32x1xf32>
      %cst_20 = arith.constant 9.99999996E-13 : f32
      %30 = vector.broadcast %cst_20 : f32 to vector<32x1xf32>
      %31 = arith.addf %29, %30 : vector<32x1xf32>
      %32 = math.rsqrt %31 : vector<32x1xf32>
      %33 = vector.broadcast %32 : vector<32x1xf32> to vector<32x32xf32>
      %34 = arith.mulf %24, %33 : vector<32x32xf32>
      %c0_21 = arith.constant 0 : index
      %c0_22 = arith.constant 0 : index
      %35 = vector.load %arg6[%c0_21, %c0_22] : memref<1x32xf32, #tpu.memory_space<vmem>>, vector<1x32xf32>
      %36 = vector.broadcast %35 : vector<1x32xf32> to vector<32x32xf32>
      %37 = arith.mulf %34, %36 : vector<32x32xf32>
      %c0_23 = arith.constant 0 : index
      %c0_24 = arith.constant 0 : index
      %38 = vector.load %arg7[%c0_23, %c0_24] : memref<1x32xf32, #tpu.memory_space<vmem>>, vector<1x32xf32>
      %39 = vector.broadcast %38 : vector<1x32xf32> to vector<32x32xf32>
      %40 = arith.addf %37, %39 : vector<32x32xf32>
      %c0_25 = arith.constant 0 : index
      %c0_26 = arith.constant 0 : index
      %41 = vector.load %arg8[%c0_25, %c0_26] : memref<32x32xf32, #tpu.memory_space<vmem>>, vector<32x32xf32>
      tpu.vector_store %arg8[%c0_25, %c0_26], %40 {strides = array<i32>} : memref<32x32xf32, #tpu.memory_space<vmem>>, vector<32x32xf32>,
    } else {
    }
    return
  }
  func.func @transform_0(%arg0: i32, %arg1: i32) -> (i32, i32) {
    %c0_i32 = arith.constant 0 : i32
    return %arg0, %arg1 : i32, i32
  }
  func.func @transform_1(%arg0: i32, %arg1: i32) -> (i32, i32) {
    %c0_i32 = arith.constant 0 : i32
    %c0_i32_0 = arith.constant 0 : i32
    return %arg1, %c0_i32 : i32, i32
  }
  func.func @transform_2(%arg0: i32, %arg1: i32) -> (i32, i32) {
    %c0_i32 = arith.constant 0 : i32
    %c0_i32_0 = arith.constant 0 : i32
    %c0_i32_1 = arith.constant 0 : i32
    return %c0_i32, %c0_i32_0 : i32, i32
  }
  func.func @transform_3(%arg0: i32, %arg1: i32) -> (i32, i32) {
    %c0_i32 = arith.constant 0 : i32
    %c0_i32_0 = arith.constant 0 : i32
    return %arg0, %c0_i32 : i32, i32
  }
  func.func @transform_4(%arg0: i32, %arg1: i32) -> (i32, i32) {
    %c0_i32 = arith.constant 0 : i32
    %c0_i32_0 = arith.constant 0 : i32
    %c0_i32_1 = arith.constant 0 : i32
    return %c0_i32, %c0_i32_0 : i32, i32
  }
  func.func @transform_5(%arg0: i32, %arg1: i32) -> (i32, i32) {
    %c0_i32 = arith.constant 0 : i32
    %c0_i32_0 = arith.constant 0 : i32
    %c0_i32_1 = arith.constant 0 : i32
    return %c0_i32, %c0_i32_0 : i32, i32
  }
  func.func @transform_6(%arg0: i32, %arg1: i32) -> (i32, i32) {
    %c0_i32 = arith.constant 0 : i32
    %c0_i32_0 = arith.constant 0 : i32
    return %arg0, %c0_i32 : i32, i32
  }
}

module attributes {stable_mosaic.version = 11 : i64} {
  func.func @kernel(%arg0: i32, %arg1: i32, %arg2: memref<32x32xf32, #tpu.memory_space<vmem>>, %arg3: memref<32x64xbf16, #tpu.memory_space<vmem>>, %arg4: memref<1x64xf32, #tpu.memory_space<vmem>>, %arg5: memref<32x64xf32, #tpu.memory_space<vmem>>, %arg6: memref<32x64xf32, #tpu.memory_space<vmem>>) attributes {dimension_semantics = [#tpu.dimension_semantics<parallel>, #tpu.dimension_semantics<arbitrary>], iteration_bounds = array<i64: 1, 1>, scalar_prefetch = 0 : i64, scratch_operands = 1 : i64, tpu.core_type = #tpu.core_type<tc>, window_params = [{transform_indices = @transform_0, window_bounds = array<i64: 32, 32>}, {transform_indices = @transform_1, window_bounds = array<i64: 32, 64>}, {pipeline_mode = #tpu.pipeline_mode<synchronous>, transform_indices = @transform_2, window_bounds = array<i64: 1, 64>}, {transform_indices = @transform_3, window_bounds = array<i64: 32, 64>}]} {
    %c0_i32 = arith.constant 0 : i32
    %0 = arith.cmpi eq, %arg1, %c0_i32 : i32
    %1 = arith.extui %0 : i1 to i32
    %c0_i32_0 = arith.constant 0 : i32
    %2 = arith.cmpi ne, %1, %c0_i32_0 : i32
    scf.if %2 {
      %cst_10 = arith.constant 0.000000e+00 : f32
      %13 = vector.broadcast %cst_10 : f32 to vector<32x64xf32>
      %c0_11 = arith.constant 0 : index
      %c0_12 = arith.constant 0 : index
      %14 = vector.load %arg6[%c0_11, %c0_12] : memref<32x64xf32, #tpu.memory_space<vmem>>, vector<32x64xf32>
      tpu.vector_store %arg6[%c0_11, %c0_12], %13 {strides = array<i32>} : memref<32x64xf32, #tpu.memory_space<vmem>>, vector<32x64xf32>,
    } else {
    }
    %c0 = arith.constant 0 : index
    %c0_1 = arith.constant 0 : index
    %3 = vector.load %arg6[%c0, %c0_1] : memref<32x64xf32, #tpu.memory_space<vmem>>, vector<32x64xf32>
    %c0_2 = arith.constant 0 : index
    %c0_3 = arith.constant 0 : index
    %4 = vector.load %arg2[%c0_2, %c0_3] : memref<32x32xf32, #tpu.memory_space<vmem>>, vector<32x32xf32>
    %5 = arith.truncf %4 : vector<32x32xf32> to vector<32x32xbf16>
    %c0_4 = arith.constant 0 : index
    %c0_5 = arith.constant 0 : index
    %6 = vector.load %arg3[%c0_4, %c0_5] : memref<32x64xbf16, #tpu.memory_space<vmem>>, vector<32x64xbf16>
    %cst = arith.constant dense<0.000000e+00> : vector<32x64xf32>
    %7 = tpu.matmul %5, %6, %cst {dimension_numbers = #tpu.dot_dimension_numbers<[1], [0], [0], [1], [0, 0, 1, 1], [], []>} : vector<32x32xbf16>, vector<32x64xbf16>, vector<32x64xf32> -> vector<32x64xf32>
    %8 = arith.addf %3, %7 : vector<32x64xf32>
    %c0_6 = arith.constant 0 : index
    %c0_7 = arith.constant 0 : index
    %9 = vector.load %arg6[%c0_6, %c0_7] : memref<32x64xf32, #tpu.memory_space<vmem>>, vector<32x64xf32>
    tpu.vector_store %arg6[%c0_6, %c0_7], %8 {strides = array<i32>} : memref<32x64xf32, #tpu.memory_space<vmem>>, vector<32x64xf32>,
    %c0_i32_8 = arith.constant 0 : i32
    %10 = arith.cmpi eq, %arg1, %c0_i32_8 : i32
    %11 = arith.extui %10 : i1 to i32
    %c0_i32_9 = arith.constant 0 : i32
    %12 = arith.cmpi ne, %11, %c0_i32_9 : i32
    scf.if %12 {
      %c0_10 = arith.constant 0 : index
      %c0_11 = arith.constant 0 : index
      %13 = vector.load %arg6[%c0_10, %c0_11] : memref<32x64xf32, #tpu.memory_space<vmem>>, vector<32x64xf32>
      %c0_12 = arith.constant 0 : index
      %c0_13 = arith.constant 0 : index
      %14 = vector.load %arg4[%c0_12, %c0_13] : memref<1x64xf32, #tpu.memory_space<vmem>>, vector<1x64xf32>
      %15 = vector.broadcast %14 : vector<1x64xf32> to vector<32x64xf32>
      %16 = arith.addf %13, %15 : vector<32x64xf32>
      %cst_14 = arith.constant 5.000000e-01 : f32
      %17 = vector.broadcast %cst_14 : f32 to vector<32x64xf32>
      %18 = arith.mulf %17, %16 : vector<32x64xf32>
      %cst_15 = arith.constant 0.707106769 : f32
      %19 = vector.broadcast %cst_15 : f32 to vector<32x64xf32>
      %20 = arith.mulf %16, %19 : vector<32x64xf32>
      %21 = math.erf %20 : vector<32x64xf32>
      %cst_16 = arith.constant 1.000000e+00 : f32
      %22 = vector.broadcast %cst_16 : f32 to vector<32x64xf32>
      %23 = arith.addf %22, %21 : vector<32x64xf32>
      %24 = arith.mulf %18, %23 : vector<32x64xf32>
      %c0_17 = arith.constant 0 : index
      %c0_18 = arith.constant 0 : index
      %25 = vector.load %arg5[%c0_17, %c0_18] : memref<32x64xf32, #tpu.memory_space<vmem>>, vector<32x64xf32>
      tpu.vector_store %arg5[%c0_17, %c0_18], %24 {strides = array<i32>} : memref<32x64xf32, #tpu.memory_space<vmem>>, vector<32x64xf32>,
    } else {
    }
    return
  }
  func.func @transform_0(%arg0: i32, %arg1: i32) -> (i32, i32) {
    %c0_i32 = arith.constant 0 : i32
    return %arg0, %arg1 : i32, i32
  }
  func.func @transform_1(%arg0: i32, %arg1: i32) -> (i32, i32) {
    %c0_i32 = arith.constant 0 : i32
    %c0_i32_0 = arith.constant 0 : i32
    return %arg1, %c0_i32 : i32, i32
  }
  func.func @transform_2(%arg0: i32, %arg1: i32) -> (i32, i32) {
    %c0_i32 = arith.constant 0 : i32
    %c0_i32_0 = arith.constant 0 : i32
    %c0_i32_1 = arith.constant 0 : i32
    return %c0_i32, %c0_i32_0 : i32, i32
  }
  func.func @transform_3(%arg0: i32, %arg1: i32) -> (i32, i32) {
    %c0_i32 = arith.constant 0 : i32
    %c0_i32_0 = arith.constant 0 : i32
    return %arg0, %c0_i32 : i32, i32
  }
}

module attributes {stable_mosaic.version = 11 : i64} {
  func.func @kernel(%arg0: i32, %arg1: i32, %arg2: memref<32x64xf32, #tpu.memory_space<vmem>>, %arg3: memref<64x32xbf16, #tpu.memory_space<vmem>>, %arg4: memref<1x32xf32, #tpu.memory_space<vmem>>, %arg5: memref<32x32xf32, #tpu.memory_space<vmem>>, %arg6: memref<1x32xf32, #tpu.memory_space<vmem>>, %arg7: memref<1x32xf32, #tpu.memory_space<vmem>>, %arg8: memref<32x32xf32, #tpu.memory_space<vmem>>, %arg9: memref<32x32xf32, #tpu.memory_space<vmem>>) attributes {dimension_semantics = [#tpu.dimension_semantics<parallel>, #tpu.dimension_semantics<arbitrary>], iteration_bounds = array<i64: 1, 1>, scalar_prefetch = 0 : i64, scratch_operands = 1 : i64, tpu.core_type = #tpu.core_type<tc>, window_params = [{transform_indices = @transform_0, window_bounds = array<i64: 32, 64>}, {transform_indices = @transform_1, window_bounds = array<i64: 64, 32>}, {pipeline_mode = #tpu.pipeline_mode<synchronous>, transform_indices = @transform_2, window_bounds = array<i64: 1, 32>}, {transform_indices = @transform_3, window_bounds = array<i64: 32, 32>}, {pipeline_mode = #tpu.pipeline_mode<synchronous>, transform_indices = @transform_4, window_bounds = array<i64: 1, 32>}, {pipeline_mode = #tpu.pipeline_mode<synchronous>, transform_indices = @transform_5, window_bounds = array<i64: 1, 32>}, {transform_indices = @transform_6, window_bounds = array<i64: 32, 32>}]} {
    %c0_i32 = arith.constant 0 : i32
    %0 = arith.cmpi eq, %arg1, %c0_i32 : i32
    %1 = arith.extui %0 : i1 to i32
    %c0_i32_0 = arith.constant 0 : i32
    %2 = arith.cmpi ne, %1, %c0_i32_0 : i32
    scf.if %2 {
      %cst_10 = arith.constant 0.000000e+00 : f32
      %13 = vector.broadcast %cst_10 : f32 to vector<32x32xf32>
      %c0_11 = arith.constant 0 : index
      %c0_12 = arith.constant 0 : index
      %14 = vector.load %arg9[%c0_11, %c0_12] : memref<32x32xf32, #tpu.memory_space<vmem>>, vector<32x32xf32>
      tpu.vector_store %arg9[%c0_11, %c0_12], %13 {strides = array<i32>} : memref<32x32xf32, #tpu.memory_space<vmem>>, vector<32x32xf32>,
    } else {
    }
    %c0 = arith.constant 0 : index
    %c0_1 = arith.constant 0 : index
    %3 = vector.load %arg9[%c0, %c0_1] : memref<32x32xf32, #tpu.memory_space<vmem>>, vector<32x32xf32>
    %c0_2 = arith.constant 0 : index
    %c0_3 = arith.constant 0 : index
    %4 = vector.load %arg2[%c0_2, %c0_3] : memref<32x64xf32, #tpu.memory_space<vmem>>, vector<32x64xf32>
    %5 = arith.truncf %4 : vector<32x64xf32> to vector<32x64xbf16>
    %c0_4 = arith.constant 0 : index
    %c0_5 = arith.constant 0 : index
    %6 = vector.load %arg3[%c0_4, %c0_5] : memref<64x32xbf16, #tpu.memory_space<vmem>>, vector<64x32xbf16>
    %cst = arith.constant dense<0.000000e+00> : vector<32x32xf32>
    %7 = tpu.matmul %5, %6, %cst {dimension_numbers = #tpu.dot_dimension_numbers<[1], [0], [0], [1], [0, 0, 1, 1], [], []>} : vector<32x64xbf16>, vector<64x32xbf16>, vector<32x32xf32> -> vector<32x32xf32>
    %8 = arith.addf %3, %7 : vector<32x32xf32>
    %c0_6 = arith.constant 0 : index
    %c0_7 = arith.constant 0 : index
    %9 = vector.load %arg9[%c0_6, %c0_7] : memref<32x32xf32, #tpu.memory_space<vmem>>, vector<32x32xf32>
    tpu.vector_store %arg9[%c0_6, %c0_7], %8 {strides = array<i32>} : memref<32x32xf32, #tpu.memory_space<vmem>>, vector<32x32xf32>,
    %c0_i32_8 = arith.constant 0 : i32
    %10 = arith.cmpi eq, %arg1, %c0_i32_8 : i32
    %11 = arith.extui %10 : i1 to i32
    %c0_i32_9 = arith.constant 0 : i32
    %12 = arith.cmpi ne, %11, %c0_i32_9 : i32
    scf.if %12 {
      %c0_10 = arith.constant 0 : index
      %c0_11 = arith.constant 0 : index
      %13 = vector.load %arg9[%c0_10, %c0_11] : memref<32x32xf32, #tpu.memory_space<vmem>>, vector<32x32xf32>
      %c0_12 = arith.constant 0 : index
      %c0_13 = arith.constant 0 : index
      %14 = vector.load %arg4[%c0_12, %c0_13] : memref<1x32xf32, #tpu.memory_space<vmem>>, vector<1x32xf32>
      %15 = vector.broadcast %14 : vector<1x32xf32> to vector<32x32xf32>
      %16 = arith.addf %13, %15 : vector<32x32xf32>
      %c0_14 = arith.constant 0 : index
      %c0_15 = arith.constant 0 : index
      %17 = vector.load %arg5[%c0_14, %c0_15] : memref<32x32xf32, #tpu.memory_space<vmem>>, vector<32x32xf32>
      %18 = arith.addf %16, %17 : vector<32x32xf32>
      %cst_16 = arith.constant dense<0.000000e+00> : vector<32xf32>
      %19 = vector.multi_reduction <add>, %18, %cst_16 [1] : vector<32x32xf32> to vector<32xf32>
      %20 = vector.shape_cast %19 : vector<32xf32> to vector<32x1xf32>
      %cst_17 = arith.constant 3.200000e+01 : f32
      %21 = vector.broadcast %cst_17 : f32 to vector<32x1xf32>
      %22 = arith.divf %20, %21 : vector<32x1xf32>
      %23 = vector.broadcast %22 : vector<32x1xf32> to vector<32x32xf32>
      %24 = arith.subf %18, %23 : vector<32x32xf32>
      %25 = arith.mulf %24, %24 : vector<32x32xf32>
      %cst_18 = arith.constant dense<0.000000e+00> : vector<32xf32>
      %26 = vector.multi_reduction <add>, %25, %cst_18 [1] : vector<32x32xf32> to vector<32xf32>
      %27 = vector.shape_cast %26 : vector<32xf32> to vector<32x1xf32>
      %cst_19 = arith.constant 3.200000e+01 : f32
      %28 = vector.broadcast %cst_19 : f32 to vector<32x1xf32>
      %29 = arith.divf %27, %28 : vector<32x1xf32>
      %cst_20 = arith.constant 9.99999996E-13 : f32
      %30 = vector.broadcast %cst_20 : f32 to vector<32x1xf32>
      %31 = arith.addf %29, %30 : vector<32x1xf32>
      %32 = math.rsqrt %31 : vector<32x1xf32>
      %33 = vector.broadcast %32 : vector<32x1xf32> to vector<32x32xf32>
      %34 = arith.mulf %24, %33 : vector<32x32xf32>
      %c0_21 = arith.constant 0 : index
      %c0_22 = arith.constant 0 : index
      %35 = vector.load %arg6[%c0_21, %c0_22] : memref<1x32xf32, #tpu.memory_space<vmem>>, vector<1x32xf32>
      %36 = vector.broadcast %35 : vector<1x32xf32> to vector<32x32xf32>
      %37 = arith.mulf %34, %36 : vector<32x32xf32>
      %c0_23 = arith.constant 0 : index
      %c0_24 = arith.constant 0 : index
      %38 = vector.load %arg7[%c0_23, %c0_24] : memref<1x32xf32, #tpu.memory_space<vmem>>, vector<1x32xf32>
      %39 = vector.broadcast %38 : vector<1x32xf32> to vector<32x32xf32>
      %40 = arith.addf %37, %39 : vector<32x32xf32>
      %c0_25 = arith.constant 0 : index
      %c0_26 = arith.constant 0 : index
      %41 = vector.load %arg8[%c0_25, %c0_26] : memref<32x32xf32, #tpu.memory_space<vmem>>, vector<32x32xf32>
      tpu.vector_store %arg8[%c0_25, %c0_26], %40 {strides = array<i32>} : memref<32x32xf32, #tpu.memory_space<vmem>>, vector<32x32xf32>,
    } else {
    }
    return
  }
  func.func @transform_0(%arg0: i32, %arg1: i32) -> (i32, i32) {
    %c0_i32 = arith.constant 0 : i32
    return %arg0, %arg1 : i32, i32
  }
  func.func @transform_1(%arg0: i32, %arg1: i32) -> (i32, i32) {
    %c0_i32 = arith.constant 0 : i32
    %c0_i32_0 = arith.constant 0 : i32
    return %arg1, %c0_i32 : i32, i32
  }
  func.func @transform_2(%arg0: i32, %arg1: i32) -> (i32, i32) {
    %c0_i32 = arith.constant 0 : i32
    %c0_i32_0 = arith.constant 0 : i32
    %c0_i32_1 = arith.constant 0 : i32
    return %c0_i32, %c0_i32_0 : i32, i32
  }
  func.func @transform_3(%arg0: i32, %arg1: i32) -> (i32, i32) {
    %c0_i32 = arith.constant 0 : i32
    %c0_i32_0 = arith.constant 0 : i32
    return %arg0, %c0_i32 : i32, i32
  }
  func.func @transform_4(%arg0: i32, %arg1: i32) -> (i32, i32) {
    %c0_i32 = arith.constant 0 : i32
    %c0_i32_0 = arith.constant 0 : i32
    %c0_i32_1 = arith.constant 0 : i32
    return %c0_i32, %c0_i32_0 : i32, i32
  }
  func.func @transform_5(%arg0: i32, %arg1: i32) -> (i32, i32) {
    %c0_i32 = arith.constant 0 : i32
    %c0_i32_0 = arith.constant 0 : i32
    %c0_i32_1 = arith.constant 0 : i32
    return %c0_i32, %c0_i32_0 : i32, i32
  }
  func.func @transform_6(%arg0: i32, %arg1: i32) -> (i32, i32) {
    %c0_i32 = arith.constant 0 : i32
    %c0_i32_0 = arith.constant 0 : i32
    return %arg0, %c0_i32 : i32, i32
  }
}

</mosaic_0001>

<bundles_post_ra>
// kernel: roformer_backbone_forward.12
= control target key start
LH: loop header
LB: loop body
LE: loop exit
PB: predicated region body
PF: predicated region fallthrough
CT: control target
= control target key end

     0   :  { %vm19_vm0 = vcmask 785408   ;;  %v124_v1 = vmov 0.0   ;;  %vm50_vm1 = vcmask 261120   ;;  %s190_s1 = inlined_call_operand.vmem [shape: bf16[32,96], index: 1, kind: input, shape index: {}]   ;;  %s191_s0 = inlined_call_operand.vmem [shape: f32[32,32], index: 0, kind: input, shape index: {}]   ;;  %s192_s2 = inlined_call_operand.vmem [shape: f32[1,96], index: 2, kind: input, shape index: {}]   ;;  %s193_s3 = inlined_call_operand.vmem [shape: f32[32,96], index: 3, kind: output, shape index: {}]  }
   0x1   :  { %v119_v0 = vld [vmem:[%s190_s1 + $0x8] sm:$0xff]  ;;  %20 = vst.msk [vmem:[#allocation2] sm:$0xff] %vm19_vm0, %v124_v1  ;;  %v118_v2 = vld [vmem:[%s190_s1] sm:$0xff]  ;;  %v30_v5 = vld [vmem:[%s191_s0 + $0x10] sm:$0xff] }
   0x2   :  { %v28_v3 = vld [vmem:[%s191_s0] sm:$0xff]  ;;  %v29_v4 = vld [vmem:[%s191_s0 + $0x8] sm:$0xff]  ;;  %21 = vst.msk [vmem:[#allocation2 + $0x8] sm:$0xff] %vm19_vm0, %v124_v1  ;;  %63 = vmatpush.bf16.msra.mxu0 %v119_v0  ;;  %120 = vmatpush.bf16.msra.mxu1 %v119_v0  ;;  %v31_v6 = vld [vmem:[%s191_s0 + $0x18] sm:$0xff] }
   0x3   :  { %22 = vst.msk [vmem:[#allocation2 + $0x10] sm:$0xff] %vm19_vm0, %v124_v1  ;;  %v32_v7 = vpack.c.bf16 %v29_v4, %v28_v3  ;;  %v33_v8 = vpack.c.bf16 %v31_v6, %v30_v5  ;;  %v123_v17 = vld [vmem:[%s192_s2] ss:$0 sm:$0xff] }
   0x4   :  { %23 = vst.msk [vmem:[#allocation2 + $0x18] sm:$0xff] %vm19_vm0, %v124_v1 }
   0x6   :  { %64 = vmatpush.bf16.msra.mxu0 %v118_v2  ;;  %121 = vmatpush.bf16.msra.mxu1 %v118_v2 }
   0x8   :  { %v24_v9 = vld [vmem:[#allocation2] sm:$0xff] }
   0x9   :  { %116 = vmatmul.msk.bf16.vlgmr.msra.gmra.mxu0 %vm50_vm1, %v32_v7  ;;  %117 = vmatmul.msk.bf16.vlgmr.msra.gmra.mxu1 %vm50_vm1, %v33_v8  ;;  %v25_v15 = vld [vmem:[#allocation2 + $0x8] sm:$0xff] }
   0xa   :  { %v26_v10 = vld [vmem:[#allocation2 + $0x10] sm:$0xff] }
   0xb   :  { %v27_v16 = vld [vmem:[#allocation2 + $0x18] sm:$0xff] }
  0x86   :  { %v66_v11 = vpop.f32.mrf.mxu0  ;;  %v71_v12 = vpop.f32.mrf.mxu1 }
  0x87   :  { %v76_v13 = vadd.f32 %v66_v11, %v24_v9  ;;  %v78_v14 = vadd.f32 %v71_v12, %v26_v10 }
  0x89   :  { %81 = vst.msk [vmem:[#allocation2] sm:$0xff] %vm19_vm0, %v76_v13 }
  0x8a   :  { %83 = vst.msk [vmem:[#allocation2 + $0x10] sm:$0xff] %vm19_vm0, %v78_v14 }
  0x8e   :  { %v68_v18 = vpop.f32.mrf.mxu0  ;;  %v73_v19 = vpop.f32.mrf.mxu1 }
  0x8f   :  { %v77_v20 = vadd.f32 %v68_v18, %v25_v15  ;;  %v79_v21 = vadd.f32 %v73_v19, %v27_v16 }
  0x90   :  { %v88_v22 = vld [vmem:[#allocation2] sm:$0xff] }
  0x91   :  { %v96_v23 = vadd.f32 %v123_v17, %v88_v22  ;;  %v90_v24 = vld [vmem:[#allocation2 + $0x10] sm:$0xff]  ;;  %82 = vst.msk [vmem:[#allocation2 + $0x8] sm:$0xff] %vm19_vm0, %v77_v20 }
  0x92   :  { %v98_v25 = vadd.f32 %v123_v17, %v90_v24  ;;  %84 = vst.msk [vmem:[#allocation2 + $0x18] sm:$0xff] %vm19_vm0, %v79_v21 }
  0x93   :  { %100 = vst.msk [vmem:[%s193_s3] sm:$0xff] %vm19_vm0, %v96_v23 }
  0x94   :  { %102 = vst.msk [vmem:[%s193_s3 + $0x10] sm:$0xff] %vm19_vm0, %v98_v25 }
  0x98   :  { %v89_v26 = vld [vmem:[#allocation2 + $0x8] sm:$0xff] }
  0x99   :  { %v97_v27 = vadd.f32 %v123_v17, %v89_v26  ;;  %v91_v28 = vld [vmem:[#allocation2 + $0x18] sm:$0xff] }
  0x9a   :  { %v99_v29 = vadd.f32 %v123_v17, %v91_v28 }
  0x9b   :  { %101 = vst.msk [vmem:[%s193_s3 + $0x8] sm:$0xff] %vm19_vm0, %v97_v27 }
  0x9c   :  { %103 = vst.msk [vmem:[%s193_s3 + $0x18] sm:$0xff] %vm19_vm0, %v99_v29 }

// kernel: roformer_backbone_forward.11
= control target key start
LH: loop header
LB: loop body
LE: loop exit
PB: predicated region body
PF: predicated region fallthrough
CT: control target
= control target key end

     0   :  { %vm25_vm0 = vcmask 261120   ;;  %v240_v3 = vmov 0.0   ;;  %vm48_vm1 = vcmask 130048   ;;  %v241_v33 = vmov 32.0   ;;  %s343_s1 = inlined_call_operand.vmem [shape: bf16[16,32], index: 1, kind: input, shape index: {}]   ;;  %s344_s0 = inlined_call_operand.vmem [shape: f32[32,16], index: 0, kind: input, shape index: {}]   ;;  %s345_s2 = inlined_call_operand.vmem [shape: f32[1,32], index: 2, kind: input, shape index: {}]   ;;  %s346_s3 = inlined_call_operand.vmem [shape: f32[1,32], index: 3, kind: input, shape index: {}]   ;;  %s347_s4 = inlined_call_operand.vmem [shape: f32[1,32], index: 4, kind: input, shape index: {}]   ;;  %s348_s5 = inlined_call_operand.vmem [shape: f32[32,32], index: 5, kind: output, shape index: {}]  }
   0x1   :  { %v223_v0 = vld [vmem:[%s343_s1] sm:$0xff]  ;;  %v35_v2 = vld [vmem:[%s344_s0 + $0x8] sm:$0xff]  ;;  %26 = vst.msk [vmem:[#allocation2] sm:$0xff] %vm25_vm0, %v240_v3  ;;  %v36_v5 = vld [vmem:[%s344_s0 + $0x10] sm:$0xff]  ;;  %230 = vrcp.f32 %v241_v33 }
   0x2   :  { %v34_v1 = vld [vmem:[%s344_s0] sm:$0xff]  ;;  %v37_v6 = vld [vmem:[%s344_s0 + $0x18] sm:$0xff]  ;;  %27 = vst.msk [vmem:[#allocation2 + $0x8] sm:$0xff] %vm25_vm0, %v240_v3  ;;  %62 = vmatpush.bf16.msra.mxu0 %v223_v0  ;;  %224 = vmatpush.bf16.msra.mxu1 %v223_v0 }
   0x3   :  { %v38_v4 = vpack.c.bf16 %v35_v2, %v34_v1  ;;  %v39_v7 = vpack.c.bf16 %v37_v6, %v36_v5  ;;  %28 = vst.msk [vmem:[#allocation2 + $0x10] sm:$0xff] %vm25_vm0, %v240_v3  ;;  %v227_v16 = vld [vmem:[%s345_s2] ss:$0 sm:$0xff] }
   0x4   :  { %29 = vst.msk [vmem:[#allocation2 + $0x18] sm:$0xff] %vm25_vm0, %v240_v3 }
   0x5   :  { %221 = vmatmul.msk.bf16.vlgmr.msra.gmra.mxu0 %vm48_vm1, %v38_v4  ;;  %222 = vmatmul.msk.bf16.vlgmr.msra.gmra.mxu1 %vm48_vm1, %v39_v7 }
   0x7   :  { %v231_v34 = vpop.eup %230 }
   0x8   :  { %v30_v8 = vld [vmem:[#allocation2] sm:$0xff]  ;;  %v111_v35 = vmul.f32 32.0, %v231_v34  ;;  %vm115_vm2 = vweird.f32 %v231_v34 }
   0x9   :  { %v31_v14 = vld [vmem:[#allocation2 + $0x8] sm:$0xff] }
   0xa   :  { %v32_v9 = vld [vmem:[#allocation2 + $0x10] sm:$0xff]  ;;  %v112_v36 = vsub.f32 1.0, %v111_v35 }
   0xb   :  { %v33_v15 = vld [vmem:[#allocation2 + $0x18] sm:$0xff] }
   0xc   :  { %v113_v37 = vmul.f32 %v231_v34, %v112_v36 }
   0xe   :  { %v114_v38 = vadd.f32 %v231_v34, %v113_v37 }
  0x10   :  { %v116_v39 = vsel %vm115_vm2, %v231_v34, %v114_v38 }
  0x82   :  { %v64_v10 = vpop.f32.mrf.mxu0  ;;  %v69_v11 = vpop.f32.mrf.mxu1 }
  0x83   :  { %v74_v12 = vadd.f32 %v64_v10, %v30_v8  ;;  %v76_v13 = vadd.f32 %v69_v11, %v32_v9 }
  0x85   :  { %79 = vst.msk [vmem:[#allocation2] sm:$0xff] %vm25_vm0, %v74_v12 }
  0x86   :  { %81 = vst.msk [vmem:[#allocation2 + $0x10] sm:$0xff] %vm25_vm0, %v76_v13 }
  0x8a   :  { %v66_v17 = vpop.f32.mrf.mxu0  ;;  %v71_v18 = vpop.f32.mrf.mxu1 }
  0x8b   :  { %v75_v19 = vadd.f32 %v66_v17, %v31_v14  ;;  %v77_v20 = vadd.f32 %v71_v18, %v33_v15 }
  0x8c   :  { %v86_v21 = vld [vmem:[#allocation2] sm:$0xff] }
  0x8d   :  { %80 = vst.msk [vmem:[#allocation2 + $0x8] sm:$0xff] %vm25_vm0, %v75_v19  ;;  %v88_v22 = vld [vmem:[#allocation2 + $0x10] sm:$0xff]  ;;  %v94_v23 = vadd.f32 %v227_v16, %v86_v21 }
  0x8e   :  { %82 = vst.msk [vmem:[#allocation2 + $0x18] sm:$0xff] %vm25_vm0, %v77_v20  ;;  %v96_v24 = vadd.f32 %v227_v16, %v88_v22  ;;  %v228_v22 = vld [vmem:[%s346_s3] ss:$0 sm:$0xff] }
  0x8f   :  { %v98_v25 = vsel %vm25_vm0, %v94_v23, 0.0 }
  0x90   :  { %v104_v26 = vsel %vm25_vm0, %v96_v24, 0.0  ;;  %99 = vadd.xlane.f32.xlu0 %v98_v25 }
  0x91   :  { %105 = vadd.xlane.f32.xlu1 %v104_v26 }
  0x94   :  { %v87_v27 = vld [vmem:[#allocation2 + $0x8] sm:$0xff] }
  0x95   :  { %v89_v28 = vld [vmem:[#allocation2 + $0x18] sm:$0xff]  ;;  %v95_v29 = vadd.f32 %v227_v16, %v87_v27  ;;  %v229_v27 = vld [vmem:[%s347_s4] ss:$0 sm:$0xff] }
  0x96   :  { %v97_v30 = vadd.f32 %v227_v16, %v89_v28 }
  0x97   :  { %v101_v31 = vsel %vm25_vm0, %v95_v29, 0.0 }
  0x98   :  { %v107_v32 = vsel %vm25_vm0, %v97_v30, 0.0  ;;  %102 = vadd.xlane.f32.xlu0 %v101_v31 }
  0x99   :  { %108 = vadd.xlane.f32.xlu1 %v107_v32 }
 0x103   :  { %v100_v40 = vpop.xlane.xlu0 %99 }
 0x104   :  { %v106_v41 = vpop.xlane.xlu1 %105  ;;  %v117_v42 = vmul.f32 %v116_v39, %v100_v40 }
 0x105   :  { %v119_v43 = vmul.f32 %v116_v39, %v106_v41 }
 0x106   :  { %v121_v44 = vsub.f32 %v94_v23, %v117_v42 }
 0x107   :  { %v302_v45 = vsub.f32 %v96_v24, %v119_v43 }
 0x108   :  { %v125_v46 = vmul.f32 %v121_v44, %v121_v44 }
 0x109   :  { %v127_v47 = vmul.f32 %v302_v45, %v302_v45 }
 0x10a   :  { %v129_v48 = vsel %vm25_vm0, %v125_v46, 0.0 }
 0x10b   :  { %130 = vadd.xlane.f32.xlu2 %v129_v48  ;;  %v135_v49 = vsel %vm25_vm0, %v127_v47, 0.0  ;;  %v103_v50 = vpop.xlane.xlu0 %102 }
 0x10c   :  { %v109_v51 = vpop.xlane.xlu1 %108  ;;  %136 = vadd.xlane.f32.xlu0 %v135_v49  ;;  %v118_v52 = vmul.f32 %v116_v39, %v103_v50 }
 0x10d   :  { %v120_v53 = vmul.f32 %v116_v39, %v109_v51 }
 0x10e   :  { %v308_v54 = vsub.f32 %v95_v29, %v118_v52 }
 0x10f   :  { %v310_v55 = vsub.f32 %v97_v30, %v120_v53 }
 0x110   :  { %v126_v56 = vmul.f32 %v308_v54, %v308_v54 }
 0x111   :  { %v128_v57 = vmul.f32 %v310_v55, %v310_v55 }
 0x112   :  { %v132_v58 = vsel %vm25_vm0, %v126_v56, 0.0 }
 0x113   :  { %v138_v59 = vsel %vm25_vm0, %v128_v57, 0.0  ;;  %133 = vadd.xlane.f32.xlu2 %v132_v58 }
 0x114   :  { %139 = vadd.xlane.f32.xlu1 %v138_v59 }
 0x17e   :  { %v131_v60 = vpop.xlane.xlu2 %130 }
 0x17f   :  { %v141_v61 = vmul.f32 %v131_v60, %v116_v39  ;;  %v137_v62 = vpop.xlane.xlu0 %136 }
 0x180   :  { %v143_v63 = vmul.f32 %v137_v62, %v116_v39 }
 0x181   :  { %v145_v0 = vadd.f32 1e-12, %v141_v61 }
 0x182   :  { %v147_v1 = vadd.f32 1e-12, %v143_v63 }
 0x183   :  { %232 = vrsqrt.f32 %v145_v0  ;;  %vm155_vm5 = vweird.f32 %v145_v0 }
 0x184   :  { %234 = vrsqrt.f32 %v147_v1  ;;  %vm175_vm7 = vweird.f32 %v147_v1 }
 0x186   :  { %v134_v2 = vpop.xlane.xlu2 %133 }
 0x187   :  { %v140_v3 = vpop.xlane.xlu1 %139  ;;  %v142_v4 = vmul.f32 %v134_v2, %v116_v39 }
 0x188   :  { %v144_v5 = vmul.f32 %v140_v3, %v116_v39 }
 0x189   :  { %v233_v6 = vpop.eup %232  ;;  %v146_v7 = vadd.f32 1e-12, %v142_v4 }
 0x18a   :  { %v235_v8 = vpop.eup %234  ;;  %v150_v9 = vmul.f32 %v233_v6, %v145_v0  ;;  %v148_v10 = vadd.f32 1e-12, %v144_v5  ;;  %vm156_vm3 = vweird.f32 %v233_v6 }
 0x18b   :  { %v170_v11 = vmul.f32 %v235_v8, %v147_v1  ;;  %236 = vrsqrt.f32 %v146_v7  ;;  %vm176_vm4 = vweird.f32 %v235_v8  ;;  %vm157_vm6 = vmor %vm155_vm5, %vm156_vm3  ;;  %vm165_vm11 = vweird.f32 %v146_v7 }
 0x18c   :  { %v151_v12 = vmul.f32 %v233_v6, %v150_v9  ;;  %238 = vrsqrt.f32 %v148_v10  ;;  %vm177_vm8 = vmor %vm175_vm7, %vm176_vm4  ;;  %vm185_vm12 = vweird.f32 %v148_v10 }
 0x18d   :  { %v171_v13 = vmul.f32 %v235_v8, %v170_v11 }
 0x18e   :  { %v152_v14 = vmul.f32 0.5, %v151_v12 }
 0x18f   :  { %v172_v15 = vmul.f32 0.5, %v171_v13 }
 0x190   :  { %v153_v16 = vsub.f32 1.5, %v152_v14 }
 0x191   :  { %v237_v17 = vpop.eup %236  ;;  %v173_v18 = vsub.f32 1.5, %v172_v15 }
 0x192   :  { %v239_v19 = vpop.eup %238  ;;  %v154_v20 = vmul.f32 %v233_v6, %v153_v16  ;;  %v160_v21 = vmul.f32 %v237_v17, %v146_v7  ;;  %vm166_vm9 = vweird.f32 %v237_v17 }
 0x193   :  { %v174_v23 = vmul.f32 %v235_v8, %v173_v18  ;;  %v180_v24 = vmul.f32 %v239_v19, %v148_v10  ;;  %vm186_vm10 = vweird.f32 %v239_v19  ;;  %vm167_vm13 = vmor %vm165_vm11, %vm166_vm9 }
 0x194   :  { %v158_v25 = vsel %vm157_vm6, %v233_v6, %v154_v20  ;;  %v161_v26 = vmul.f32 %v237_v17, %v160_v21  ;;  %vm187_vm14 = vmor %vm185_vm12, %vm186_vm10 }
 0x195   :  { %v189_v28 = vmul.f32 %v158_v25, %v121_v44  ;;  %v178_v29 = vsel %vm177_vm8, %v235_v8, %v174_v23  ;;  %v181_v30 = vmul.f32 %v239_v19, %v180_v24 }
 0x196   :  { %v191_v31 = vmul.f32 %v178_v29, %v302_v45  ;;  %v162_v32 = vmul.f32 0.5, %v161_v26 }
 0x197   :  { %v197_v33 = vmul.f32 %v228_v22, %v189_v28  ;;  %v182_v34 = vmul.f32 0.5, %v181_v30 }
 0x198   :  { %v199_v35 = vmul.f32 %v228_v22, %v191_v31  ;;  %v163_v36 = vsub.f32 1.5, %v162_v32 }
 0x199   :  { %v205_v37 = vadd.f32 %v229_v27, %v197_v33  ;;  %v183_v38 = vsub.f32 1.5, %v182_v34 }
 0x19a   :  { %v207_v39 = vadd.f32 %v229_v27, %v199_v35  ;;  %v164_v40 = vmul.f32 %v237_v17, %v163_v36 }
 0x19b   :  { %209 = vst.msk [vmem:[%s348_s5] sm:$0xff] %vm25_vm0, %v205_v37  ;;  %v184_v41 = vmul.f32 %v239_v19, %v183_v38 }
 0x19c   :  { %211 = vst.msk [vmem:[%s348_s5 + $0x10] sm:$0xff] %vm25_vm0, %v207_v39  ;;  %v168_v42 = vsel %vm167_vm13, %v237_v17, %v164_v40 }
 0x19d   :  { %v188_v43 = vsel %vm187_vm14, %v239_v19, %v184_v41  ;;  %v190_v44 = vmul.f32 %v168_v42, %v308_v54 }
 0x19e   :  { %v192_v45 = vmul.f32 %v188_v43, %v310_v55 }
 0x19f   :  { %v198_v46 = vmul.f32 %v228_v22, %v190_v44 }
 0x1a0   :  { %v200_v47 = vmul.f32 %v228_v22, %v192_v45 }
 0x1a1   :  { %v206_v48 = vadd.f32 %v229_v27, %v198_v46 }
 0x1a2   :  { %v208_v49 = vadd.f32 %v229_v27, %v200_v47 }
 0x1a3   :  { %210 = vst.msk [vmem:[%s348_s5 + $0x8] sm:$0xff] %vm25_vm0, %v206_v48 }
 0x1a4   :  { %212 = vst.msk [vmem:[%s348_s5 + $0x18] sm:$0xff] %vm25_vm0, %v208_v49 }

// kernel: roformer_backbone_forward.14
= control target key start
LH: loop header
LB: loop body
LE: loop exit
PB: predicated region body
PF: predicated region fallthrough
CT: control target
= control target key end

     0   :  { %vm28_vm0 = vcmask 261120   ;;  %v264_v1 = vmov 0.0   ;;  %v265_v42 = vmov 32.0   ;;  %s389_s1 = inlined_call_operand.vmem [shape: bf16[32,32], index: 1, kind: input, shape index: {}]   ;;  %s390_s0 = inlined_call_operand.vmem [shape: f32[32,32], index: 0, kind: input, shape index: {}]   ;;  %s391_s2 = inlined_call_operand.vmem [shape: f32[1,32], index: 2, kind: input, shape index: {}, may-alias: {2,5}]   ;;  %s392_s3 = inlined_call_operand.vmem [shape: f32[32,32], index: 3, kind: input, shape index: {}]   ;;  %s393_s4 = inlined_call_operand.vmem [shape: f32[1,32], index: 4, kind: input, shape index: {}]   ;;  %s394_s5 = inlined_call_operand.vmem [shape: f32[1,32], index: 5, kind: input, shape index: {}, may-alias: {2,5}]   ;;  %s395_s6 = inlined_call_operand.vmem [shape: f32[32,32], index: 6, kind: output, shape index: {}]  }
   0x1   :  { %v246_v0 = vld [vmem:[%s389_s1 + $0x8] sm:$0xff]  ;;  %29 = vst.msk [vmem:[#allocation2] sm:$0xff] %vm28_vm0, %v264_v1  ;;  %v245_v2 = vld [vmem:[%s389_s1] sm:$0xff]  ;;  %v39_v5 = vld [vmem:[%s390_s0 + $0x10] sm:$0xff]  ;;  %254 = vrcp.f32 %v265_v42 }
   0x2   :  { %v37_v3 = vld [vmem:[%s390_s0] sm:$0xff]  ;;  %30 = vst.msk [vmem:[#allocation2 + $0x8] sm:$0xff] %vm28_vm0, %v264_v1  ;;  %72 = vmatpush.bf16.msra.mxu0 %v246_v0  ;;  %247 = vmatpush.bf16.msra.mxu1 %v246_v0  ;;  %v38_v4 = vld [vmem:[%s390_s0 + $0x8] sm:$0xff]  ;;  %v40_v6 = vld [vmem:[%s390_s0 + $0x18] sm:$0xff] }
   0x3   :  { %31 = vst.msk [vmem:[#allocation2 + $0x10] sm:$0xff] %vm28_vm0, %v264_v1  ;;  %v41_v7 = vpack.c.bf16 %v38_v4, %v37_v3  ;;  %v42_v8 = vpack.c.bf16 %v40_v6, %v39_v5  ;;  %v251_v17 = vld [vmem:[%s391_s2] ss:$0 sm:$0xff]  ;;  %v110_v25 = vld [vmem:[%s392_s3 + $0x10] sm:$0xff]  ;;  %v109_v33 = vld [vmem:[%s392_s3 + $0x8] sm:$0xff] }
   0x4   :  { %32 = vst.msk [vmem:[#allocation2 + $0x18] sm:$0xff] %vm28_vm0, %v264_v1  ;;  %v108_v23 = vld [vmem:[%s392_s3] sm:$0xff]  ;;  %v111_v35 = vld [vmem:[%s392_s3 + $0x18] sm:$0xff] }
   0x6   :  { %73 = vmatpush.bf16.msra.mxu0 %v245_v2  ;;  %248 = vmatpush.bf16.msra.mxu1 %v245_v2 }
   0x7   :  { %v255_v43 = vpop.eup %254 }
   0x8   :  { %v33_v9 = vld [vmem:[#allocation2] sm:$0xff]  ;;  %v129_v44 = vmul.f32 32.0, %v255_v43  ;;  %vm133_vm1 = vweird.f32 %v255_v43 }
   0x9   :  { %243 = vmatmul.msk.bf16.vlgmr.msra.gmra.mxu0 %vm28_vm0, %v41_v7  ;;  %244 = vmatmul.msk.bf16.vlgmr.msra.gmra.mxu1 %vm28_vm0, %v42_v8  ;;  %v34_v15 = vld [vmem:[#allocation2 + $0x8] sm:$0xff] }
   0xa   :  { %v35_v10 = vld [vmem:[#allocation2 + $0x10] sm:$0xff]  ;;  %v130_v45 = vsub.f32 1.0, %v129_v44 }
   0xb   :  { %v36_v16 = vld [vmem:[#allocation2 + $0x18] sm:$0xff] }
   0xc   :  { %v131_v46 = vmul.f32 %v255_v43, %v130_v45 }
   0xe   :  { %v132_v47 = vadd.f32 %v255_v43, %v131_v46 }
  0x10   :  { %v134_v48 = vsel %vm133_vm1, %v255_v43, %v132_v47 }
  0x86   :  { %v75_v11 = vpop.f32.mrf.mxu0  ;;  %v80_v12 = vpop.f32.mrf.mxu1 }
  0x87   :  { %v85_v13 = vadd.f32 %v75_v11, %v33_v9  ;;  %v87_v14 = vadd.f32 %v80_v12, %v35_v10 }
  0x89   :  { %89 = vst.msk [vmem:[#allocation2] sm:$0xff] %vm28_vm0, %v85_v13 }
  0x8a   :  { %91 = vst.msk [vmem:[#allocation2 + $0x10] sm:$0xff] %vm28_vm0, %v87_v14 }
  0x8e   :  { %v77_v18 = vpop.f32.mrf.mxu0  ;;  %v82_v19 = vpop.f32.mrf.mxu1 }
  0x8f   :  { %v86_v20 = vadd.f32 %v77_v18, %v34_v15  ;;  %v88_v21 = vadd.f32 %v82_v19, %v36_v16 }
  0x90   :  { %v96_v22 = vld [vmem:[#allocation2] sm:$0xff] }
  0x91   :  { %90 = vst.msk [vmem:[#allocation2 + $0x8] sm:$0xff] %vm28_vm0, %v86_v20  ;;  %v98_v24 = vld [vmem:[#allocation2 + $0x10] sm:$0xff]  ;;  %v104_v26 = vadd.f32 %v251_v17, %v96_v22 }
  0x92   :  { %92 = vst.msk [vmem:[#allocation2 + $0x18] sm:$0xff] %vm28_vm0, %v88_v21  ;;  %v106_v27 = vadd.f32 %v251_v17, %v98_v24 }
  0x93   :  { %v112_v28 = vadd.f32 %v108_v23, %v104_v26 }
  0x94   :  { %v114_v29 = vadd.f32 %v110_v25, %v106_v27 }
  0x95   :  { %v116_v30 = vsel %vm28_vm0, %v112_v28, 0.0 }
  0x96   :  { %v122_v31 = vsel %vm28_vm0, %v114_v29, 0.0  ;;  %117 = vadd.xlane.f32.xlu0 %v116_v30 }
  0x97   :  { %123 = vadd.xlane.f32.xlu1 %v122_v31  ;;  %v252_v31 = vld [vmem:[%s393_s4] ss:$0 sm:$0xff] }
  0x98   :  { %v97_v32 = vld [vmem:[#allocation2 + $0x8] sm:$0xff] }
  0x99   :  { %v99_v34 = vld [vmem:[#allocation2 + $0x18] sm:$0xff]  ;;  %v105_v36 = vadd.f32 %v251_v17, %v97_v32 }
  0x9a   :  { %v107_v37 = vadd.f32 %v251_v17, %v99_v34 }
  0x9b   :  { %v113_v38 = vadd.f32 %v109_v33, %v105_v36  ;;  %v253_v36 = vld [vmem:[%s394_s5] ss:$0 sm:$0xff] }
  0x9c   :  { %v115_v39 = vadd.f32 %v111_v35, %v107_v37 }
  0x9d   :  { %v119_v40 = vsel %vm28_vm0, %v113_v38, 0.0 }
  0x9e   :  { %v125_v41 = vsel %vm28_vm0, %v115_v39, 0.0  ;;  %120 = vadd.xlane.f32.xlu0 %v119_v40 }
  0x9f   :  { %126 = vadd.xlane.f32.xlu1 %v125_v41 }
 0x109   :  { %v118_v49 = vpop.xlane.xlu0 %117 }
 0x10a   :  { %v124_v50 = vpop.xlane.xlu1 %123  ;;  %v135_v51 = vmul.f32 %v134_v48, %v118_v49 }
 0x10b   :  { %v137_v52 = vmul.f32 %v134_v48, %v124_v50 }
 0x10c   :  { %v139_v53 = vsub.f32 %v112_v28, %v135_v51 }
 0x10d   :  { %v348_v54 = vsub.f32 %v114_v29, %v137_v52 }
 0x10e   :  { %v143_v55 = vmul.f32 %v139_v53, %v139_v53 }
 0x10f   :  { %v145_v56 = vmul.f32 %v348_v54, %v348_v54 }
 0x110   :  { %v147_v57 = vsel %vm28_vm0, %v143_v55, 0.0 }
 0x111   :  { %148 = vadd.xlane.f32.xlu2 %v147_v57  ;;  %v153_v58 = vsel %vm28_vm0, %v145_v56, 0.0  ;;  %v121_v59 = vpop.xlane.xlu0 %120 }
 0x112   :  { %v127_v60 = vpop.xlane.xlu1 %126  ;;  %154 = vadd.xlane.f32.xlu0 %v153_v58  ;;  %v136_v61 = vmul.f32 %v134_v48, %v121_v59 }
 0x113   :  { %v138_v62 = vmul.f32 %v134_v48, %v127_v60 }
 0x114   :  { %v354_v63 = vsub.f32 %v113_v38, %v136_v61 }
 0x115   :  { %v356_v0 = vsub.f32 %v115_v39, %v138_v62 }
 0x116   :  { %v144_v1 = vmul.f32 %v354_v63, %v354_v63 }
 0x117   :  { %v146_v2 = vmul.f32 %v356_v0, %v356_v0 }
 0x118   :  { %v150_v3 = vsel %vm28_vm0, %v144_v1, 0.0 }
 0x119   :  { %v156_v4 = vsel %vm28_vm0, %v146_v2, 0.0  ;;  %151 = vadd.xlane.f32.xlu2 %v150_v3 }
 0x11a   :  { %157 = vadd.xlane.f32.xlu1 %v156_v4 }
 0x184   :  { %v149_v5 = vpop.xlane.xlu2 %148 }
 0x185   :  { %v159_v6 = vmul.f32 %v149_v5, %v134_v48  ;;  %v155_v7 = vpop.xlane.xlu0 %154 }
 0x186   :  { %v161_v8 = vmul.f32 %v155_v7, %v134_v48 }
 0x187   :  { %v163_v9 = vadd.f32 1e-12, %v159_v6 }
 0x188   :  { %v165_v10 = vadd.f32 1e-12, %v161_v8 }
 0x189   :  { %256 = vrsqrt.f32 %v163_v9  ;;  %vm173_vm4 = vweird.f32 %v163_v9 }
 0x18a   :  { %258 = vrsqrt.f32 %v165_v10  ;;  %vm193_vm6 = vweird.f32 %v165_v10 }
 0x18c   :  { %v152_v11 = vpop.xlane.xlu2 %151 }
 0x18d   :  { %v158_v12 = vpop.xlane.xlu1 %157  ;;  %v160_v13 = vmul.f32 %v152_v11, %v134_v48 }
 0x18e   :  { %v162_v14 = vmul.f32 %v158_v12, %v134_v48 }
 0x18f   :  { %v257_v15 = vpop.eup %256  ;;  %v164_v16 = vadd.f32 1e-12, %v160_v13 }
 0x190   :  { %v259_v17 = vpop.eup %258  ;;  %v168_v18 = vmul.f32 %v257_v15, %v163_v9  ;;  %v166_v19 = vadd.f32 1e-12, %v162_v14  ;;  %vm174_vm2 = vweird.f32 %v257_v15 }
 0x191   :  { %v188_v20 = vmul.f32 %v259_v17, %v165_v10  ;;  %260 = vrsqrt.f32 %v164_v16  ;;  %vm194_vm3 = vweird.f32 %v259_v17  ;;  %vm175_vm5 = vmor %vm173_vm4, %vm174_vm2  ;;  %vm183_vm10 = vweird.f32 %v164_v16 }
 0x192   :  { %v169_v21 = vmul.f32 %v257_v15, %v168_v18  ;;  %262 = vrsqrt.f32 %v166_v19  ;;  %vm195_vm7 = vmor %vm193_vm6, %vm194_vm3  ;;  %vm203_vm11 = vweird.f32 %v166_v19 }
 0x193   :  { %v189_v22 = vmul.f32 %v259_v17, %v188_v20 }
 0x194   :  { %v170_v23 = vmul.f32 0.5, %v169_v21 }
 0x195   :  { %v190_v24 = vmul.f32 0.5, %v189_v22 }
 0x196   :  { %v171_v25 = vsub.f32 1.5, %v170_v23 }
 0x197   :  { %v261_v26 = vpop.eup %260  ;;  %v191_v27 = vsub.f32 1.5, %v190_v24 }
 0x198   :  { %v263_v28 = vpop.eup %262  ;;  %v172_v29 = vmul.f32 %v257_v15, %v171_v25  ;;  %v178_v30 = vmul.f32 %v261_v26, %v164_v16  ;;  %vm184_vm8 = vweird.f32 %v261_v26 }
 0x199   :  { %v192_v32 = vmul.f32 %v259_v17, %v191_v27  ;;  %v198_v33 = vmul.f32 %v263_v28, %v166_v19  ;;  %vm204_vm9 = vweird.f32 %v263_v28  ;;  %vm185_vm12 = vmor %vm183_vm10, %vm184_vm8 }
 0x19a   :  { %v176_v34 = vsel %vm175_vm5, %v257_v15, %v172_v29  ;;  %v179_v35 = vmul.f32 %v261_v26, %v178_v30  ;;  %vm205_vm13 = vmor %vm203_vm11, %vm204_vm9 }
 0x19b   :  { %v207_v37 = vmul.f32 %v176_v34, %v139_v53  ;;  %v196_v38 = vsel %vm195_vm7, %v259_v17, %v192_v32  ;;  %v199_v39 = vmul.f32 %v263_v28, %v198_v33 }
 0x19c   :  { %v209_v40 = vmul.f32 %v196_v38, %v348_v54  ;;  %v180_v41 = vmul.f32 0.5, %v179_v35 }
 0x19d   :  { %v215_v42 = vmul.f32 %v252_v31, %v207_v37  ;;  %v200_v43 = vmul.f32 0.5, %v199_v39 }
 0x19e   :  { %v217_v44 = vmul.f32 %v252_v31, %v209_v40  ;;  %v181_v45 = vsub.f32 1.5, %v180_v41 }
 0x19f   :  { %v223_v46 = vadd.f32 %v253_v36, %v215_v42  ;;  %v201_v47 = vsub.f32 1.5, %v200_v43 }
 0x1a0   :  { %v225_v48 = vadd.f32 %v253_v36, %v217_v44  ;;  %v182_v49 = vmul.f32 %v261_v26, %v181_v45 }
 0x1a1   :  { %227 = vst.msk [vmem:[%s395_s6] sm:$0xff] %vm28_vm0, %v223_v46  ;;  %v202_v50 = vmul.f32 %v263_v28, %v201_v47 }
 0x1a2   :  { %229 = vst.msk [vmem:[%s395_s6 + $0x10] sm:$0xff] %vm28_vm0, %v225_v48  ;;  %v186_v51 = vsel %vm185_vm12, %v261_v26, %v182_v49 }
 0x1a3   :  { %v206_v52 = vsel %vm205_vm13, %v263_v28, %v202_v50  ;;  %v208_v53 = vmul.f32 %v186_v51, %v354_v63 }
 0x1a4   :  { %v210_v54 = vmul.f32 %v206_v52, %v356_v0 }
 0x1a5   :  { %v216_v55 = vmul.f32 %v252_v31, %v208_v53 }
 0x1a6   :  { %v218_v56 = vmul.f32 %v252_v31, %v210_v54 }
 0x1a7   :  { %v224_v57 = vadd.f32 %v253_v36, %v216_v55 }
 0x1a8   :  { %v226_v58 = vadd.f32 %v253_v36, %v218_v56 }
 0x1a9   :  { %228 = vst.msk [vmem:[%s395_s6 + $0x8] sm:$0xff] %vm28_vm0, %v224_v57 }
 0x1aa   :  { %230 = vst.msk [vmem:[%s395_s6 + $0x18] sm:$0xff] %vm28_vm0, %v226_v58 }

// kernel: roformer_backbone_forward.13
= control target key start
LH: loop header
LB: loop body
LE: loop exit
PB: predicated region body
PF: predicated region fallthrough
CT: control target
= control target key end

     0   :  { %s829_s15 = smov 0   ;;  %s1019_s0 = inlined_call_operand.vmem [shape: f32[32,96], index: 0, kind: input, shape index: {}]   ;;  %s1020_s1 = inlined_call_operand.vmem [shape: f32[16,8], index: 1, kind: input, shape index: {}]   ;;  %s1021_s2 = inlined_call_operand.vmem [shape: f32[16,8], index: 2, kind: input, shape index: {}]   ;;  %s1022_s3 = inlined_call_operand.vmem [shape: f32[2,1,16], index: 3, kind: input, shape index: {}]   ;;  %s1023_s4 = inlined_call_operand.vmem [shape: f32[32,32], index: 4, kind: output, shape index: {}]  }
   0x1 LB: > { %s835_s16 = sadd.s32 4294967295, %s790_s15   ;;  %p706_p0 = scmp.ge.s32.totalorder %s790_s15, 1  ;;  %s790_s15 = sphi %s829_s15, %s14_s15  }
   0x2   : > { %p171_p1 = scmp.lt.s32.totalorder %s790_s15, 3 }
   0x4   : > { %p172_p2 = pnand %p706_p0, %p171_p1 }
   0x5   : > { %s792_s19 = smov (!%p172_p2), 48   ;;  %s793_s20 = smov (!%p172_p2), 56  }
   0x6   : > { %175 = sbr.rel (%p172_p2) target bundleno = 953 (0x3b9), region = 36  ;;  %s794_s21 = smov (!%p172_p2), 24  }
   0x7   : > { %s795_s26 = smov (!%p172_p2), 16   ;;  %s796_s29 = smov (!%p172_p2), 40  }
   0x8   : > { %s707_s30 = sshll.u32 (!%p172_p2), %s835_s16, 1  ;;  %s797_s9 = smov (!%p172_p2), 120  }
   0x9   : > { %p201_p3 = scmp.lt.s32.totalorder (!%p172_p2), %s707_s30, 3  ;;  %s798_s10 = smov (!%p172_p2), 8  }
   0xa   : > { %s799_s11 = smov (!%p172_p2), 32   ;;  %s800_s12 = smov (!%p172_p2), 80  }
   0xb   : > { %v842_v0 = vld [vmem:[%s1020_s1] sm:$0xff]  ;;  %v851_v1 = vld [vmem:[%s1020_s1 + $0x8] sm:$0xff]  ;;  %s1025_s30 = smov (!%p201_p3, %s707_s30), 3  ;;  %s801_s13 = smov 112   ;;  %vm267_vm0 = vcmask 64512   ;;  %vm342_vm1 = vcmask 130048  }
   0xc   : > { %519 = vrot.lane.b32.xlu1 %v842_v0, %s792_s19  ;;  %493 = vrot.lane.b32.xlu0 %v842_v0, %s793_s20  ;;  %v860_v2 = vld [vmem:[%s1021_s2] sm:$0xff]  ;;  %v871_v3 = vld [vmem:[%s1021_s2 + $0x8] sm:$0xff]  ;;  %s708_s5 = sshll.u32 %s1025_s30, 3  ;;  %s802_s14 = smov 96   ;;  %vm634_vm2 = vcmask 261120  }
   0xd   : > { %423 = vrot.lane.b32.xlu2 %v842_v0, %s794_s21  ;;  %s204_s8 = scalar_lea.vmem %s1019_s0, %s708_s5  ;;  %p206_p4 = scmp.lt.s32.totalorder %s835_s16, 1 }
   0xe   : > { %v894_v4 = vld [vmem:[%s204_s8] sm:$0xff]  ;;  %v900_v10 = vld [vmem:[%s204_s8 + $0x8] sm:$0xff]  ;;  %s213_s22 = scalar_lea.vmem %s1023_s4, %s708_s5 }
   0xf   : > { %s1027_s16 = smov (!%p206_p4, %s835_s16), 1 }
  0x14   : > { %521 = vrot.lane.b32.xlu1 %v851_v1, %s792_s19  ;;  %495 = vrot.lane.b32.xlu0 %v851_v1, %s793_s20 }
  0x15   : > { %425 = vrot.lane.b32.xlu2 %v851_v1, %s794_s21 }
  0x1c   : > { %449 = vrot.lane.b32.xlu0 %v842_v0, %s795_s26  ;;  %451 = vrot.lane.b32.xlu1 %v851_v1, %s795_s26 }
  0x1d   : > { %485 = vrot.lane.b32.xlu2 %v860_v2, %s792_s19 }
  0x24   : > { %487 = vrot.lane.b32.xlu0 %v871_v3, %s792_s19  ;;  %511 = vrot.lane.b32.xlu1 %v860_v2, %s793_s20 }
  0x25   : > { %513 = vrot.lane.b32.xlu2 %v871_v3, %s793_s20  ;;  %s208_s20 = scalar_lea.vmem %s1022_s3, %s1027_s16  ;;  %s803_s16 = smov 64  }
  0x2c   : > { %441 = vrot.lane.b32.xlu0 %v860_v2, %s794_s21  ;;  %415 = vrot.lane.b32.xlu1 %v860_v2, %s795_s26 }
  0x2d   : > { %417 = vrot.lane.b32.xlu2 %v871_v3, %s795_s26 }
  0x34   : > { %278 = vrot.lane.b32.xlu0 %v842_v0, %s796_s29  ;;  %443 = vrot.lane.b32.xlu1 %v871_v3, %s794_s21 }
  0x67   : > { %v424_v9 = vpop.permute.xlu2 %423 }
  0x68   : > { %v429_v11 = vmul.f32 %v424_v9, %v894_v4 }
  0x6f   : > { %v426_v16 = vpop.permute.xlu2 %425 }
  0x70   : > { %v430_v17 = vmul.f32 %v426_v16, %v900_v10 }
  0x77   : > { %v486_v24 = vpop.permute.xlu2 %485 }
  0x78   : > { %v491_v38 = vmul.f32 %v486_v24, %v894_v4 }
  0x7e   : > { %v520_v5 = vpop.permute.xlu1 %519  ;;  %v494_v6 = vpop.permute.xlu0 %493 }
  0x7f   : > { %v525_v7 = vmul.f32 %v520_v5, %v894_v4  ;;  %v499_v8 = vmul.f32 %v494_v6, %v894_v4  ;;  %v514_v27 = vpop.permute.xlu2 %513 }
  0x80   : > { %v518_v39 = vmul.f32 %v514_v27, %v900_v10  ;;  %v255_v27 = vmul.f32 %v842_v0, %v894_v4 }
  0x81   : > { %503 = vrot.lane.b32.xlu0 %v499_v8, %s797_s9  ;;  %529 = vrot.lane.b32.xlu2 %v525_v7, %s798_s10 }
  0x86   : > { %v522_v12 = vpop.permute.xlu1 %521  ;;  %v496_v13 = vpop.permute.xlu0 %495 }
  0x87   : > { %v526_v14 = vmul.f32 %v522_v12, %v900_v10  ;;  %v500_v15 = vmul.f32 %v496_v13, %v900_v10  ;;  %v418_v28 = vpop.permute.xlu2 %417 }
  0x88   : > { %v422_v61 = vmul.f32 %v418_v28, %v900_v10 }
  0x89   : > { %505 = vrot.lane.b32.xlu1 %v500_v15, %s797_s9  ;;  %531 = vrot.lane.b32.xlu0 %v526_v14, %s798_s10 }
  0x8a   : > { %433 = vrot.lane.b32.xlu2 %v429_v11, %s797_s9 }
  0x8e   : > { %v450_v18 = vpop.permute.xlu0 %449  ;;  %v452_v19 = vpop.permute.xlu1 %451 }
  0x8f   : > { %v455_v20 = vmul.f32 %v450_v18, %v894_v4  ;;  %v456_v21 = vmul.f32 %v452_v19, %v900_v10 }
  0x91   : > { %435 = vrot.lane.b32.xlu0 %v430_v17, %s797_s9  ;;  %459 = vrot.lane.b32.xlu1 %v455_v20, %s798_s10 }
  0x92   : > { %461 = vrot.lane.b32.xlu2 %v456_v21, %s798_s10 }
  0x96   : > { %v488_v22 = vpop.permute.xlu0 %487  ;;  %v512_v30 = vpop.permute.xlu1 %511 }
  0x97   : > { %v517_v40 = vmul.f32 %v512_v30, %v894_v4  ;;  %v492_v41 = vmul.f32 %v488_v22, %v900_v10 }
  0x99   : > { %280 = vrot.lane.b32.xlu1 %v851_v1, %s796_s29  ;;  %306 = vrot.lane.b32.xlu0 %v851_v1, %s799_s11 }
  0x9a   : > { %304 = vrot.lane.b32.xlu2 %v842_v0, %s799_s11 }
  0x9e   : > { %v442_v23 = vpop.permute.xlu0 %441  ;;  %v416_v32 = vpop.permute.xlu1 %415 }
  0x9f   : > { %v447_v51 = vmul.f32 %v442_v23, %v894_v4  ;;  %v421_v62 = vmul.f32 %v416_v32, %v894_v4 }
  0xa1   : > { %270 = vrot.lane.b32.xlu0 %v860_v2, %s799_s11  ;;  %272 = vrot.lane.b32.xlu1 %v871_v3, %s799_s11 }
  0xa2   : > { %296 = vrot.lane.b32.xlu2 %v860_v2, %s796_s29 }
  0xa6   : > { %v279_v25 = vpop.permute.xlu0 %278  ;;  %v444_v34 = vpop.permute.xlu1 %443 }
  0xa7   : > { %v284_v26 = vmul.f32 %v279_v25, %v894_v4  ;;  %v448_v50 = vmul.f32 %v444_v34, %v900_v10 }
  0xa9   : > { %298 = vrot.lane.b32.xlu0 %v871_v3, %s796_s29 }
  0xb1   : > { %288 = vrot.lane.b32.xlu0 %v284_v26, %s797_s9 }
  0xdb   : > { %v530_v29 = vpop.permute.xlu2 %529 }
  0xdc   : > { %v535_v44 = vadd.f32 %v530_v29, %v517_v40 }
  0xe4   : > { %v434_v31 = vpop.permute.xlu2 %433 }
  0xe5   : > { %v439_v5 = vsub.f32 %v421_v62, %v434_v31 }
  0xec   : > { %v462_v33 = vpop.permute.xlu2 %461 }
  0xed   : > { %v466_v54 = vadd.f32 %v462_v33, %v448_v50 }
  0xf3   : > { %v504_v35 = vpop.permute.xlu0 %503 }
  0xf4   : > { %v305_v36 = vpop.permute.xlu2 %304  ;;  %v509_v45 = vsub.f32 %v491_v38, %v504_v35 }
  0xf5   : > { %v310_v37 = vmul.f32 %v305_v36, %v894_v4 }
  0xf7   : > { %314 = vrot.lane.b32.xlu2 %v310_v37, %s798_s10 }
  0xfb   : > { %v506_v42 = vpop.permute.xlu1 %505  ;;  %v532_v43 = vpop.permute.xlu0 %531 }
  0xfc   : > { %v510_v46 = vsub.f32 %v492_v41, %v506_v42  ;;  %v536_v47 = vadd.f32 %v532_v43, %v518_v39  ;;  %v297_v7 = vpop.permute.xlu2 %296 }
  0xfd   : > { %v302_v42 = vmul.f32 %v297_v7, %v894_v4 }
  0xfe   : > { %v737_v48 = vpack.i.bf16 %v510_v46, %v509_v45  ;;  %v742_v49 = vpack.i.bf16 %v536_v47, %v535_v44 }
 0x100   : > { %743 = vrot.lane.b32.xlu2 %v742_v49, %s800_s12  ;;  %v256_v49 = vmul.f32 %v851_v1, %v900_v10 }
 0x103   : > { %v436_v52 = vpop.permute.xlu0 %435  ;;  %v460_v53 = vpop.permute.xlu1 %459 }
 0x104   : > { %v465_v55 = vadd.f32 %v460_v53, %v447_v51  ;;  %v440_v63 = vsub.f32 %v422_v61, %v436_v52  ;;  %v980_v51 = vpack.c.bf16 %v900_v10, %v894_v4 }
 0x106   : > { %v752_v56 = vpack.i.bf16 %v466_v54, %v465_v55  ;;  %v747_v6 = vpack.i.bf16 %v440_v63, %v439_v5  ;;  %v224_v63 = vmul.f32 %v871_v3, %v900_v10 }
 0x108   : > { %753 = vrot.lane.b32.xlu2 %v752_v56, %s801_s13 }
 0x10b   : > { %v281_v57 = vpop.permute.xlu1 %280  ;;  %v307_v58 = vpop.permute.xlu0 %306 }
 0x10c   : > { %v285_v59 = vmul.f32 %v281_v57, %v900_v10  ;;  %v311_v60 = vmul.f32 %v307_v58, %v900_v10 }
 0x10e   : > { %290 = vrot.lane.b32.xlu1 %v285_v59, %s797_s9  ;;  %316 = vrot.lane.b32.xlu0 %v311_v60, %s798_s10  ;;  %v223_v60 = vmul.f32 %v860_v2, %v894_v4 }
 0x110   : > { %229 = vrot.lane.b32.xlu2 %v851_v1, %s798_s10 }
 0x113   : > { %v271_v8 = vpop.permute.xlu0 %270  ;;  %v273_v12 = vpop.permute.xlu1 %272 }
 0x114   : > { %v276_v14 = vmul.f32 %v271_v8, %v894_v4  ;;  %v277_v16 = vmul.f32 %v273_v12, %v900_v10 }
 0x116   : > { %738 = vrot.lane.b32.xlu1 %v737_v48, %s800_s12  ;;  %249 = vrot.lane.b32.xlu0 %v871_v3, %s798_s10 }
 0x118   : > { %247 = vrot.lane.b32.xlu2 %v860_v2, %s798_s10 }
 0x11b   : > { %v299_v11 = vpop.permute.xlu0 %298 }
 0x11c   : > { %v303_v43 = vmul.f32 %v299_v11, %v900_v10 }
 0x11e   : > { %748 = vrot.lane.b32.xlu1 %v747_v6, %s801_s13  ;;  %v767_v6 = vld [vmem:[%s208_s20] ss:$0 sm:$0xff] }
 0x123   : > { %v289_v15 = vpop.permute.xlu0 %288 }
 0x124   : > { %v294_v18 = vsub.f32 %v276_v14, %v289_v15 }
 0x126   : > { %227 = vrot.lane.b32.xlu1 %v842_v0, %s798_s10 }
 0x151   : > { %v315_v9 = vpop.permute.xlu2 %314 }
 0x152   : > { %v320_v46 = vadd.f32 %v315_v9, %v302_v42 }
 0x15a   : > { %v744_v13 = vpop.permute.xlu2 %743 }
 0x15b   : > { %v746_v22 = vunpack.i.h.bf16 %v744_v13  ;;  %v745_v24 = vunpack.i.l.bf16 %v744_v13 }
 0x162   : > { %v754_v20 = vpop.permute.xlu2 %753 }
 0x163   : > { %v756_v0 = vunpack.i.h.bf16 %v754_v20  ;;  %v755_v35 = vunpack.i.l.bf16 %v754_v20 }
 0x16a   : > { %v230_v30 = vpop.permute.xlu2 %229 }
 0x16b   : > { %v234_v32 = vmul.f32 %v230_v30, %v900_v10 }
 0x16d   : > { %239 = vrot.lane.b32.xlu2 %v234_v32, %s797_s9 }
 0x172   : > { %v248_v53 = vpop.permute.xlu2 %247 }
 0x173   : > { %v253_v1 = vmul.f32 %v248_v53, %v894_v4 }
 0x180   : > { %v291_v17 = vpop.permute.xlu1 %290  ;;  %v317_v45 = vpop.permute.xlu0 %316 }
 0x181   : > { %v295_v19 = vsub.f32 %v277_v16, %v291_v17  ;;  %v321_v47 = vadd.f32 %v317_v45, %v303_v43 }
 0x183   : > { %v757_v21 = vpack.i.bf16 %v295_v19, %v294_v18  ;;  %v762_v48 = vpack.i.bf16 %v321_v47, %v320_v46 }
 0x185   : > { %758 = vrot.lane.b32.xlu0 %v757_v21, %s802_s14 }
 0x188   : > { %v739_v23 = vpop.permute.xlu1 %738  ;;  %v250_v50 = vpop.permute.xlu0 %249 }
 0x189   : > { %v741_v25 = vunpack.i.h.bf16 %v739_v23  ;;  %v740_v26 = vunpack.i.l.bf16 %v739_v23  ;;  %v254_v12 = vmul.f32 %v250_v50, %v900_v10 }
 0x18b   : > { %v553_v28 = vsel %vm267_vm0, %v740_v26, %v745_v24  ;;  %v554_v29 = vsel %vm267_vm0, %v741_v25, %v746_v22 }
 0x18c   : > { %v556_v31 = vpack.c.bf16 %v554_v29, %v553_v28 }
 0x18d   : > { %259 = vrot.lane.b32.xlu0 %v255_v27, %s798_s10 }
 0x18e   : > { %v561_v33 = vsel %vm342_vm1, %v556_v31, 0 }
 0x18f   : > { %570 = vmatpush.bf16.xpose.msra.mxu2 %v561_v33 }
 0x190   : > { %v749_v34 = vpop.permute.xlu1 %748 }
 0x191   : > { %v751_v36 = vunpack.i.h.bf16 %v749_v34  ;;  %v750_v37 = vunpack.i.l.bf16 %v749_v34 }
 0x193   : > { %v483_v38 = vsel %vm267_vm0, %v750_v37, %v755_v35  ;;  %v484_v39 = vsel %vm267_vm0, %v751_v36, %v756_v0 }
 0x194   : > { %v555_v40 = vpack.c.bf16 %v484_v39, %v483_v38 }
 0x196   : > { %713 = vmatmul.msk.bf16.vlgmr.msra.gmra.mxu2 %vm342_vm1, %v555_v40 }
 0x198   : > { %v228_v41 = vpop.permute.xlu1 %227 }
 0x199   : > { %v233_v44 = vmul.f32 %v228_v41, %v894_v4 }
 0x19b   : > { %237 = vrot.lane.b32.xlu1 %v233_v44, %s797_s9 }
 0x1a3   : > { %763 = vrot.lane.b32.xlu1 %v762_v48, %s802_s14 }
 0x1ab   : > { %261 = vrot.lane.b32.xlu1 %v256_v49, %s798_s10 }
 0x1b3   : > { %600 = vrot.lane.b32.xlu1 %v980_v51, %s792_s19 }
 0x1c7   : > { %v240_v5 = vpop.permute.xlu2 %239 }
 0x1c8   : > { %v244_v2 = vsub.f32 %v224_v63, %v240_v5 }
 0x1f7   : > { %v759_v54 = vpop.permute.xlu0 %758 }
 0x1f8   : > { %v761_v56 = vunpack.i.h.bf16 %v759_v54  ;;  %v760_v57 = vunpack.i.l.bf16 %v759_v54 }
 0x1ff   : > { %v260_v7 = vpop.permute.xlu0 %259 }
 0x200   : > { %v265_v15 = vadd.f32 %v260_v7, %v253_v1 }
 0x20d   : > { %v238_v52 = vpop.permute.xlu1 %237 }
 0x20e   : > { %v243_v14 = vsub.f32 %v223_v60, %v238_v52 }
 0x210   : > { %v268_v3 = vsel %vm267_vm0, %v243_v14, %v265_v15 }
 0x215   : > { %v764_v55 = vpop.permute.xlu1 %763 }
 0x216   : > { %v766_v58 = vunpack.i.h.bf16 %v764_v55  ;;  %v765_v59 = vunpack.i.l.bf16 %v764_v55 }
 0x218   : > { %v338_v61 = vsel %vm267_vm0, %v760_v57, %v765_v59  ;;  %v339_v62 = vsel %vm267_vm0, %v761_v56, %v766_v58 }
 0x219   : > { %v572_v8 = vpop.f32.mrf.mxu2  ;;  %v341_v9 = vpack.c.bf16 %v339_v62, %v338_v61 }
 0x21a   : > { %v577_v11 = vmul.f32 0.25, %v572_v8 }
 0x21b   : > { %v347_v13 = vsel %vm342_vm1, %v341_v9, 0 }
 0x21c   : > { %356 = vmatpush.bf16.xpose.msra.mxu0 %v347_v13  ;;  %v579_v4 = vadd.f32 %v767_v6, %v577_v11 }
 0x21d   : > { %v262_v16 = vpop.permute.xlu1 %261 }
 0x21e   : > { %v266_v17 = vadd.f32 %v262_v16, %v254_v12  ;;  %v581_v18 = vsel %vm342_vm1, %v579_v4, -inf }
 0x21f   : > { %582 = vmax.xlane.f32.xlu2 %v581_v18 }
 0x220   : > { %v269_v19 = vsel %vm267_vm0, %v244_v2, %v266_v17 }
 0x221   : > { %v574_v20 = vpop.f32.mrf.mxu2  ;;  %v340_v21 = vpack.c.bf16 %v269_v19, %v268_v3 }
 0x222   : > { %v578_v22 = vmul.f32 0.25, %v574_v20 }
 0x223   : > { %711 = vmatmul.msk.bf16.vlgmr.msra.gmra.mxu0 %vm342_vm1, %v340_v21 }
 0x224   : > { %v580_v10 = vadd.f32 %v767_v6, %v578_v22 }
 0x225   : > { %v601_v24 = vpop.permute.xlu1 %600 }
 0x226   : > { %v584_v23 = vsel %vm342_vm1, %v580_v10, -inf  ;;  %613 = vmatpush.bf16.msra.mxu3 %v601_v24 }
 0x227   : > { %585 = vmax.xlane.f32.xlu0 %v584_v23 }
 0x292   : > { %v583_v25 = vpop.xlane.xlu2 %582 }
 0x293   : > { %v587_v26 = vsub.f32 %v579_v4, %v583_v25 }
 0x295   : > { %v589_v27 = vmul.f32 1.442695, %v587_v26 }
 0x297   : > { %768 = vpow2.f32 %v589_v27 }
 0x29a   : > { %v586_v28 = vpop.xlane.xlu0 %585 }
 0x29b   : > { %v588_v29 = vsub.f32 %v580_v10, %v586_v28 }
 0x29d   : > { %v769_v30 = vpop.eup %768  ;;  %v591_v31 = vmul.f32 1.442695, %v588_v29 }
 0x29e   : > { %v593_v32 = vsel %vm342_vm1, %v769_v30, 0.0 }
 0x29f   : > { %770 = vpow2.f32 %v591_v31  ;;  %594 = vadd.xlane.f32.xlu0 %v593_v32 }
 0x2a0   : > { %v358_v33 = vpop.f32.mrf.mxu0 }
 0x2a1   : > { %v363_v34 = vmul.f32 0.25, %v358_v33 }
 0x2a3   : > { %v368_v0 = vadd.f32 %v767_v6, %v363_v34 }
 0x2a5   : > { %v771_v35 = vpop.eup %770  ;;  %v370_v36 = vsel %vm342_vm1, %v368_v0, -inf }
 0x2a6   : > { %371 = vmax.xlane.f32.xlu1 %v370_v36  ;;  %v596_v37 = vsel %vm342_vm1, %v771_v35, 0.0  ;;  %v599_v38 = vpack.c.bf16 %v771_v35, %v769_v30 }
 0x2a7   : > { %597 = vadd.xlane.f32.xlu0 %v596_v37 }
 0x2a8   : > { %v360_v39 = vpop.f32.mrf.mxu0  ;;  %714 = vmatmul.msk.bf16.vlgmr.msra.gmra.mxu3 %vm342_vm1, %v599_v38 }
 0x2a9   : > { %v364_v40 = vmul.f32 0.25, %v360_v39 }
 0x2ab   : > { %v369_v41 = vadd.f32 %v767_v6, %v364_v40 }
 0x2ad   : > { %v373_v42 = vsel %vm342_vm1, %v369_v41, -inf }
 0x2ae   : > { %374 = vmax.xlane.f32.xlu2 %v373_v42 }
 0x2c6   : > { %391 = vrot.lane.b32.xlu2 %v980_v51, %s803_s16 }
 0x312   : > { %v595_v46 = vpop.xlane.xlu0 %594 }
 0x319   : > { %v372_v43 = vpop.xlane.xlu1 %371 }
 0x31a   : > { %v376_v44 = vsub.f32 %v368_v0, %v372_v43  ;;  %v598_v54 = vpop.xlane.xlu0 %597 }
 0x31c   : > { %v378_v45 = vmul.f32 1.442695, %v376_v44 }
 0x31e   : > { %772 = vpow2.f32 %v378_v45 }
 0x321   : > { %v375_v47 = vpop.xlane.xlu2 %374 }
 0x322   : > { %v377_v48 = vsub.f32 %v369_v41, %v375_v47 }
 0x324   : > { %v773_v49 = vpop.eup %772  ;;  %v380_v50 = vmul.f32 1.442695, %v377_v48 }
 0x325   : > { %v382_v52 = vsel %vm342_vm1, %v773_v49, 0.0 }
 0x326   : > { %774 = vpow2.f32 %v380_v50  ;;  %383 = vadd.xlane.f32.xlu1 %v382_v52 }
 0x327   : > { %776 = vrcp.f32 %v598_v54 }
 0x328   : > { %778 = vrcp.f32 %v595_v46 }
 0x329   : > { %v392_v53 = vpop.permute.xlu2 %391 }
 0x32a   : > { %404 = vmatpush.bf16.msra.mxu1 %v392_v53 }
 0x32b   : > { %v615_v55 = vpop.f32.mrf.mxu3 }
 0x32c   : > { %v775_v56 = vpop.eup %774 }
 0x32d   : > { %v385_v51 = vsel %vm342_vm1, %v775_v56, 0.0  ;;  %v388_v57 = vpack.c.bf16 %v775_v56, %v773_v49  ;;  %v777_v58 = vpop.eup %776 }
 0x32e   : > { %386 = vadd.xlane.f32.xlu0 %v385_v51  ;;  %v779_v60 = vpop.eup %778 }
 0x32f   : > { %712 = vmatmul.msk.bf16.vlgmr.msra.gmra.mxu1 %vm342_vm1, %v388_v57  ;;  %v622_v61 = vmul.f32 %v779_v60, %v615_v55 }
 0x333   : > { %v617_v59 = vpop.f32.mrf.mxu3 }
 0x334   : > { %v623_v1 = vmul.f32 %v777_v58, %v617_v59 }
 0x336   : > { %628 = vrot.lane.b32.xlu2 %v623_v1, %s795_s26 }
 0x33f   : > { %626 = vrot.lane.b32.xlu1 %v622_v61, %s795_s26 }
 0x390   : > { %v629_v14 = vpop.permute.xlu2 %628 }
 0x399   : > { %v384_v62 = vpop.xlane.xlu1 %383 }
 0x39a   : > { %780 = vrcp.f32 %v384_v62 }
 0x3a0   : > { %v781_v6 = vpop.eup %780 }
 0x3a1   : > { %v387_v63 = vpop.xlane.xlu0 %386 }
 0x3a2   : > { %782 = vrcp.f32 %v387_v63 }
 0x3a8   : > { %v783_v11 = vpop.eup %782 }
 0x3ac   : > { %v406_v5 = vpop.f32.mrf.mxu1 }
 0x3ad   : > { %v413_v7 = vmul.f32 %v781_v6, %v406_v5 }
 0x3b1   : > { %v627_v8 = vpop.permute.xlu1 %626 }
 0x3b2   : > { %v632_v9 = vsel %vm342_vm1, %v413_v7, %v627_v8 }
 0x3b3   : > { %635 = vst.msk [vmem:[%s213_s22] sm:$0xff] %vm634_vm2, %v632_v9 }
 0x3b4   : > { %v408_v12 = vpop.f32.mrf.mxu1 }
 0x3b5   : > { %v414_v13 = vmul.f32 %v783_v11, %v408_v12 }
 0x3b7   : > { %v633_v15 = vsel %vm342_vm1, %v414_v13, %v629_v14 }
 0x3b8   : > { %636 = vst.msk [vmem:[%s213_s22 + $0x8] sm:$0xff] %vm634_vm2, %v633_v15 }
 0x3b9 PF: > { %s14_s15 = sadd.s32 1, %s790_s15  }
 0x3ba   : > { %p11_p5 = scmp.ge.s32.totalorder %s14_s15, 4  }
 0x3bc   :  { %13 = sbr.rel (!%p11_p5) target bundleno = 1 (0x1), region = 69 }

// kernel: roformer_backbone_forward.15
= control target key start
LH: loop header
LB: loop body
LE: loop exit
PB: predicated region body
PF: predicated region fallthrough
CT: control target
= control target key end

     0   :  { %vm19_vm0 = vcmask 523264   ;;  %v312_v1 = vmov 0.0   ;;  %vm50_vm1 = vcmask 261120   ;;  %s451_s1 = inlined_call_operand.vmem [shape: bf16[32,64], index: 1, kind: input, shape index: {}]   ;;  %s452_s0 = inlined_call_operand.vmem [shape: f32[32,32], index: 0, kind: input, shape index: {}]   ;;  %s453_s2 = inlined_call_operand.vmem [shape: f32[1,64], index: 2, kind: input, shape index: {}]   ;;  %s454_s3 = inlined_call_operand.vmem [shape: f32[32,64], index: 3, kind: output, shape index: {}]  }
   0x1   :  { %v299_v0 = vld [vmem:[%s451_s1 + $0x8] sm:$0xff]  ;;  %20 = vst.msk [vmem:[#allocation2] sm:$0xff] %vm19_vm0, %v312_v1  ;;  %v298_v2 = vld [vmem:[%s451_s1] sm:$0xff]  ;;  %v30_v5 = vld [vmem:[%s452_s0 + $0x10] sm:$0xff] }
   0x2   :  { %v28_v3 = vld [vmem:[%s452_s0] sm:$0xff]  ;;  %v29_v4 = vld [vmem:[%s452_s0 + $0x8] sm:$0xff]  ;;  %21 = vst.msk [vmem:[#allocation2 + $0x8] sm:$0xff] %vm19_vm0, %v312_v1  ;;  %63 = vmatpush.bf16.msra.mxu0 %v299_v0  ;;  %300 = vmatpush.bf16.msra.mxu1 %v299_v0  ;;  %v31_v6 = vld [vmem:[%s452_s0 + $0x18] sm:$0xff] }
   0x3   :  { %22 = vst.msk [vmem:[#allocation2 + $0x10] sm:$0xff] %vm19_vm0, %v312_v1  ;;  %v32_v7 = vpack.c.bf16 %v29_v4, %v28_v3  ;;  %v33_v8 = vpack.c.bf16 %v31_v6, %v30_v5  ;;  %v303_v17 = vld [vmem:[%s453_s2] ss:$0 sm:$0xff] }
   0x4   :  { %23 = vst.msk [vmem:[#allocation2 + $0x18] sm:$0xff] %vm19_vm0, %v312_v1 }
   0x6   :  { %64 = vmatpush.bf16.msra.mxu0 %v298_v2  ;;  %301 = vmatpush.bf16.msra.mxu1 %v298_v2 }
   0x8   :  { %v24_v9 = vld [vmem:[#allocation2] sm:$0xff] }
   0x9   :  { %292 = vmatmul.msk.bf16.vlgmr.msra.gmra.mxu0 %vm50_vm1, %v32_v7  ;;  %293 = vmatmul.msk.bf16.vlgmr.msra.gmra.mxu1 %vm50_vm1, %v33_v8  ;;  %v25_v15 = vld [vmem:[#allocation2 + $0x8] sm:$0xff] }
   0xa   :  { %v26_v10 = vld [vmem:[#allocation2 + $0x10] sm:$0xff] }
   0xb   :  { %v27_v16 = vld [vmem:[#allocation2 + $0x18] sm:$0xff] }
  0x86   :  { %v66_v11 = vpop.f32.mrf.mxu0  ;;  %v71_v12 = vpop.f32.mrf.mxu1 }
  0x87   :  { %v76_v13 = vadd.f32 %v66_v11, %v24_v9  ;;  %v78_v14 = vadd.f32 %v71_v12, %v26_v10 }
  0x89   :  { %81 = vst.msk [vmem:[#allocation2] sm:$0xff] %vm19_vm0, %v76_v13 }
  0x8a   :  { %83 = vst.msk [vmem:[#allocation2 + $0x10] sm:$0xff] %vm19_vm0, %v78_v14 }
  0x8e   :  { %v68_v18 = vpop.f32.mrf.mxu0  ;;  %v73_v19 = vpop.f32.mrf.mxu1 }
  0x8f   :  { %v77_v20 = vadd.f32 %v68_v18, %v25_v15  ;;  %v79_v21 = vadd.f32 %v73_v19, %v27_v16 }
  0x90   :  { %v88_v22 = vld [vmem:[#allocation2] sm:$0xff] }
  0x91   :  { %v360_v23 = vadd.f32 %v303_v17, %v88_v22  ;;  %v90_v24 = vld [vmem:[#allocation2 + $0x10] sm:$0xff]  ;;  %82 = vst.msk [vmem:[#allocation2 + $0x8] sm:$0xff] %vm19_vm0, %v77_v20 }
  0x92   :  { %v363_v25 = vadd.f32 %v303_v17, %v90_v24  ;;  %84 = vst.msk [vmem:[#allocation2 + $0x18] sm:$0xff] %vm19_vm0, %v79_v21 }
  0x93   :  { %v367_v26 = vmul.f32 0.70710677, %v360_v23 }
  0x94   :  { %v370_v27 = vmul.f32 0.70710677, %v363_v25 }
  0x95   :  { %v108_v28 = vmul.f32 %v367_v26, %v367_v26 }
  0x96   :  { %v188_v29 = vmul.f32 %v370_v27, %v370_v27 }
  0x97   :  { %v109_v30 = vmin.f32 %v108_v28, 16.0 }
  0x98   :  { %v376_v31 = vmin.f32 %v188_v29, 16.0  ;;  %v89_v32 = vld [vmem:[#allocation2 + $0x8] sm:$0xff] }
  0x99   :  { %v110_v33 = vmul.f32 2.1237322e-06, %v109_v30  ;;  %v121_v34 = vmul.f32 3.8918573e-05, %v109_v30  ;;  %v378_v35 = vadd.f32 %v303_v17, %v89_v32  ;;  %v91_v36 = vld [vmem:[#allocation2 + $0x18] sm:$0xff] }
  0x9a   :  { %v190_v37 = vmul.f32 2.1237322e-06, %v376_v31  ;;  %v201_v38 = vmul.f32 3.8918573e-05, %v376_v31  ;;  %v382_v39 = vadd.f32 %v303_v17, %v91_v36 }
  0x9b   :  { %v111_v40 = vadd.f32 0.00028619796, %v110_v33  ;;  %v122_v41 = vadd.f32 0.001143296, %v121_v34  ;;  %v385_v44 = vmul.f32 0.70710677, %v378_v35 }
  0x9c   :  { %v191_v42 = vadd.f32 0.00028619796, %v190_v37  ;;  %v202_v43 = vadd.f32 0.001143296, %v201_v38  ;;  %v388_v47 = vmul.f32 0.70710677, %v382_v39 }
  0x9d   :  { %v112_v45 = vmul.f32 %v111_v40, %v109_v30  ;;  %v123_v46 = vmul.f32 %v122_v41, %v109_v30  ;;  %v148_v50 = vmul.f32 %v385_v44, %v385_v44 }
  0x9e   :  { %v192_v48 = vmul.f32 %v191_v42, %v376_v31  ;;  %v203_v49 = vmul.f32 %v202_v43, %v376_v31  ;;  %v228_v53 = vmul.f32 %v388_v47, %v388_v47 }
  0x9f   :  { %v113_v51 = vadd.f32 0.0036580483, %v112_v45  ;;  %v124_v52 = vadd.f32 0.014752088, %v123_v46  ;;  %v396_v56 = vmin.f32 %v148_v50, 16.0 }
  0xa0   :  { %v193_v54 = vadd.f32 0.0036580483, %v192_v48  ;;  %v204_v55 = vadd.f32 0.014752088, %v203_v49  ;;  %v398_v59 = vmin.f32 %v228_v53, 16.0 }
  0xa1   :  { %v114_v57 = vmul.f32 %v113_v51, %v109_v30  ;;  %v125_v58 = vmul.f32 %v124_v52, %v109_v30  ;;  %v150_v62 = vmul.f32 2.1237322e-06, %v396_v56  ;;  %v161_v63 = vmul.f32 3.8918573e-05, %v396_v56 }
  0xa2   :  { %v194_v60 = vmul.f32 %v193_v54, %v376_v31  ;;  %v205_v61 = vmul.f32 %v204_v55, %v376_v31  ;;  %v230_v2 = vmul.f32 2.1237322e-06, %v398_v59  ;;  %v241_v10 = vmul.f32 3.8918573e-05, %v398_v59 }
  0xa3   :  { %v115_v0 = vadd.f32 0.05243302, %v114_v57  ;;  %v126_v1 = vadd.f32 0.112945676, %v125_v58  ;;  %v151_v5 = vadd.f32 0.00028619796, %v150_v62 }
  0xa4   :  { %v195_v3 = vadd.f32 0.05243302, %v194_v60  ;;  %v206_v4 = vadd.f32 0.112945676, %v205_v61  ;;  %v162_v8 = vadd.f32 0.001143296, %v161_v63 }
  0xa5   :  { %v116_v6 = vmul.f32 %v115_v0, %v109_v30  ;;  %v127_v7 = vmul.f32 %v126_v1, %v109_v30  ;;  %v152_v12 = vmul.f32 %v151_v5, %v396_v56  ;;  %v231_v16 = vadd.f32 0.00028619796, %v230_v2 }
  0xa6   :  { %v207_v9 = vmul.f32 %v206_v4, %v376_v31  ;;  %v163_v13 = vmul.f32 %v162_v8, %v396_v56  ;;  %v196_v14 = vmul.f32 %v195_v3, %v376_v31  ;;  %v242_v21 = vadd.f32 0.001143296, %v241_v10 }
  0xa7   :  { %v128_v11 = vadd.f32 0.4994258, %v127_v7  ;;  %v117_v17 = vadd.f32 0.18741608, %v116_v6  ;;  %v153_v24 = vadd.f32 0.0036580483, %v152_v12  ;;  %v232_v33 = vmul.f32 %v231_v16, %v398_v59 }
  0xa8   :  { %v208_v15 = vadd.f32 0.4994258, %v207_v9  ;;  %v164_v19 = vadd.f32 0.014752088, %v163_v13  ;;  %v197_v28 = vadd.f32 0.18741608, %v196_v14  ;;  %v243_v36 = vmul.f32 %v242_v21, %v398_v59 }
  0xa9   :  { %v129_v18 = vmul.f32 %v128_v11, %v109_v30  ;;  %v118_v34 = vmul.f32 %v117_v17, %v109_v30  ;;  %v154_v37 = vmul.f32 %v153_v24, %v396_v56  ;;  %v233_v41 = vadd.f32 0.0036580483, %v232_v33 }
  0xaa   :  { %v209_v20 = vmul.f32 %v208_v15, %v376_v31  ;;  %v165_v32 = vmul.f32 %v164_v19, %v396_v56  ;;  %v198_v38 = vmul.f32 %v197_v28, %v376_v31  ;;  %v244_v43 = vadd.f32 0.014752088, %v243_v36 }
  0xab   :  { %v130_v22 = vadd.f32 1.0, %v129_v18  ;;  %v119_v42 = vadd.f32 1.1283791, %v118_v34  ;;  %v155_v48 = vadd.f32 0.05243302, %v154_v37  ;;  %v234_v53 = vmul.f32 %v233_v41, %v398_v59 }
  0xac   :  { %v210_v29 = vadd.f32 1.0, %v209_v20  ;;  %v166_v40 = vadd.f32 0.112945676, %v165_v32  ;;  %v245_v49 = vmul.f32 %v244_v43, %v398_v59  ;;  %v199_v51 = vadd.f32 1.1283791, %v198_v38 }
  0xad   :  { %304 = vrcp.f32 %v130_v22  ;;  %v120_v54 = vmul.f32 %v119_v42, %v367_v26  ;;  %vm136_vm2 = vweird.f32 %v130_v22  ;;  %v140_v58 = vand.u32 2147483647, %v130_v22 }
  0xae   :  { %306 = vrcp.f32 %v210_v29  ;;  %v167_v45 = vmul.f32 %v166_v40, %v396_v56  ;;  %v246_v55 = vadd.f32 0.112945676, %v245_v49  ;;  %v142_v60 = vand.u32 2147483648, %v130_v22 }
  0xaf   :  { %v222_v63 = vand.u32 2147483648, %v210_v29  ;;  %v156_v0 = vmul.f32 %v155_v48, %v396_v56  ;;  %v235_v4 = vadd.f32 0.05243302, %v234_v53  ;;  %v220_v26 = vand.u32 2147483647, %v210_v29 }
  0xb0   :  { %v168_v52 = vadd.f32 0.4994258, %v167_v45  ;;  %v247_v1 = vmul.f32 %v246_v55, %v398_v59  ;;  %v200_v8 = vmul.f32 %v199_v51, %v370_v27  ;;  %vm216_vm5 = vweird.f32 %v210_v29 }
  0xb1   :  { %vm141_vm7 = vcmp.eq.f32.partialorder %v140_v58, 8.507059e+37  ;;  %v143_v9 = vor.u32 1.1754944e-38, %v142_v60  ;;  %v223_v13 = vor.u32 1.1754944e-38, %v222_v63  ;;  %v157_v14 = vadd.f32 0.18741608, %v156_v0 }
  0xb2   :  { %v169_v61 = vmul.f32 %v168_v52, %v396_v56  ;;  %v248_v6 = vadd.f32 0.4994258, %v247_v1  ;;  %v236_v15 = vmul.f32 %v235_v4, %v398_v59  ;;  %vm221_vm9 = vcmp.eq.f32.partialorder %v220_v26, 8.507059e+37 }
  0xb3   :  { %v305_v46 = vpop.eup %304  ;;  %v158_v24 = vmul.f32 %v157_v14, %v396_v56  ;;  %v100_v33 = vmul.f32 0.5, %v360_v23  ;;  %v102_v36 = vmul.f32 0.5, %v363_v25  ;;  %v103_v4 = vmul.f32 0.5, %v382_v39 }
  0xb4   :  { %v307_v50 = vpop.eup %306  ;;  %v132_v30 = vmul.f32 %v305_v46, %v130_v22  ;;  %vm137_vm3 = vweird.f32 %v305_v46  ;;  %v170_v3 = vadd.f32 1.0, %v169_v61  ;;  %v249_v11 = vmul.f32 %v248_v6, %v398_v59 }
  0xb5   :  { %v212_v31 = vmul.f32 %v307_v50, %v210_v29  ;;  %vm217_vm4 = vweird.f32 %v307_v50  ;;  %vm138_vm6 = vmor %vm136_vm2, %vm137_vm3  ;;  %v237_v28 = vadd.f32 0.18741608, %v236_v15  ;;  %v159_v41 = vadd.f32 1.1283791, %v158_v24 }
  0xb6   :  { %v133_v57 = vsub.f32 1.0, %v132_v30  ;;  %308 = vrcp.f32 %v170_v3  ;;  %vm218_vm8 = vmor %vm216_vm5, %vm217_vm4  ;;  %v250_v18 = vadd.f32 1.0, %v249_v11  ;;  %v182_v42 = vand.u32 2147483648, %v170_v3 }
  0xb7   :  { %v213_v62 = vsub.f32 1.0, %v212_v31  ;;  %v238_v43 = vmul.f32 %v237_v28, %v398_v59  ;;  %v180_v56 = vand.u32 2147483647, %v170_v3  ;;  %vm176_vm11 = vweird.f32 %v170_v3 }
  0xb8   :  { %v134_v2 = vmul.f32 %v305_v46, %v133_v57  ;;  %310 = vrcp.f32 %v250_v18  ;;  %v160_v59 = vmul.f32 %v159_v41, %v385_v44  ;;  %v183_v49 = vor.u32 1.1754944e-38, %v182_v42 }
  0xb9   :  { %v214_v5 = vmul.f32 %v307_v50, %v213_v62  ;;  %vm181_vm13 = vcmp.eq.f32.partialorder %v180_v56, 8.507059e+37  ;;  %v239_v51 = vadd.f32 1.1283791, %v238_v43  ;;  %v262_v52 = vand.u32 2147483648, %v250_v18 }
  0xba   :  { %v135_v7 = vadd.f32 %v305_v46, %v134_v2  ;;  %v260_v31 = vand.u32 2147483647, %v250_v18  ;;  %vm256_vm15 = vweird.f32 %v250_v18  ;;  %v101_v62 = vmul.f32 0.5, %v378_v35 }
  0xbb   :  { %v215_v10 = vadd.f32 %v307_v50, %v214_v5  ;;  %v263_v60 = vor.u32 1.1754944e-38, %v262_v52  ;;  %v240_v61 = vmul.f32 %v239_v51, %v388_v47 }
  0xbc   :  { %v139_v12 = vsel %vm138_vm6, %v305_v46, %v135_v7  ;;  %v309_v21 = vpop.eup %308  ;;  %vm261_vm2 = vcmp.eq.f32.partialorder %v260_v31, 8.507059e+37 }
  0xbd   :  { %v144_v16 = vsel %vm141_vm7, %v143_v9, %v139_v12  ;;  %v219_v17 = vsel %vm218_vm8, %v307_v50, %v215_v10  ;;  %v172_v32 = vmul.f32 %v309_v21, %v170_v3  ;;  %vm177_vm10 = vweird.f32 %v309_v21 }
  0xbe   :  { %v145_v27 = vmul.f32 %v144_v16, %v120_v54  ;;  %v224_v19 = vsel %vm221_vm9, %v223_v13, %v219_v17  ;;  %v311_v45 = vpop.eup %310  ;;  %vm178_vm12 = vmor %vm176_vm11, %vm177_vm10 }
  0xbf   :  { %v225_v20 = vmul.f32 %v224_v19, %v200_v8  ;;  %v173_v38 = vsub.f32 1.0, %v172_v32  ;;  %v252_v23 = vmul.f32 %v311_v45, %v250_v18  ;;  %vm257_vm14 = vweird.f32 %v311_v45 }
  0xc0   :  { %v294_v22 = vclamps-f32 %v145_v27, 1.0  ;;  %vm258_vm1 = vmor %vm256_vm15, %vm257_vm14 }
  0xc1   :  { %v296_v29 = vclamps-f32 %v225_v20, 1.0  ;;  %v174_v48 = vmul.f32 %v309_v21, %v173_v38  ;;  %v253_v50 = vsub.f32 1.0, %v252_v23 }
  0xc2   :  { %v268_v34 = vadd.f32 1.0, %v294_v22 }
  0xc3   :  { %v270_v37 = vadd.f32 1.0, %v296_v29  ;;  %v175_v25 = vadd.f32 %v309_v21, %v174_v48  ;;  %v254_v54 = vmul.f32 %v311_v45, %v253_v50 }
  0xc4   :  { %v272_v40 = vmul.f32 %v268_v34, %v100_v33 }
  0xc5   :  { %v274_v46 = vmul.f32 %v270_v37, %v102_v36  ;;  %v179_v30 = vsel %vm178_vm12, %v309_v21, %v175_v25  ;;  %v255_v57 = vadd.f32 %v311_v45, %v254_v54 }
  0xc6   :  { %276 = vst.msk [vmem:[%s454_s3] sm:$0xff] %vm19_vm0, %v272_v40  ;;  %v184_v53 = vsel %vm181_vm13, %v183_v49, %v179_v30 }
  0xc7   :  { %278 = vst.msk [vmem:[%s454_s3 + $0x10] sm:$0xff] %vm19_vm0, %v274_v46  ;;  %v185_v55 = vmul.f32 %v184_v53, %v160_v59  ;;  %v259_v44 = vsel %vm258_vm1, %v311_v45, %v255_v57 }
  0xc8   :  { %v264_v0 = vsel %vm261_vm2, %v263_v60, %v259_v44 }
  0xc9   :  { %v295_v58 = vclamps-f32 %v185_v55, 1.0  ;;  %v265_v1 = vmul.f32 %v264_v0, %v240_v61 }
  0xcb   :  { %v269_v63 = vadd.f32 1.0, %v295_v58  ;;  %v297_v3 = vclamps-f32 %v265_v1, 1.0 }
  0xcd   :  { %v273_v2 = vmul.f32 %v269_v63, %v101_v62  ;;  %v271_v5 = vadd.f32 1.0, %v297_v3 }
  0xcf   :  { %277 = vst.msk [vmem:[%s454_s3 + $0x8] sm:$0xff] %vm19_vm0, %v273_v2  ;;  %v275_v26 = vmul.f32 %v271_v5, %v103_v4 }
  0xd1   :  { %279 = vst.msk [vmem:[%s454_s3 + $0x18] sm:$0xff] %vm19_vm0, %v275_v26 }

// kernel: roformer_backbone_forward.16
= control target key start
LH: loop header
LB: loop body
LE: loop exit
PB: predicated region body
PF: predicated region fallthrough
CT: control target
= control target key end

     0   :  { %vm28_vm0 = vcmask 261120   ;;  %v293_v1 = vmov 0.0   ;;  %vm75_vm1 = vcmask 523264   ;;  %v294_v44 = vmov 32.0   ;;  %s422_s1 = inlined_call_operand.vmem [shape: bf16[64,32], index: 1, kind: input, shape index: {}]   ;;  %s423_s0 = inlined_call_operand.vmem [shape: f32[32,64], index: 0, kind: input, shape index: {}]   ;;  %s424_s2 = inlined_call_operand.vmem [shape: f32[1,32], index: 2, kind: input, shape index: {}, may-alias: {2,5}]   ;;  %s425_s3 = inlined_call_operand.vmem [shape: f32[32,32], index: 3, kind: input, shape index: {}]   ;;  %s426_s4 = inlined_call_operand.vmem [shape: f32[1,32], index: 4, kind: input, shape index: {}]   ;;  %s427_s5 = inlined_call_operand.vmem [shape: f32[1,32], index: 5, kind: input, shape index: {}, may-alias: {2,5}]   ;;  %s428_s6 = inlined_call_operand.vmem [shape: f32[32,32], index: 6, kind: output, shape index: {}]  }
   0x1   :  { %v273_v0 = vld [vmem:[%s422_s1 + $0x18] sm:$0xff]  ;;  %29 = vst.msk [vmem:[#allocation2] sm:$0xff] %vm28_vm0, %v293_v1  ;;  %v272_v2 = vld [vmem:[%s422_s1 + $0x10] sm:$0xff]  ;;  %v271_v3 = vld [vmem:[%s422_s1 + $0x8] sm:$0xff]  ;;  %283 = vrcp.f32 %v294_v44 }
   0x2   :  { %30 = vst.msk [vmem:[#allocation2 + $0x8] sm:$0xff] %vm28_vm0, %v293_v1  ;;  %86 = vmatpush.bf16.msra.mxu0 %v273_v0  ;;  %274 = vmatpush.bf16.msra.mxu1 %v273_v0  ;;  %v270_v4 = vld [vmem:[%s422_s1] sm:$0xff]  ;;  %v38_v6 = vld [vmem:[%s423_s0 + $0x8] sm:$0xff]  ;;  %v39_v7 = vld [vmem:[%s423_s0 + $0x10] sm:$0xff] }
   0x3   :  { %31 = vst.msk [vmem:[#allocation2 + $0x10] sm:$0xff] %vm28_vm0, %v293_v1  ;;  %v37_v5 = vld [vmem:[%s423_s0] sm:$0xff]  ;;  %v40_v8 = vld [vmem:[%s423_s0 + $0x18] sm:$0xff]  ;;  %v127_v27 = vld [vmem:[%s425_s3 + $0x10] sm:$0xff] }
   0x4   :  { %32 = vst.msk [vmem:[#allocation2 + $0x18] sm:$0xff] %vm28_vm0, %v293_v1  ;;  %v41_v9 = vpack.c.bf16 %v38_v6, %v37_v5  ;;  %v42_v10 = vpack.c.bf16 %v40_v8, %v39_v7  ;;  %v280_v19 = vld [vmem:[%s424_s2] ss:$0 sm:$0xff]  ;;  %v126_v35 = vld [vmem:[%s425_s3 + $0x8] sm:$0xff]  ;;  %v128_v37 = vld [vmem:[%s425_s3 + $0x18] sm:$0xff] }
   0x5   :  { %v125_v25 = vld [vmem:[%s425_s3] sm:$0xff] }
   0x6   :  { %87 = vmatpush.bf16.msra.mxu0 %v272_v2  ;;  %275 = vmatpush.bf16.msra.mxu1 %v272_v2 }
   0x7   :  { %v284_v45 = vpop.eup %283 }
   0x8   :  { %v33_v11 = vld [vmem:[#allocation2] sm:$0xff]  ;;  %v146_v46 = vmul.f32 32.0, %v284_v45  ;;  %vm150_vm2 = vweird.f32 %v284_v45 }
   0x9   :  { %v34_v17 = vld [vmem:[#allocation2 + $0x8] sm:$0xff] }
   0xa   :  { %88 = vmatpush.bf16.msra.mxu0 %v271_v3  ;;  %276 = vmatpush.bf16.msra.mxu1 %v271_v3  ;;  %v35_v12 = vld [vmem:[#allocation2 + $0x10] sm:$0xff]  ;;  %v147_v47 = vsub.f32 1.0, %v146_v46 }
   0xb   :  { %v36_v18 = vld [vmem:[#allocation2 + $0x18] sm:$0xff] }
   0xc   :  { %v148_v48 = vmul.f32 %v284_v45, %v147_v47 }
   0xe   :  { %89 = vmatpush.bf16.msra.mxu0 %v270_v4  ;;  %277 = vmatpush.bf16.msra.mxu1 %v270_v4  ;;  %v149_v49 = vadd.f32 %v284_v45, %v148_v48 }
  0x10   :  { %v151_v50 = vsel %vm150_vm2, %v284_v45, %v149_v49 }
  0x11   :  { %268 = vmatmul.msk.bf16.vlgmr.msra.gmra.mxu0 %vm75_vm1, %v41_v9  ;;  %269 = vmatmul.msk.bf16.vlgmr.msra.gmra.mxu1 %vm75_vm1, %v42_v10 }
  0x8e   :  { %v91_v13 = vpop.f32.mrf.mxu0  ;;  %v96_v14 = vpop.f32.mrf.mxu1 }
  0x8f   :  { %v101_v15 = vadd.f32 %v91_v13, %v33_v11  ;;  %v103_v16 = vadd.f32 %v96_v14, %v35_v12 }
  0x91   :  { %106 = vst.msk [vmem:[#allocation2] sm:$0xff] %vm28_vm0, %v101_v15 }
  0x92   :  { %108 = vst.msk [vmem:[#allocation2 + $0x10] sm:$0xff] %vm28_vm0, %v103_v16 }
  0x96   :  { %v93_v20 = vpop.f32.mrf.mxu0  ;;  %v98_v21 = vpop.f32.mrf.mxu1 }
  0x97   :  { %v102_v22 = vadd.f32 %v93_v20, %v34_v17  ;;  %v104_v23 = vadd.f32 %v98_v21, %v36_v18 }
  0x98   :  { %v113_v24 = vld [vmem:[#allocation2] sm:$0xff] }
  0x99   :  { %107 = vst.msk [vmem:[#allocation2 + $0x8] sm:$0xff] %vm28_vm0, %v102_v22  ;;  %v115_v26 = vld [vmem:[#allocation2 + $0x10] sm:$0xff]  ;;  %v121_v28 = vadd.f32 %v280_v19, %v113_v24 }
  0x9a   :  { %109 = vst.msk [vmem:[#allocation2 + $0x18] sm:$0xff] %vm28_vm0, %v104_v23  ;;  %v123_v29 = vadd.f32 %v280_v19, %v115_v26 }
  0x9b   :  { %v129_v30 = vadd.f32 %v125_v25, %v121_v28 }
  0x9c   :  { %v131_v31 = vadd.f32 %v127_v27, %v123_v29 }
  0x9d   :  { %v133_v32 = vsel %vm28_vm0, %v129_v30, 0.0 }
  0x9e   :  { %v139_v33 = vsel %vm28_vm0, %v131_v31, 0.0  ;;  %134 = vadd.xlane.f32.xlu0 %v133_v32 }
  0x9f   :  { %140 = vadd.xlane.f32.xlu1 %v139_v33  ;;  %v281_v33 = vld [vmem:[%s426_s4] ss:$0 sm:$0xff] }
  0xa0   :  { %v114_v34 = vld [vmem:[#allocation2 + $0x8] sm:$0xff] }
  0xa1   :  { %v116_v36 = vld [vmem:[#allocation2 + $0x18] sm:$0xff]  ;;  %v122_v38 = vadd.f32 %v280_v19, %v114_v34 }
  0xa2   :  { %v124_v39 = vadd.f32 %v280_v19, %v116_v36 }
  0xa3   :  { %v130_v40 = vadd.f32 %v126_v35, %v122_v38  ;;  %v282_v38 = vld [vmem:[%s427_s5] ss:$0 sm:$0xff] }
  0xa4   :  { %v132_v41 = vadd.f32 %v128_v37, %v124_v39 }
  0xa5   :  { %v136_v42 = vsel %vm28_vm0, %v130_v40, 0.0 }
  0xa6   :  { %v142_v43 = vsel %vm28_vm0, %v132_v41, 0.0  ;;  %137 = vadd.xlane.f32.xlu0 %v136_v42 }
  0xa7   :  { %143 = vadd.xlane.f32.xlu1 %v142_v43 }
 0x111   :  { %v135_v51 = vpop.xlane.xlu0 %134 }
 0x112   :  { %v141_v52 = vpop.xlane.xlu1 %140  ;;  %v152_v53 = vmul.f32 %v151_v50, %v135_v51 }
 0x113   :  { %v154_v54 = vmul.f32 %v151_v50, %v141_v52 }
 0x114   :  { %v156_v55 = vsub.f32 %v129_v30, %v152_v53 }
 0x115   :  { %v381_v56 = vsub.f32 %v131_v31, %v154_v54 }
 0x116   :  { %v160_v57 = vmul.f32 %v156_v55, %v156_v55 }
 0x117   :  { %v162_v58 = vmul.f32 %v381_v56, %v381_v56 }
 0x118   :  { %v164_v59 = vsel %vm28_vm0, %v160_v57, 0.0 }
 0x119   :  { %165 = vadd.xlane.f32.xlu2 %v164_v59  ;;  %v170_v60 = vsel %vm28_vm0, %v162_v58, 0.0  ;;  %v138_v61 = vpop.xlane.xlu0 %137 }
 0x11a   :  { %v144_v62 = vpop.xlane.xlu1 %143  ;;  %171 = vadd.xlane.f32.xlu0 %v170_v60  ;;  %v153_v63 = vmul.f32 %v151_v50, %v138_v61 }
 0x11b   :  { %v155_v0 = vmul.f32 %v151_v50, %v144_v62 }
 0x11c   :  { %v387_v1 = vsub.f32 %v130_v40, %v153_v63 }
 0x11d   :  { %v389_v2 = vsub.f32 %v132_v41, %v155_v0 }
 0x11e   :  { %v161_v3 = vmul.f32 %v387_v1, %v387_v1 }
 0x11f   :  { %v163_v4 = vmul.f32 %v389_v2, %v389_v2 }
 0x120   :  { %v167_v5 = vsel %vm28_vm0, %v161_v3, 0.0 }
 0x121   :  { %v173_v6 = vsel %vm28_vm0, %v163_v4, 0.0  ;;  %168 = vadd.xlane.f32.xlu2 %v167_v5 }
 0x122   :  { %174 = vadd.xlane.f32.xlu1 %v173_v6 }
 0x18c   :  { %v166_v7 = vpop.xlane.xlu2 %165 }
 0x18d   :  { %v176_v8 = vmul.f32 %v166_v7, %v151_v50  ;;  %v172_v9 = vpop.xlane.xlu0 %171 }
 0x18e   :  { %v178_v10 = vmul.f32 %v172_v9, %v151_v50 }
 0x18f   :  { %v180_v11 = vadd.f32 1e-12, %v176_v8 }
 0x190   :  { %v182_v12 = vadd.f32 1e-12, %v178_v10 }
 0x191   :  { %285 = vrsqrt.f32 %v180_v11  ;;  %vm190_vm5 = vweird.f32 %v180_v11 }
 0x192   :  { %287 = vrsqrt.f32 %v182_v12  ;;  %vm210_vm7 = vweird.f32 %v182_v12 }
 0x194   :  { %v169_v13 = vpop.xlane.xlu2 %168 }
 0x195   :  { %v175_v14 = vpop.xlane.xlu1 %174  ;;  %v177_v15 = vmul.f32 %v169_v13, %v151_v50 }
 0x196   :  { %v179_v16 = vmul.f32 %v175_v14, %v151_v50 }
 0x197   :  { %v286_v17 = vpop.eup %285  ;;  %v181_v18 = vadd.f32 1e-12, %v177_v15 }
 0x198   :  { %v288_v19 = vpop.eup %287  ;;  %v185_v20 = vmul.f32 %v286_v17, %v180_v11  ;;  %v183_v21 = vadd.f32 1e-12, %v179_v16  ;;  %vm191_vm3 = vweird.f32 %v286_v17 }
 0x199   :  { %v205_v22 = vmul.f32 %v288_v19, %v182_v12  ;;  %289 = vrsqrt.f32 %v181_v18  ;;  %vm211_vm4 = vweird.f32 %v288_v19  ;;  %vm192_vm6 = vmor %vm190_vm5, %vm191_vm3  ;;  %vm200_vm11 = vweird.f32 %v181_v18 }
 0x19a   :  { %v186_v23 = vmul.f32 %v286_v17, %v185_v20  ;;  %291 = vrsqrt.f32 %v183_v21  ;;  %vm212_vm8 = vmor %vm210_vm7, %vm211_vm4  ;;  %vm220_vm12 = vweird.f32 %v183_v21 }
 0x19b   :  { %v206_v24 = vmul.f32 %v288_v19, %v205_v22 }
 0x19c   :  { %v187_v25 = vmul.f32 0.5, %v186_v23 }
 0x19d   :  { %v207_v26 = vmul.f32 0.5, %v206_v24 }
 0x19e   :  { %v188_v27 = vsub.f32 1.5, %v187_v25 }
 0x19f   :  { %v290_v28 = vpop.eup %289  ;;  %v208_v29 = vsub.f32 1.5, %v207_v26 }
 0x1a0   :  { %v292_v30 = vpop.eup %291  ;;  %v189_v31 = vmul.f32 %v286_v17, %v188_v27  ;;  %v195_v32 = vmul.f32 %v290_v28, %v181_v18  ;;  %vm201_vm9 = vweird.f32 %v290_v28 }
 0x1a1   :  { %v209_v34 = vmul.f32 %v288_v19, %v208_v29  ;;  %v215_v35 = vmul.f32 %v292_v30, %v183_v21  ;;  %vm221_vm10 = vweird.f32 %v292_v30  ;;  %vm202_vm13 = vmor %vm200_vm11, %vm201_vm9 }
 0x1a2   :  { %v193_v36 = vsel %vm192_vm6, %v286_v17, %v189_v31  ;;  %v196_v37 = vmul.f32 %v290_v28, %v195_v32  ;;  %vm222_vm14 = vmor %vm220_vm12, %vm221_vm10 }
 0x1a3   :  { %v224_v39 = vmul.f32 %v193_v36, %v156_v55  ;;  %v213_v40 = vsel %vm212_vm8, %v288_v19, %v209_v34  ;;  %v216_v41 = vmul.f32 %v292_v30, %v215_v35 }
 0x1a4   :  { %v226_v42 = vmul.f32 %v213_v40, %v381_v56  ;;  %v197_v43 = vmul.f32 0.5, %v196_v37 }
 0x1a5   :  { %v232_v44 = vmul.f32 %v281_v33, %v224_v39  ;;  %v217_v45 = vmul.f32 0.5, %v216_v41 }
 0x1a6   :  { %v234_v46 = vmul.f32 %v281_v33, %v226_v42  ;;  %v198_v47 = vsub.f32 1.5, %v197_v43 }
 0x1a7   :  { %v240_v48 = vadd.f32 %v282_v38, %v232_v44  ;;  %v218_v49 = vsub.f32 1.5, %v217_v45 }
 0x1a8   :  { %v242_v50 = vadd.f32 %v282_v38, %v234_v46  ;;  %v199_v51 = vmul.f32 %v290_v28, %v198_v47 }
 0x1a9   :  { %244 = vst.msk [vmem:[%s428_s6] sm:$0xff] %vm28_vm0, %v240_v48  ;;  %v219_v52 = vmul.f32 %v292_v30, %v218_v49 }
 0x1aa   :  { %246 = vst.msk [vmem:[%s428_s6 + $0x10] sm:$0xff] %vm28_vm0, %v242_v50  ;;  %v203_v53 = vsel %vm202_vm13, %v290_v28, %v199_v51 }
 0x1ab   :  { %v223_v54 = vsel %vm222_vm14, %v292_v30, %v219_v52  ;;  %v225_v55 = vmul.f32 %v203_v53, %v387_v1 }
 0x1ac   :  { %v227_v56 = vmul.f32 %v223_v54, %v389_v2 }
 0x1ad   :  { %v233_v57 = vmul.f32 %v281_v33, %v225_v55 }
 0x1ae   :  { %v235_v58 = vmul.f32 %v281_v33, %v227_v56 }
 0x1af   :  { %v241_v59 = vadd.f32 %v282_v38, %v233_v57 }
 0x1b0   :  { %v243_v60 = vadd.f32 %v282_v38, %v235_v58 }
 0x1b1   :  { %245 = vst.msk [vmem:[%s428_s6 + $0x8] sm:$0xff] %vm28_vm0, %v241_v59 }
 0x1b2   :  { %247 = vst.msk [vmem:[%s428_s6 + $0x18] sm:$0xff] %vm28_vm0, %v243_v60 }

// kernel: roformer_backbone_forward.21
= control target key start
LH: loop header
LB: loop body
LE: loop exit
PB: predicated region body
PF: predicated region fallthrough
CT: control target
= control target key end

     0   :  { %vm29_vm0 = vcmask 261120   ;;  %v337_v1 = vmov 0.0   ;;  %s460_s0 = inlined_call_operand.vmem [shape: f32[32,64], index: 0, kind: input, shape index: {}]   ;;  %s461_s1 = inlined_call_operand.vmem [shape: bf16[64,32], index: 1, kind: input, shape index: {}]   ;;  %s462_s2 = inlined_call_operand.vmem [shape: f32[1,32], index: 2, kind: input, shape index: {}, may-alias: {2,5}]   ;;  %s463_s3 = inlined_call_operand.vmem [shape: f32[32,32], index: 3, kind: input, shape index: {}]   ;;  %s464_s4 = inlined_call_operand.vmem [shape: f32[1,32], index: 4, kind: input, shape index: {}]   ;;  %s465_s5 = inlined_call_operand.vmem [shape: f32[1,32], index: 5, kind: input, shape index: {}, may-alias: {2,5}]   ;;  %s466_s6 = inlined_call_operand.hbm [shape: f32[32,32], index: 6, kind: output, shape index: {}]  }
   0x1   :  { %v288_v0 = vld [vmem:[%s461_s1 + $0x18] sm:$0xff]  ;;  %30 = vst.msk [vmem:[#allocation2] sm:$0xff] %vm29_vm0, %v337_v1  ;;  %v287_v2 = vld [vmem:[%s461_s1 + $0x10] sm:$0xff] }
   0x2   :  { %87 = vmatpush.bf16.msra.mxu0 %v288_v0  ;;  %289 = vmatpush.bf16.msra.mxu1 %v288_v0  ;;  %31 = vst.msk [vmem:[#allocation2 + $0x8] sm:$0xff] %vm29_vm0, %v337_v1 }
   0x3   :  { %32 = vst.msk [vmem:[#allocation2 + $0x10] sm:$0xff] %vm29_vm0, %v337_v1 }
   0x4   :  { %33 = vst.msk [vmem:[#allocation2 + $0x18] sm:$0xff] %vm29_vm0, %v337_v1 }
   0x5   :  { %11 = vsyncpa [#allocation4], 0  ;;  %v286_v3 = vld [vmem:[%s461_s1 + $0x8] sm:$0xff]  ;;  %v285_v4 = vld [vmem:[%s461_s1] sm:$0xff]  ;;  %vm76_vm1 = vcmask 523264   ;;  %v338_v44 = vmov 32.0  }
   0x6   :  { %88 = vmatpush.bf16.msra.mxu0 %v287_v2  ;;  %290 = vmatpush.bf16.msra.mxu1 %v287_v2  ;;  %v38_v5 = vld [vmem:[%s460_s0] sm:$0xff]  ;;  %v39_v6 = vld [vmem:[%s460_s0 + $0x8] sm:$0xff]  ;;  %v40_v7 = vld [vmem:[%s460_s0 + $0x10] sm:$0xff]  ;;  %301 = vrcp.f32 %v338_v44  ;;  %s255_s25 = sshll.u32 %s466_s6, 4  ;;  %s340_s26 = smov 128   ;;  %s256_s25 = int_to_ptr.hbm [resolvable:$true] %s255_s25 }
   0x7   :  { %v41_v8 = vld [vmem:[%s460_s0 + $0x18] sm:$0xff]  ;;  %v42_v9 = vpack.c.bf16 %v39_v6, %v38_v5  ;;  %v298_v19 = vld [vmem:[%s462_s2] ss:$0 sm:$0xff]  ;;  %v128_v27 = vld [vmem:[%s463_s3 + $0x10] sm:$0xff]  ;;  %s341_s27 = smov 8  }
   0x8   :  { %v43_v10 = vpack.c.bf16 %v41_v8, %v40_v7  ;;  %v34_v11 = vld [vmem:[#allocation2] sm:$0xff]  ;;  %v127_v35 = vld [vmem:[%s463_s3 + $0x8] sm:$0xff]  ;;  %v129_v37 = vld [vmem:[%s463_s3 + $0x18] sm:$0xff] }
   0x9   :  { %v35_v17 = vld [vmem:[#allocation2 + $0x8] sm:$0xff]  ;;  %v126_v25 = vld [vmem:[%s463_s3] sm:$0xff] }
   0xa   :  { %89 = vmatpush.bf16.msra.mxu0 %v286_v3  ;;  %291 = vmatpush.bf16.msra.mxu1 %v286_v3  ;;  %v36_v12 = vld [vmem:[#allocation2 + $0x10] sm:$0xff] }
   0xb   :  { %v37_v18 = vld [vmem:[#allocation2 + $0x18] sm:$0xff] }
   0xc   :  { %v302_v45 = vpop.eup %301 }
   0xd   :  { %v147_v46 = vmul.f32 32.0, %v302_v45  ;;  %vm151_vm2 = vweird.f32 %v302_v45 }
   0xe   :  { %90 = vmatpush.bf16.msra.mxu0 %v285_v4  ;;  %292 = vmatpush.bf16.msra.mxu1 %v285_v4 }
   0xf   :  { %v148_v47 = vsub.f32 1.0, %v147_v46 }
  0x11   :  { %283 = vmatmul.msk.bf16.vlgmr.msra.gmra.mxu0 %vm76_vm1, %v42_v9  ;;  %284 = vmatmul.msk.bf16.vlgmr.msra.gmra.mxu1 %vm76_vm1, %v43_v10  ;;  %v149_v48 = vmul.f32 %v302_v45, %v148_v47 }
  0x13   :  { %v150_v49 = vadd.f32 %v302_v45, %v149_v48 }
  0x15   :  { %v152_v50 = vsel %vm151_vm2, %v302_v45, %v150_v49 }
  0x8e   :  { %v92_v13 = vpop.f32.mrf.mxu0  ;;  %v97_v14 = vpop.f32.mrf.mxu1 }
  0x8f   :  { %v102_v15 = vadd.f32 %v92_v13, %v34_v11  ;;  %v104_v16 = vadd.f32 %v97_v14, %v36_v12 }
  0x91   :  { %107 = vst.msk [vmem:[#allocation2] sm:$0xff] %vm29_vm0, %v102_v15 }
  0x92   :  { %109 = vst.msk [vmem:[#allocation2 + $0x10] sm:$0xff] %vm29_vm0, %v104_v16 }
  0x96   :  { %v94_v20 = vpop.f32.mrf.mxu0  ;;  %v99_v21 = vpop.f32.mrf.mxu1 }
  0x97   :  { %v103_v22 = vadd.f32 %v94_v20, %v35_v17  ;;  %v105_v23 = vadd.f32 %v99_v21, %v37_v18 }
  0x98   :  { %v114_v24 = vld [vmem:[#allocation2] sm:$0xff] }
  0x99   :  { %108 = vst.msk [vmem:[#allocation2 + $0x8] sm:$0xff] %vm29_vm0, %v103_v22  ;;  %v116_v26 = vld [vmem:[#allocation2 + $0x10] sm:$0xff]  ;;  %v122_v28 = vadd.f32 %v298_v19, %v114_v24 }
  0x9a   :  { %110 = vst.msk [vmem:[#allocation2 + $0x18] sm:$0xff] %vm29_vm0, %v105_v23  ;;  %v124_v29 = vadd.f32 %v298_v19, %v116_v26 }
  0x9b   :  { %v130_v30 = vadd.f32 %v126_v25, %v122_v28 }
  0x9c   :  { %v132_v31 = vadd.f32 %v128_v27, %v124_v29 }
  0x9d   :  { %v134_v32 = vsel %vm29_vm0, %v130_v30, 0.0 }
  0x9e   :  { %v140_v33 = vsel %vm29_vm0, %v132_v31, 0.0  ;;  %135 = vadd.xlane.f32.xlu0 %v134_v32 }
  0x9f   :  { %141 = vadd.xlane.f32.xlu1 %v140_v33  ;;  %v299_v33 = vld [vmem:[%s464_s4] ss:$0 sm:$0xff]  ;;  %s339_s4 = smov [#allocation3]  }
  0xa0   :  { %v115_v34 = vld [vmem:[#allocation2 + $0x8] sm:$0xff] }
  0xa1   :  { %v117_v36 = vld [vmem:[#allocation2 + $0x18] sm:$0xff]  ;;  %v123_v38 = vadd.f32 %v298_v19, %v115_v34 }
  0xa2   :  { %v125_v39 = vadd.f32 %v298_v19, %v117_v36 }
  0xa3   :  { %v131_v40 = vadd.f32 %v127_v35, %v123_v38  ;;  %v300_v38 = vld [vmem:[%s465_s5] ss:$0 sm:$0xff]  ;;  %s253_s5 = sshll.u32 %s339_s4, 4  ;;  %s254_s5 = int_to_ptr.vmem [resolvable:$true] %s253_s5 }
  0xa4   :  { %v133_v41 = vadd.f32 %v129_v37, %v125_v39 }
  0xa5   :  { %v137_v42 = vsel %vm29_vm0, %v131_v40, 0.0 }
  0xa6   :  { %v143_v43 = vsel %vm29_vm0, %v133_v41, 0.0  ;;  %138 = vadd.xlane.f32.xlu0 %v137_v42 }
  0xa7   :  { %144 = vadd.xlane.f32.xlu1 %v143_v43 }
 0x111   :  { %v136_v51 = vpop.xlane.xlu0 %135 }
 0x112   :  { %v142_v52 = vpop.xlane.xlu1 %141  ;;  %v153_v53 = vmul.f32 %v152_v50, %v136_v51 }
 0x113   :  { %v155_v54 = vmul.f32 %v152_v50, %v142_v52 }
 0x114   :  { %v157_v55 = vsub.f32 %v130_v30, %v153_v53 }
 0x115   :  { %v428_v56 = vsub.f32 %v132_v31, %v155_v54 }
 0x116   :  { %v161_v57 = vmul.f32 %v157_v55, %v157_v55 }
 0x117   :  { %v163_v58 = vmul.f32 %v428_v56, %v428_v56 }
 0x118   :  { %v165_v59 = vsel %vm29_vm0, %v161_v57, 0.0 }
 0x119   :  { %v171_v60 = vsel %vm29_vm0, %v163_v58, 0.0  ;;  %166 = vadd.xlane.f32.xlu2 %v165_v59  ;;  %v139_v61 = vpop.xlane.xlu0 %138 }
 0x11a   :  { %v145_v62 = vpop.xlane.xlu1 %144  ;;  %172 = vadd.xlane.f32.xlu0 %v171_v60  ;;  %v154_v63 = vmul.f32 %v152_v50, %v139_v61 }
 0x11b   :  { %v156_v0 = vmul.f32 %v152_v50, %v145_v62 }
 0x11c   :  { %v434_v1 = vsub.f32 %v131_v40, %v154_v63 }
 0x11d   :  { %v436_v2 = vsub.f32 %v133_v41, %v156_v0 }
 0x11e   :  { %v162_v3 = vmul.f32 %v434_v1, %v434_v1 }
 0x11f   :  { %v164_v4 = vmul.f32 %v436_v2, %v436_v2 }
 0x120   :  { %v168_v5 = vsel %vm29_vm0, %v162_v3, 0.0 }
 0x121   :  { %v174_v6 = vsel %vm29_vm0, %v164_v4, 0.0  ;;  %169 = vadd.xlane.f32.xlu2 %v168_v5 }
 0x122   :  { %175 = vadd.xlane.f32.xlu1 %v174_v6 }
 0x18c   :  { %v167_v7 = vpop.xlane.xlu2 %166 }
 0x18d   :  { %v177_v8 = vmul.f32 %v167_v7, %v152_v50  ;;  %v173_v9 = vpop.xlane.xlu0 %172 }
 0x18e   :  { %v179_v10 = vmul.f32 %v173_v9, %v152_v50 }
 0x18f   :  { %v181_v11 = vadd.f32 1e-12, %v177_v8 }
 0x190   :  { %v183_v12 = vadd.f32 1e-12, %v179_v10 }
 0x191   :  { %303 = vrsqrt.f32 %v181_v11  ;;  %vm191_vm5 = vweird.f32 %v181_v11 }
 0x192   :  { %305 = vrsqrt.f32 %v183_v12  ;;  %vm211_vm7 = vweird.f32 %v183_v12 }
 0x194   :  { %v170_v13 = vpop.xlane.xlu2 %169 }
 0x195   :  { %v176_v14 = vpop.xlane.xlu1 %175  ;;  %v178_v15 = vmul.f32 %v170_v13, %v152_v50 }
 0x196   :  { %v180_v16 = vmul.f32 %v176_v14, %v152_v50 }
 0x197   :  { %v304_v17 = vpop.eup %303  ;;  %v182_v18 = vadd.f32 1e-12, %v178_v15 }
 0x198   :  { %v306_v19 = vpop.eup %305  ;;  %v186_v20 = vmul.f32 %v304_v17, %v181_v11  ;;  %v184_v21 = vadd.f32 1e-12, %v180_v16  ;;  %vm192_vm3 = vweird.f32 %v304_v17 }
 0x199   :  { %v206_v22 = vmul.f32 %v306_v19, %v183_v12  ;;  %307 = vrsqrt.f32 %v182_v18  ;;  %vm212_vm4 = vweird.f32 %v306_v19  ;;  %vm193_vm6 = vmor %vm191_vm5, %vm192_vm3  ;;  %vm201_vm11 = vweird.f32 %v182_v18 }
 0x19a   :  { %v187_v23 = vmul.f32 %v304_v17, %v186_v20  ;;  %309 = vrsqrt.f32 %v184_v21  ;;  %vm213_vm8 = vmor %vm211_vm7, %vm212_vm4  ;;  %vm221_vm12 = vweird.f32 %v184_v21 }
 0x19b   :  { %v207_v24 = vmul.f32 %v306_v19, %v206_v22 }
 0x19c   :  { %v188_v25 = vmul.f32 0.5, %v187_v23 }
 0x19d   :  { %v208_v26 = vmul.f32 0.5, %v207_v24 }
 0x19e   :  { %v189_v27 = vsub.f32 1.5, %v188_v25 }
 0x19f   :  { %v308_v28 = vpop.eup %307  ;;  %v209_v29 = vsub.f32 1.5, %v208_v26 }
 0x1a0   :  { %v310_v30 = vpop.eup %309  ;;  %v190_v31 = vmul.f32 %v304_v17, %v189_v27  ;;  %v196_v32 = vmul.f32 %v308_v28, %v182_v18  ;;  %vm202_vm9 = vweird.f32 %v308_v28 }
 0x1a1   :  { %v210_v34 = vmul.f32 %v306_v19, %v209_v29  ;;  %v216_v35 = vmul.f32 %v310_v30, %v184_v21  ;;  %vm222_vm10 = vweird.f32 %v310_v30  ;;  %vm203_vm13 = vmor %vm201_vm11, %vm202_vm9 }
 0x1a2   :  { %v194_v36 = vsel %vm193_vm6, %v304_v17, %v190_v31  ;;  %v197_v37 = vmul.f32 %v308_v28, %v196_v32  ;;  %vm223_vm14 = vmor %vm221_vm12, %vm222_vm10 }
 0x1a3   :  { %v225_v39 = vmul.f32 %v194_v36, %v157_v55  ;;  %v214_v40 = vsel %vm213_vm8, %v306_v19, %v210_v34  ;;  %v217_v41 = vmul.f32 %v310_v30, %v216_v35 }
 0x1a4   :  { %v227_v42 = vmul.f32 %v214_v40, %v428_v56  ;;  %v198_v43 = vmul.f32 0.5, %v197_v37 }
 0x1a5   :  { %v233_v44 = vmul.f32 %v299_v33, %v225_v39  ;;  %v218_v45 = vmul.f32 0.5, %v217_v41 }
 0x1a6   :  { %v235_v46 = vmul.f32 %v299_v33, %v227_v42  ;;  %v199_v47 = vsub.f32 1.5, %v198_v43 }
 0x1a7   :  { %v241_v48 = vadd.f32 %v300_v38, %v233_v44  ;;  %v219_v49 = vsub.f32 1.5, %v218_v45 }
 0x1a8   :  { %v243_v50 = vadd.f32 %v300_v38, %v235_v46  ;;  %v200_v51 = vmul.f32 %v308_v28, %v199_v47 }
 0x1a9   :  { %245 = vst.msk [vmem:[#allocation3] sm:$0xff] %vm29_vm0, %v241_v48  ;;  %v220_v52 = vmul.f32 %v310_v30, %v219_v49 }
 0x1aa   :  { %247 = vst.msk [vmem:[#allocation3 + $0x10] sm:$0xff] %vm29_vm0, %v243_v50  ;;  %v204_v53 = vsel %vm203_vm13, %v308_v28, %v200_v51 }
 0x1ab   :  { %v224_v54 = vsel %vm223_vm14, %v310_v30, %v220_v52  ;;  %v226_v55 = vmul.f32 %v204_v53, %v434_v1 }
 0x1ac   :  { %v228_v56 = vmul.f32 %v224_v54, %v436_v2 }
 0x1ad   :  { %v234_v57 = vmul.f32 %v299_v33, %v226_v55 }
 0x1ae   :  { %v236_v58 = vmul.f32 %v299_v33, %v228_v56 }
 0x1af   :  { %v242_v59 = vadd.f32 %v300_v38, %v234_v57 }
 0x1b0   :  { %v244_v60 = vadd.f32 %v300_v38, %v236_v58 }
 0x1b1   :  { %246 = vst.msk [vmem:[#allocation3 + $0x8] sm:$0xff] %vm29_vm0, %v242_v59 }
 0x1b2   :  { %248 = vst.msk [vmem:[#allocation3 + $0x18] sm:$0xff] %vm29_vm0, %v244_v60 }
 0x1b3   :  { %261 = dma.vmem_to_hbm [thread:$0]  %s254_s5, 512, %s256_s25, [#allocation4], %s340_s26, %s340_s26, %s341_s27  }
 0x1b4   :  { %335 = dma.done.wait [#allocation4], 512  }
 0x1b5   :  { %336 = vsyncadd [#allocation4], 4294966784 }
 0x1b6   :  { %266 = vsyncpa [#allocation4], 1 }

</bundles_post_ra>
